<compile_context>
chip_gen: v6e
topology: v6e:2x2x1
jax: 0.10.0
libtpu: 0.0.40
codegen_flags: <defaults>
</compile_context>

<pallas_src>
import functools
import math

import jax
import jax.numpy as jnp
from jax.experimental import pallas as pl
from jax.experimental.pallas import tpu as pltpu

BIG_CONST = -1000000000000000.0  # matches the torch code

# ----------------------------- configuration ---------------------------------
VOCAB = 128
HIDDEN = 32
N_HEAD = 4
HEAD_DIM = HIDDEN // N_HEAD
N_LAYER = 2
MAX_POS = 64
TEMPLATE = (3, 3)
SPELL_LEN = sum(TEMPLATE)           # prompt-encoder length P
RANKING_SCOPE = 20                  # args.ranking_scope (top_k)
TOP_P = 0.9                         # args.top_p

PSEUDO_TOKEN_ID = VOCAB - 2
PAD_TOKEN_ID = VOCAB - 1            # tokenizer.pad_token = eos_token
EOS_TOKEN_ID = VOCAB - 1
UNK_TOKEN_ID = VOCAB - 1


# ----------------------------- in-kernel helpers ------------------------------
def _layer_norm(x, g, b, eps=1e-5):
    mu = jnp.mean(x, axis=-1, keepdims=True)
    d = x - mu
    var = jnp.mean(d * d, axis=-1, keepdims=True)
    return d * jax.lax.rsqrt(var + eps) * g + b


_GELU_C = math.sqrt(2.0 / math.pi)


def _gelu(x):
    return 0.5 * x * (1.0 + jnp.tanh(_GELU_C * (x + 0.044715 * x * x * x)))


def _rep_spec(arr):
    """Full-array block replicated across the grid (weights / biases)."""
    nd = arr.ndim
    return pl.BlockSpec(arr.shape, lambda *_, nd=nd: (0,) * nd)


# ----------------------------- fused GPT-2 forward kernel ---------------------
def _gpt2_fused_kernel(h_ref, mask_ref,
                       ln1g_ref, ln1b_ref, wqkv_ref, bqkv_ref,
                       wproj_ref, bproj_ref,
                       ln2g_ref, ln2b_ref, wfc_ref, bfc_ref,
                       wout_ref, bout_ref,
                       lnfg_ref, lnfb_ref, wtet_ref,
                       o_ref,
                       qkv_sc, attn_sc,
                       *, n_layer, n_head, scale):
    """All transformer blocks + final LN + tied LM head for a (BB,S,H) batch block."""
    BB, S, H = h_ref.shape
    Dh = H // n_head

    # causal structure is batch-independent; build it once per grid step.
    row = jax.lax.broadcasted_iota(jnp.int32, (S, S), 0)
    col = jax.lax.broadcasted_iota(jnp.int32, (S, S), 1)
    causal = col <= row

    for bb in range(BB):                                  # static unroll over the batch block
        keyok = mask_ref[bb] > 0.5                        # (1, S) key mask
        bias = jnp.where(causal & keyok, 0.0, -1e9)       # (S, S) additive mask, built in-kernel
        h = h_ref[bb]                                     # (S, H), stays resident across layers

        for l in range(n_layer):                          # static unroll over layers
            # ---- attention ----
            x = _layer_norm(h, ln1g_ref[l], ln1b_ref[l])
            # ONE fused QKV matmul + single fused bias.
            qkv_sc[...] = (jnp.dot(x, wqkv_ref[l], preferred_element_type=jnp.float32)
                           + bqkv_ref[l])
            for hd in range(n_head):
                q = qkv_sc[:, hd * Dh:(hd + 1) * Dh]
                k = qkv_sc[:, H + hd * Dh:H + (hd + 1) * Dh]
                v = qkv_sc[:, 2 * H + hd * Dh:2 * H + (hd + 1) * Dh]
                # q @ k^T without materializing the transpose.
                s = jax.lax.dot_general(q, k, (((1,), (1,)), ((), ())),
                                        preferred_element_type=jnp.float32) * scale + bias
                m = jnp.max(s, axis=-1, keepdims=True)
                p = jnp.exp(s - m)
                p = p * pl.reciprocal(jnp.sum(p, axis=-1, keepdims=True), approx=True)
                # head merge: lane-sliced store into VMEM scratch (no in-register concat).
                attn_sc[:, hd * Dh:(hd + 1) * Dh] = jnp.dot(
                    p, v, preferred_element_type=jnp.float32)
            # ONE fused output projection over all heads.
            h = h + jnp.dot(attn_sc[...], wproj_ref[l],
                            preferred_element_type=jnp.float32) + bproj_ref[l]

            # ---- MLP ----
            x = _layer_norm(h, ln2g_ref[l], ln2b_ref[l])
            f = _gelu(jnp.dot(x, wfc_ref[l], preferred_element_type=jnp.float32) + bfc_ref[l])
            h = h + jnp.dot(f, wout_ref[l], preferred_element_type=jnp.float32) + bout_ref[l]

        # ---- final LN + tied LM head ----
        x = _layer_norm(h, lnfg_ref[...], lnfb_ref[...])
        o_ref[bb] = jnp.dot(x, wtet_ref[...], preferred_element_type=jnp.float32)


def fused_gpt2_forward(params, inputs_embeds, attention_mask, position_ids):
    """Whole frozen LM in one pallas_call. inputs_embeds:(B,S,H) -> logits (B,S,V)."""
    B, S, H = inputs_embeds.shape
    V = params['wte_T'].shape[1]
    st = params['stacked']

    h0 = (inputs_embeds + params['wpe'][position_ids]).astype(jnp.float32)
    mask3 = attention_mask.astype(jnp.float32).reshape(B, 1, S)

    BB = 2 if (B % 2 == 0 and B >= 2) else 1              # 2 batch elems per grid step
    kern = functools.partial(_gpt2_fused_kernel, n_layer=N_LAYER, n_head=N_HEAD,
                             scale=HEAD_DIM ** -0.5)
    weights = (st['ln1_g'], st['ln1_b'], st['w_qkv'], st['b_qkv'],
               st['w_proj'], st['b_proj'], st['ln2_g'], st['ln2_b'],
               st['w_fc'], st['b_fc'], st['w_out'], st['b_out'],
               params['lnf_g'], params['lnf_b'], params['wte_T'])

    return pl.pallas_call(
        kern,
        out_shape=jax.ShapeDtypeStruct((B, S, V), jnp.float32),
        grid=(B // BB,),
        in_specs=[pl.BlockSpec((BB, S, H), lambda i: (i, 0, 0)),   # hidden states
                  pl.BlockSpec((BB, 1, S), lambda i: (i, 0, 0))]   # (B,1,S) key mask only
                 + [_rep_spec(w) for w in weights],
        out_specs=pl.BlockSpec((BB, S, V), lambda i: (i, 0, 0)),
        scratch_shapes=[pltpu.VMEM((S, 3 * H), jnp.float32),       # fused QKV
                        pltpu.VMEM((S, H), jnp.float32)],          # merged heads
        compiler_params=pltpu.CompilerParams(dimension_semantics=("parallel",)),
    )(h0, mask3, *weights)


# ----------------------------- prompt-encoder MLP kernel -----------------------
def _prompt_mlp_kernel(x_ref, w1_ref, b1_ref, w2_ref, b2_ref, o_ref):
    x = x_ref[...]
    f = jnp.dot(x, w1_ref[...], preferred_element_type=jnp.float32) + b1_ref[...]
    f = jnp.maximum(f, 0.0)
    o_ref[...] = jnp.dot(f, w2_ref[...], preferred_element_type=jnp.float32) + b2_ref[...]


def pallas_prompt_mlp(x, w1, b1, w2, b2):
    """Fused Linear -> ReLU -> Linear for the prompt encoder head."""
    P, H = x.shape
    N1 = w1.shape[1]
    N2 = w2.shape[1]
    return pl.pallas_call(
        _prompt_mlp_kernel,
        out_shape=jax.ShapeDtypeStruct((P, N2), jnp.float32),
        grid=(1,),
        in_specs=[pl.BlockSpec((P, H), lambda i: (0, 0)),
                  pl.BlockSpec((H, N1), lambda i: (0, 0)),
                  pl.BlockSpec((1, N1), lambda i: (0, 0)),
                  pl.BlockSpec((N1, N2), lambda i: (0, 0)),
                  pl.BlockSpec((1, N2), lambda i: (0, 0))],
        out_specs=pl.BlockSpec((P, N2), lambda i: (0, 0)),
    )(x, w1, b1.reshape(1, N1), w2, b2.reshape(1, N2))


# ----------------------------- KL loss kernel (row-tiled) ----------------------
def _kl_kernel(dl_ref, tgt_ref, m_ref, o_ref, num_ref, den_ref):
    @pl.when(pl.program_id(0) == 0)
    def _():
        num_ref[...] = jnp.zeros_like(num_ref)
        den_ref[...] = jnp.zeros_like(den_ref)

    logits = dl_ref[...]             # (rb, V)
    tgt = tgt_ref[...]               # (rb, V)
    mask = m_ref[...]                # (rb, 1)
    mx = jnp.max(logits, axis=-1, keepdims=True)
    shifted = logits - mx
    lse = jnp.log(jnp.sum(jnp.exp(shifted), axis=-1, keepdims=True))
    logp = shifted - lse             # log-softmax directly (stable)
    kl = tgt * (jnp.log(tgt + 1e-9) - logp)
    num_ref[...] += jnp.sum(kl * mask, keepdims=True)
    den_ref[...] += jnp.sum(mask, keepdims=True)

    @pl.when(pl.program_id(0) == pl.num_programs(0) - 1)
    def _():
        o_ref[...] = num_ref[...] / jnp.maximum(den_ref[...], 1.0)


def pallas_kl_loss(disc_logits, target, att_mask, row_block=8):
    # TODO(synk): KL_loss is undefined in the reference snippet; implemented here as
    # KL(target || softmax(disc_logits)) averaged over attended tokens.
    B, T, V = disc_logits.shape
    N = B * T
    dl = disc_logits.reshape(N, V).astype(jnp.float32)
    tg = target.reshape(N, V).astype(jnp.float32)
    m = att_mask.astype(jnp.float32).reshape(N, 1)
    rb = row_block if N % row_block == 0 else N
    out = pl.pallas_call(
        _kl_kernel,
        out_shape=jax.ShapeDtypeStruct((1, 1), jnp.float32),
        grid=(N // rb,),
        in_specs=[pl.BlockSpec((rb, V), lambda i: (i, 0)),
                  pl.BlockSpec((rb, V), lambda i: (i, 0)),
                  pl.BlockSpec((rb, 1), lambda i: (i, 0))],
        out_specs=pl.BlockSpec((1, 1), lambda i: (0, 0)),
        scratch_shapes=[pltpu.VMEM((1, 1), jnp.float32),
                        pltpu.VMEM((1, 1), jnp.float32)],
        compiler_params=pltpu.CompilerParams(dimension_semantics=("arbitrary",)),
    )(dl, tg, m)
    return out[0, 0]


# ----------------------------- plain-JAX glue ---------------------------------
def prompt_encoder_forward(pp, hidden):
    """PromptEncoder: Embedding -> 2-layer bi-LSTM -> fused MLP(Linear,ReLU,Linear)."""
    x = pp['emb']                          # embedding(seq_indices) == whole table, (P, H)
    Hh = hidden // 2

    def make_cell(cell_params):
        w_ih, w_hh, b_ih, b_hh = cell_params

        def cell(carry, xt):
            hprev, cprev = carry
            gates = xt @ w_ih.T + hprev @ w_hh.T + b_ih + b_hh
            i, f, g, o = jnp.split(gates, 4)
            i = jax.nn.sigmoid(i)
            f = jax.nn.sigmoid(f)
            g = jnp.tanh(g)
            o = jax.nn.sigmoid(o)
            cnew = f * cprev + i * g
            hnew = o * jnp.tanh(cnew)
            return (hnew, cnew), hnew

        return cell

    out = x
    for layer in range(2):
        init = (jnp.zeros((Hh,), jnp.float32), jnp.zeros((Hh,), jnp.float32))
        _, hf = jax.lax.scan(make_cell(pp['lstm'][layer]['fwd']), init, out)
        _, hb = jax.lax.scan(make_cell(pp['lstm'][layer]['bwd']), init, out[::-1])
        out = jnp.concatenate([hf, hb[::-1]], axis=-1)          # (P, H)

    return pallas_prompt_mlp(out, pp['mlp_w1'], pp['mlp_b1'],
                             pp['mlp_w2'], pp['mlp_b2'])        # (P, H)


def top_k_top_p_filtering(logits, top_k=0, top_p=1.0,
                          filter_value=BIG_CONST, min_tokens_to_keep=1):
    """Faithful port of the torch helper (sort/cumsum kept in plain JAX glue)."""
    N, V = logits.shape
    if top_k > 0:
        top_k = min(max(top_k, min_tokens_to_keep), V)
        kth = jax.lax.top_k(logits, top_k)[0][:, -1:]
        logits = jnp.where(logits < kth, filter_value, logits)
    if top_p < 1.0:
        order = jnp.argsort(-logits, axis=-1)
        sorted_logits = jnp.take_along_axis(logits, order, axis=-1)
        cum = jnp.cumsum(jax.nn.softmax(sorted_logits, axis=-1), axis=-1)
        remove = cum > top_p
        remove = jnp.concatenate(
            [jnp.zeros_like(remove[:, :1]), remove[:, :-1]], axis=-1)
        indices_to_remove = jnp.zeros_like(remove).at[
            jnp.arange(N)[:, None], order].set(remove)
        logits = jnp.where(indices_to_remove, filter_value, logits)
    return logits


# ----------------------------- parameter init ---------------------------------
def init_params(key):
    keys = jax.random.split(key, 96)
    it = iter(keys)

    def nrm(shape, scale=0.02):
        return (scale * jax.random.normal(next(it), shape)).astype(jnp.float32)

    wte = nrm((VOCAB, HIDDEN))
    L, H, F = N_LAYER, HIDDEN, 4 * HIDDEN
    # Per-layer weights stacked on a leading layer axis (equivalent to stacking GPT-2's
    # c_attn / c_proj / mlp weights once at load time) so the ENTIRE LM forward fits in
    # one pallas_call with an in-kernel layer loop.
    stacked = dict(
        ln1_g=jnp.ones((L, 1, H), jnp.float32), ln1_b=jnp.zeros((L, 1, H), jnp.float32),
        w_qkv=nrm((L, H, 3 * H)), b_qkv=jnp.zeros((L, 1, 3 * H), jnp.float32),
        w_proj=nrm((L, H, H)), b_proj=jnp.zeros((L, 1, H), jnp.float32),
        ln2_g=jnp.ones((L, 1, H), jnp.float32), ln2_b=jnp.zeros((L, 1, H), jnp.float32),
        w_fc=nrm((L, H, F)), b_fc=jnp.zeros((L, 1, F), jnp.float32),
        w_out=nrm((L, F, H)), b_out=jnp.zeros((L, 1, H), jnp.float32),
    )
    params = {
        'wte': wte,
        'wte_T': wte.T,                         # precomputed once (tied LM head)
        'wpe': nrm((MAX_POS, H)),
        'lnf_g': jnp.ones((1, H), jnp.float32),
        'lnf_b': jnp.zeros((1, H), jnp.float32),
        'stacked': stacked,
    }
    Hh = H // 2
    lstm = []
    for _ in range(2):
        lstm.append(dict(
            fwd=(nrm((4 * Hh, H)), nrm((4 * Hh, Hh)),
                 jnp.zeros((4 * Hh,), jnp.float32), jnp.zeros((4 * Hh,), jnp.float32)),
            bwd=(nrm((4 * Hh, H)), nrm((4 * Hh, Hh)),
                 jnp.zeros((4 * Hh,), jnp.float32), jnp.zeros((4 * Hh,), jnp.float32)),
        ))
    params['prompt'] = dict(
        emb=nrm((SPELL_LEN, H)),
        lstm=lstm,
        mlp_w1=nrm((H, H)), mlp_b1=jnp.zeros((H,), jnp.float32),
        mlp_w2=nrm((H, H)), mlp_b2=jnp.zeros((H,), jnp.float32),
    )
    return params


# ----------------------------- Distill_Tuning.forward -------------------------
def get_query_head(x_h):
    B = x_h.shape[0]
    prompt = jnp.full((B, SPELL_LEN), PSEUDO_TOKEN_ID, dtype=x_h.dtype)
    return jnp.concatenate([prompt, x_h], axis=1)


def embed_input_head(params, queries):
    q_for_emb = jnp.where(queries == PSEUDO_TOKEN_ID, UNK_TOKEN_ID, queries)
    raw = params['wte'][q_for_emb]                               # (B, S, H)
    replace = prompt_encoder_forward(params['prompt'], HIDDEN)   # (P, H)
    # pseudo tokens are exactly the prepended prefix -> blocked_indices[b, i] == i
    raw = raw.at[:, :SPELL_LEN, :].set(replace[None])
    return raw


def distill_tuning_forward(params, x_hs, x_ts, att_mask):
    """Reproduces Distill_Tuning.forward(x_hs, x_ts, att_mask) -> scalar KL loss."""
    del x_ts  # x_ts is accepted but unused by the reference forward
    B, T = x_hs.shape
    P = SPELL_LEN
    S = P + T

    # --------- pass 1 inputs: prompted sequence (quirks preserved) ----------
    queries = get_query_head(x_hs)                                         # (B, P+T)
    # NOTE: the reference appends the prompt mask at the END (quirk preserved).
    attention_mask1 = jnp.concatenate(
        [att_mask, jnp.ones((B, P), dtype=att_mask.dtype)], axis=1)        # (B, S)
    pos1 = jnp.cumsum(attention_mask1, axis=-1) - 1
    pos1 = jnp.where(attention_mask1 == 0, 0, pos1)
    embeds1 = embed_input_head(params, queries)                            # (B, S, H)

    # --------- pass 2 inputs: candidate logits pass, padded to S and batched ----------
    # TODO(synk): get_candidate_logits is undefined in the reference snippet;
    # use the frozen LM logits of the raw prompt tokens (padded, masked out).
    attention_mask2 = jnp.concatenate(
        [att_mask, jnp.zeros((B, P), dtype=att_mask.dtype)], axis=1)       # (B, S)
    pos2 = jnp.cumsum(att_mask, axis=-1) - 1
    pos2 = jnp.where(att_mask == 0, 0, pos2)
    pos2 = jnp.concatenate([pos2, jnp.zeros((B, P), pos2.dtype)], axis=1)
    embeds2 = params['wte'][x_hs]                                          # (B, T, H)
    embeds2 = jnp.concatenate(
        [embeds2, jnp.zeros((B, P, HIDDEN), embeds2.dtype)], axis=1)       # (B, S, H)

    # --------- one fused LM call for both passes (2B batch, 2-wide parallel grid) ----
    inputs_embeds = jnp.concatenate([embeds1, embeds2], axis=0)            # (2B, S, H)
    attention_mask = jnp.concatenate([attention_mask1, attention_mask2], axis=0)
    position_ids = jnp.concatenate([pos1, pos2], axis=0)
    logits_all = fused_gpt2_forward(params, inputs_embeds, attention_mask,
                                    position_ids)                          # (2B, S, V)

    # index_select over (queries != pseudo): pseudo tokens are exactly the prefix.
    disc_logits = logits_all[:B, P:, :]                                    # (B, T, V)
    logits_candidate = logits_all[B:, :T, :]                               # (B, T, V)

    logits_candidate = top_k_top_p_filtering(
        logits_candidate.reshape(B * T, -1),
        top_k=RANKING_SCOPE, top_p=TOP_P, filter_value=BIG_CONST,
    ).reshape(B, T, -1)

    # TODO(synk): get_ranked_logtis is undefined in the reference snippet;
    # use the softmax of the filtered candidate logits as the ranking target.
    reank_output = jax.nn.softmax(logits_candidate, axis=-1)
    reank_output = (logits_candidate > BIG_CONST + 10).astype(jnp.float32) * reank_output

    kl_loss = pallas_kl_loss(disc_logits, reank_output, att_mask)
    return kl_loss


# ----------------------------------- main --------------------------------------
if __name__ == "__main__":
    key = jax.random.PRNGKey(0)
    kp, kx, kt = jax.random.split(key, 3)

    params = init_params(kp)

    B, T = 2, 8
    x_hs = jax.random.randint(kx, (B, T), 0, 100, dtype=jnp.int32)
    att_mask = jnp.array([[1] * T, [1] * (T - 2) + [0, 0]], dtype=jnp.int32)
    x_hs = jnp.where(att_mask == 0, PAD_TOKEN_ID, x_hs)
    x_ts = jax.random.randint(kt, (B, 4), 0, 100, dtype=jnp.int32)

    fwd = jax.jit(distill_tuning_forward)
    loss = fwd(params, x_hs, x_ts, att_mask)
    jax.block_until_ready(loss)
    assert loss.shape == () and jnp.isfinite(loss)
    print("KERNEL_OK")
</pallas_src>

<mosaic_0001>
module attributes {stable_mosaic.version = 11 : i64} {
  func.func @_prompt_mlp_kernel(%arg0: i32, %arg1: memref<6x32xf32, #tpu.memory_space<vmem>>, %arg2: memref<32x32xf32, #tpu.memory_space<vmem>>, %arg3: memref<1x32xf32, #tpu.memory_space<vmem>>, %arg4: memref<32x32xf32, #tpu.memory_space<vmem>>, %arg5: memref<1x32xf32, #tpu.memory_space<vmem>>, %arg6: memref<6x32xf32, #tpu.memory_space<vmem>>) attributes {dimension_semantics = [#tpu.dimension_semantics<arbitrary>], iteration_bounds = array<i64: 1>, scalar_prefetch = 0 : i64, scratch_operands = 0 : i64, tpu.core_type = #tpu.core_type<tc>, window_params = [{pipeline_mode = #tpu.pipeline_mode<synchronous>, transform_indices = @transform_0, window_bounds = array<i64: 6, 32>}, {pipeline_mode = #tpu.pipeline_mode<synchronous>, transform_indices = @transform_1, window_bounds = array<i64: 32, 32>}, {pipeline_mode = #tpu.pipeline_mode<synchronous>, transform_indices = @transform_2, window_bounds = array<i64: 1, 32>}, {pipeline_mode = #tpu.pipeline_mode<synchronous>, transform_indices = @transform_3, window_bounds = array<i64: 32, 32>}, {pipeline_mode = #tpu.pipeline_mode<synchronous>, transform_indices = @transform_4, window_bounds = array<i64: 1, 32>}, {pipeline_mode = #tpu.pipeline_mode<synchronous>, transform_indices = @transform_5, window_bounds = array<i64: 6, 32>}]} {
    %c0 = arith.constant 0 : index
    %c0_0 = arith.constant 0 : index
    %0 = vector.load %arg1[%c0, %c0_0] : memref<6x32xf32, #tpu.memory_space<vmem>>, vector<6x32xf32>
    %c0_1 = arith.constant 0 : index
    %c0_2 = arith.constant 0 : index
    %1 = vector.load %arg2[%c0_1, %c0_2] : memref<32x32xf32, #tpu.memory_space<vmem>>, vector<32x32xf32>
    %cst = arith.constant dense<0.000000e+00> : vector<6x32xf32>
    %2 = tpu.matmul %0, %1, %cst {dimension_numbers = #tpu.dot_dimension_numbers<[1], [0], [0], [1], [0, 0, 1, 1], [], []>} : vector<6x32xf32>, vector<32x32xf32>, vector<6x32xf32> -> vector<6x32xf32>
    %c0_3 = arith.constant 0 : index
    %c0_4 = arith.constant 0 : index
    %3 = vector.load %arg3[%c0_3, %c0_4] : memref<1x32xf32, #tpu.memory_space<vmem>>, vector<1x32xf32>
    %4 = vector.broadcast %3 : vector<1x32xf32> to vector<6x32xf32>
    %5 = arith.addf %2, %4 : vector<6x32xf32>
    %cst_5 = arith.constant 0.000000e+00 : f32
    %6 = vector.broadcast %cst_5 : f32 to vector<6x32xf32>
    %7 = arith.maximumf %5, %6 : vector<6x32xf32>
    %c0_6 = arith.constant 0 : index
    %c0_7 = arith.constant 0 : index
    %8 = vector.load %arg4[%c0_6, %c0_7] : memref<32x32xf32, #tpu.memory_space<vmem>>, vector<32x32xf32>
    %cst_8 = arith.constant dense<0.000000e+00> : vector<6x32xf32>
    %9 = tpu.matmul %7, %8, %cst_8 {dimension_numbers = #tpu.dot_dimension_numbers<[1], [0], [0], [1], [0, 0, 1, 1], [], []>} : vector<6x32xf32>, vector<32x32xf32>, vector<6x32xf32> -> vector<6x32xf32>
    %c0_9 = arith.constant 0 : index
    %c0_10 = arith.constant 0 : index
    %10 = vector.load %arg5[%c0_9, %c0_10] : memref<1x32xf32, #tpu.memory_space<vmem>>, vector<1x32xf32>
    %11 = vector.broadcast %10 : vector<1x32xf32> to vector<6x32xf32>
    %12 = arith.addf %9, %11 : vector<6x32xf32>
    %c0_11 = arith.constant 0 : index
    %c0_12 = arith.constant 0 : index
    %13 = vector.load %arg6[%c0_11, %c0_12] : memref<6x32xf32, #tpu.memory_space<vmem>>, vector<6x32xf32>
    tpu.vector_store %arg6[%c0_11, %c0_12], %12 {strides = array<i32>} : memref<6x32xf32, #tpu.memory_space<vmem>>, vector<6x32xf32>,
    return
  }
  func.func @transform_0(%arg0: i32) -> (i32, i32) {
    %c0_i32 = arith.constant 0 : i32
    %c0_i32_0 = arith.constant 0 : i32
    %c0_i32_1 = arith.constant 0 : i32
    return %c0_i32, %c0_i32_0 : i32, i32
  }
  func.func @transform_1(%arg0: i32) -> (i32, i32) {
    %c0_i32 = arith.constant 0 : i32
    %c0_i32_0 = arith.constant 0 : i32
    %c0_i32_1 = arith.constant 0 : i32
    return %c0_i32, %c0_i32_0 : i32, i32
  }
  func.func @transform_2(%arg0: i32) -> (i32, i32) {
    %c0_i32 = arith.constant 0 : i32
    %c0_i32_0 = arith.constant 0 : i32
    %c0_i32_1 = arith.constant 0 : i32
    return %c0_i32, %c0_i32_0 : i32, i32
  }
  func.func @transform_3(%arg0: i32) -> (i32, i32) {
    %c0_i32 = arith.constant 0 : i32
    %c0_i32_0 = arith.constant 0 : i32
    %c0_i32_1 = arith.constant 0 : i32
    return %c0_i32, %c0_i32_0 : i32, i32
  }
  func.func @transform_4(%arg0: i32) -> (i32, i32) {
    %c0_i32 = arith.constant 0 : i32
    %c0_i32_0 = arith.constant 0 : i32
    %c0_i32_1 = arith.constant 0 : i32
    return %c0_i32, %c0_i32_0 : i32, i32
  }
  func.func @transform_5(%arg0: i32) -> (i32, i32) {
    %c0_i32 = arith.constant 0 : i32
    %c0_i32_0 = arith.constant 0 : i32
    %c0_i32_1 = arith.constant 0 : i32
    return %c0_i32, %c0_i32_0 : i32, i32
  }
}

module attributes {stable_mosaic.version = 11 : i64} {
  func.func @_gpt2_fused_kernel(%arg0: i32, %arg1: memref<2x14x32xf32, #tpu.memory_space<vmem>>, %arg2: memref<2x1x14xf32, #tpu.memory_space<vmem>>, %arg3: memref<2x1x32xf32, #tpu.memory_space<vmem>>, %arg4: memref<2x1x32xf32, #tpu.memory_space<vmem>>, %arg5: memref<2x32x96xf32, #tpu.memory_space<vmem>>, %arg6: memref<2x1x96xf32, #tpu.memory_space<vmem>>, %arg7: memref<2x32x32xf32, #tpu.memory_space<vmem>>, %arg8: memref<2x1x32xf32, #tpu.memory_space<vmem>>, %arg9: memref<2x1x32xf32, #tpu.memory_space<vmem>>, %arg10: memref<2x1x32xf32, #tpu.memory_space<vmem>>, %arg11: memref<2x32x128xf32, #tpu.memory_space<vmem>>, %arg12: memref<2x1x128xf32, #tpu.memory_space<vmem>>, %arg13: memref<2x128x32xf32, #tpu.memory_space<vmem>>, %arg14: memref<2x1x32xf32, #tpu.memory_space<vmem>>, %arg15: memref<1x32xf32, #tpu.memory_space<vmem>>, %arg16: memref<1x32xf32, #tpu.memory_space<vmem>>, %arg17: memref<32x128xf32, #tpu.memory_space<vmem>>, %arg18: memref<2x14x128xf32, #tpu.memory_space<vmem>>, %arg19: memref<14x96xf32, #tpu.memory_space<vmem>>, %arg20: memref<14x32xf32, #tpu.memory_space<vmem>>) attributes {dimension_semantics = [#tpu.dimension_semantics<parallel>], iteration_bounds = array<i64: 2>, scalar_prefetch = 0 : i64, scratch_operands = 2 : i64, tpu.core_type = #tpu.core_type<tc>, window_params = [{transform_indices = @transform_0, window_bounds = array<i64: 2, 14, 32>}, {transform_indices = @transform_1, window_bounds = array<i64: 2, 1, 14>}, {pipeline_mode = #tpu.pipeline_mode<synchronous>, transform_indices = @transform_2, window_bounds = array<i64: 2, 1, 32>}, {pipeline_mode = #tpu.pipeline_mode<synchronous>, transform_indices = @transform_3, window_bounds = array<i64: 2, 1, 32>}, {pipeline_mode = #tpu.pipeline_mode<synchronous>, transform_indices = @transform_4, window_bounds = array<i64: 2, 32, 96>}, {pipeline_mode = #tpu.pipeline_mode<synchronous>, transform_indices = @transform_5, window_bounds = array<i64: 2, 1, 96>}, {pipeline_mode = #tpu.pipeline_mode<synchronous>, transform_indices = @transform_6, window_bounds = array<i64: 2, 32, 32>}, {pipeline_mode = #tpu.pipeline_mode<synchronous>, transform_indices = @transform_7, window_bounds = array<i64: 2, 1, 32>}, {pipeline_mode = #tpu.pipeline_mode<synchronous>, transform_indices = @transform_8, window_bounds = array<i64: 2, 1, 32>}, {pipeline_mode = #tpu.pipeline_mode<synchronous>, transform_indices = @transform_9, window_bounds = array<i64: 2, 1, 32>}, {pipeline_mode = #tpu.pipeline_mode<synchronous>, transform_indices = @transform_10, window_bounds = array<i64: 2, 32, 128>}, {pipeline_mode = #tpu.pipeline_mode<synchronous>, transform_indices = @transform_11, window_bounds = array<i64: 2, 1, 128>}, {pipeline_mode = #tpu.pipeline_mode<synchronous>, transform_indices = @transform_12, window_bounds = array<i64: 2, 128, 32>}, {pipeline_mode = #tpu.pipeline_mode<synchronous>, transform_indices = @transform_13, window_bounds = array<i64: 2, 1, 32>}, {pipeline_mode = #tpu.pipeline_mode<synchronous>, transform_indices = @transform_14, window_bounds = array<i64: 1, 32>}, {pipeline_mode = #tpu.pipeline_mode<synchronous>, transform_indices = @transform_15, window_bounds = array<i64: 1, 32>}, {pipeline_mode = #tpu.pipeline_mode<synchronous>, transform_indices = @transform_16, window_bounds = array<i64: 32, 128>}, {transform_indices = @transform_17, window_bounds = array<i64: 2, 14, 128>}]} {
    %0 = tpu.iota {dimensions = array<i32: 0>} : vector<14x14xi32>
    %1 = tpu.iota {dimensions = array<i32: 1>} : vector<14x14xi32>
    %2 = arith.cmpi sle, %1, %0 : vector<14x14xi32>
    %c0 = arith.constant 0 : index
    %c0_0 = arith.constant 0 : index
    %c0_1 = arith.constant 0 : index
    %3 = vector.load %arg2[%c0, %c0_0, %c0_1] : memref<2x1x14xf32, #tpu.memory_space<vmem>>, vector<1x1x14xf32>
    %4 = vector.shape_cast %3 : vector<1x1x14xf32> to vector<1x14xf32>
    %cst = arith.constant 5.000000e-01 : f32
    %5 = vector.broadcast %cst : f32 to vector<1x14xf32>
    %6 = arith.cmpf ogt, %4, %5 : vector<1x14xf32>
    %7 = vector.broadcast %6 : vector<1x14xi1> to vector<14x14xi1>
    %8 = arith.andi %2, %7 : vector<14x14xi1>
    %cst_2 = arith.constant 0.000000e+00 : f32
    %cst_3 = arith.constant -1.000000e+09 : f32
    %9 = vector.broadcast %cst_2 : f32 to vector<14x14xf32>
    %10 = vector.broadcast %cst_3 : f32 to vector<14x14xf32>
    %11 = arith.select %8, %9, %10 : vector<14x14xi1>, vector<14x14xf32>
    %c0_4 = arith.constant 0 : index
    %c0_5 = arith.constant 0 : index
    %c0_6 = arith.constant 0 : index
    %12 = vector.load %arg1[%c0_4, %c0_5, %c0_6] : memref<2x14x32xf32, #tpu.memory_space<vmem>>, vector<1x14x32xf32>
    %13 = vector.shape_cast %12 : vector<1x14x32xf32> to vector<14x32xf32>
    %c0_7 = arith.constant 0 : index
    %c0_8 = arith.constant 0 : index
    %c0_9 = arith.constant 0 : index
    %14 = vector.load %arg3[%c0_7, %c0_8, %c0_9] : memref<2x1x32xf32, #tpu.memory_space<vmem>>, vector<1x1x32xf32>
    %15 = vector.shape_cast %14 : vector<1x1x32xf32> to vector<1x32xf32>
    %c0_10 = arith.constant 0 : index
    %c0_11 = arith.constant 0 : index
    %c0_12 = arith.constant 0 : index
    %16 = vector.load %arg4[%c0_10, %c0_11, %c0_12] : memref<2x1x32xf32, #tpu.memory_space<vmem>>, vector<1x1x32xf32>
    %17 = vector.shape_cast %16 : vector<1x1x32xf32> to vector<1x32xf32>
    %cst_13 = arith.constant dense<0.000000e+00> : vector<14xf32>
    %18 = vector.multi_reduction <add>, %13, %cst_13 [1] : vector<14x32xf32> to vector<14xf32>
    %19 = vector.shape_cast %18 : vector<14xf32> to vector<14x1xf32>
    %cst_14 = arith.constant 3.200000e+01 : f32
    %20 = vector.broadcast %cst_14 : f32 to vector<14x1xf32>
    %21 = arith.divf %19, %20 : vector<14x1xf32>
    %22 = vector.broadcast %21 : vector<14x1xf32> to vector<14x32xf32>
    %23 = arith.subf %13, %22 : vector<14x32xf32>
    %24 = arith.mulf %23, %23 : vector<14x32xf32>
    %cst_15 = arith.constant dense<0.000000e+00> : vector<14xf32>
    %25 = vector.multi_reduction <add>, %24, %cst_15 [1] : vector<14x32xf32> to vector<14xf32>
    %26 = vector.shape_cast %25 : vector<14xf32> to vector<14x1xf32>
    %cst_16 = arith.constant 3.200000e+01 : f32
    %27 = vector.broadcast %cst_16 : f32 to vector<14x1xf32>
    %28 = arith.divf %26, %27 : vector<14x1xf32>
    %cst_17 = arith.constant 9.99999974E-6 : f32
    %29 = vector.broadcast %cst_17 : f32 to vector<14x1xf32>
    %30 = arith.addf %28, %29 : vector<14x1xf32>
    %31 = math.rsqrt %30 : vector<14x1xf32>
    %32 = vector.broadcast %31 : vector<14x1xf32> to vector<14x32xf32>
    %33 = arith.mulf %23, %32 : vector<14x32xf32>
    %34 = vector.broadcast %15 : vector<1x32xf32> to vector<14x32xf32>
    %35 = arith.mulf %33, %34 : vector<14x32xf32>
    %36 = vector.broadcast %17 : vector<1x32xf32> to vector<14x32xf32>
    %37 = arith.addf %35, %36 : vector<14x32xf32>
    %c0_18 = arith.constant 0 : index
    %c0_19 = arith.constant 0 : index
    %c0_20 = arith.constant 0 : index
    %38 = vector.load %arg5[%c0_18, %c0_19, %c0_20] : memref<2x32x96xf32, #tpu.memory_space<vmem>>, vector<1x32x96xf32>
    %39 = vector.shape_cast %38 : vector<1x32x96xf32> to vector<32x96xf32>
    %cst_21 = arith.constant dense<0.000000e+00> : vector<14x96xf32>
    %40 = tpu.matmul %37, %39, %cst_21 {dimension_numbers = #tpu.dot_dimension_numbers<[1], [0], [0], [1], [0, 0, 1, 1], [], []>} : vector<14x32xf32>, vector<32x96xf32>, vector<14x96xf32> -> vector<14x96xf32>
    %c0_22 = arith.constant 0 : index
    %c0_23 = arith.constant 0 : index
    %c0_24 = arith.constant 0 : index
    %41 = vector.load %arg6[%c0_22, %c0_23, %c0_24] : memref<2x1x96xf32, #tpu.memory_space<vmem>>, vector<1x1x96xf32>
    %42 = vector.shape_cast %41 : vector<1x1x96xf32> to vector<1x96xf32>
    %43 = vector.broadcast %42 : vector<1x96xf32> to vector<14x96xf32>
    %44 = arith.addf %40, %43 : vector<14x96xf32>
    %c0_25 = arith.constant 0 : index
    %c0_26 = arith.constant 0 : index
    %45 = vector.load %arg19[%c0_25, %c0_26] : memref<14x96xf32, #tpu.memory_space<vmem>>, vector<14x96xf32>
    tpu.vector_store %arg19[%c0_25, %c0_26], %44 {strides = array<i32>} : memref<14x96xf32, #tpu.memory_space<vmem>>, vector<14x96xf32>,
    %c0_27 = arith.constant 0 : index
    %c0_28 = arith.constant 0 : index
    %46 = vector.load %arg19[%c0_27, %c0_28] : memref<14x96xf32, #tpu.memory_space<vmem>>, vector<14x8xf32>
    %c0_29 = arith.constant 0 : index
    %c32 = arith.constant 32 : index
    %47 = vector.load %arg19[%c0_29, %c32] : memref<14x96xf32, #tpu.memory_space<vmem>>, vector<14x8xf32>
    %c0_30 = arith.constant 0 : index
    %c64 = arith.constant 64 : index
    %48 = vector.load %arg19[%c0_30, %c64] : memref<14x96xf32, #tpu.memory_space<vmem>>, vector<14x8xf32>
    %cst_31 = arith.constant dense<0.000000e+00> : vector<14x14xf32>
    %49 = tpu.matmul %46, %47, %cst_31 {dimension_numbers = #tpu.dot_dimension_numbers<[1], [1], [0], [0], [0, 0, 1, 0], [], []>} : vector<14x8xf32>, vector<14x8xf32>, vector<14x14xf32> -> vector<14x14xf32>
    %cst_32 = arith.constant 0.353553385 : f32
    %50 = vector.broadcast %cst_32 : f32 to vector<14x14xf32>
    %51 = arith.mulf %49, %50 : vector<14x14xf32>
    %52 = arith.addf %51, %11 : vector<14x14xf32>
    %cst_33 = arith.constant dense<0xFF800000> : vector<14xf32>
    %53 = vector.multi_reduction <maximumf>, %52, %cst_33 [1] : vector<14x14xf32> to vector<14xf32>
    %54 = vector.shape_cast %53 : vector<14xf32> to vector<14x1xf32>
    %55 = vector.broadcast %54 : vector<14x1xf32> to vector<14x14xf32>
    %56 = arith.subf %52, %55 : vector<14x14xf32>
    %57 = math.exp %56 : vector<14x14xf32>
    %cst_34 = arith.constant dense<0.000000e+00> : vector<14xf32>
    %58 = vector.multi_reduction <add>, %57, %cst_34 [1] : vector<14x14xf32> to vector<14xf32>
    %59 = vector.shape_cast %58 : vector<14xf32> to vector<14x1xf32>
    %60 = tpu.reciprocal %59 {approx = true} : vector<14x1xf32> -> vector<14x1xf32>
    %61 = vector.broadcast %60 : vector<14x1xf32> to vector<14x14xf32>
    %62 = arith.mulf %57, %61 : vector<14x14xf32>
    %cst_35 = arith.constant dense<0.000000e+00> : vector<14x8xf32>
    %63 = tpu.matmul %62, %48, %cst_35 {dimension_numbers = #tpu.dot_dimension_numbers<[1], [0], [0], [1], [0, 0, 1, 1], [], []>} : vector<14x14xf32>, vector<14x8xf32>, vector<14x8xf32> -> vector<14x8xf32>
    %c0_36 = arith.constant 0 : index
    %c0_37 = arith.constant 0 : index
    %64 = vector.load %arg20[%c0_36, %c0_37] : memref<14x32xf32, #tpu.memory_space<vmem>>, vector<14x8xf32>
    tpu.vector_store %arg20[%c0_36, %c0_37], %63 {strides = array<i32>} : memref<14x32xf32, #tpu.memory_space<vmem>>, vector<14x8xf32>,
    %c0_38 = arith.constant 0 : index
    %c8 = arith.constant 8 : index
    %65 = vector.load %arg19[%c0_38, %c8] : memref<14x96xf32, #tpu.memory_space<vmem>>, vector<14x8xf32>
    %c0_39 = arith.constant 0 : index
    %c40 = arith.constant 40 : index
    %66 = vector.load %arg19[%c0_39, %c40] : memref<14x96xf32, #tpu.memory_space<vmem>>, vector<14x8xf32>
    %c0_40 = arith.constant 0 : index
    %c72 = arith.constant 72 : index
    %67 = vector.load %arg19[%c0_40, %c72] : memref<14x96xf32, #tpu.memory_space<vmem>>, vector<14x8xf32>
    %cst_41 = arith.constant dense<0.000000e+00> : vector<14x14xf32>
    %68 = tpu.matmul %65, %66, %cst_41 {dimension_numbers = #tpu.dot_dimension_numbers<[1], [1], [0], [0], [0, 0, 1, 0], [], []>} : vector<14x8xf32>, vector<14x8xf32>, vector<14x14xf32> -> vector<14x14xf32>
    %cst_42 = arith.constant 0.353553385 : f32
    %69 = vector.broadcast %cst_42 : f32 to vector<14x14xf32>
    %70 = arith.mulf %68, %69 : vector<14x14xf32>
    %71 = arith.addf %70, %11 : vector<14x14xf32>
    %cst_43 = arith.constant dense<0xFF800000> : vector<14xf32>
    %72 = vector.multi_reduction <maximumf>, %71, %cst_43 [1] : vector<14x14xf32> to vector<14xf32>
    %73 = vector.shape_cast %72 : vector<14xf32> to vector<14x1xf32>
    %74 = vector.broadcast %73 : vector<14x1xf32> to vector<14x14xf32>
    %75 = arith.subf %71, %74 : vector<14x14xf32>
    %76 = math.exp %75 : vector<14x14xf32>
    %cst_44 = arith.constant dense<0.000000e+00> : vector<14xf32>
    %77 = vector.multi_reduction <add>, %76, %cst_44 [1] : vector<14x14xf32> to vector<14xf32>
    %78 = vector.shape_cast %77 : vector<14xf32> to vector<14x1xf32>
    %79 = tpu.reciprocal %78 {approx = true} : vector<14x1xf32> -> vector<14x1xf32>
    %80 = vector.broadcast %79 : vector<14x1xf32> to vector<14x14xf32>
    %81 = arith.mulf %76, %80 : vector<14x14xf32>
    %cst_45 = arith.constant dense<0.000000e+00> : vector<14x8xf32>
    %82 = tpu.matmul %81, %67, %cst_45 {dimension_numbers = #tpu.dot_dimension_numbers<[1], [0], [0], [1], [0, 0, 1, 1], [], []>} : vector<14x14xf32>, vector<14x8xf32>, vector<14x8xf32> -> vector<14x8xf32>
    %c0_46 = arith.constant 0 : index
    %c8_47 = arith.constant 8 : index
    %83 = vector.load %arg20[%c0_46, %c8_47] : memref<14x32xf32, #tpu.memory_space<vmem>>, vector<14x8xf32>
    tpu.vector_store %arg20[%c0_46, %c8_47], %82 {strides = array<i32>} : memref<14x32xf32, #tpu.memory_space<vmem>>, vector<14x8xf32>,
    %c0_48 = arith.constant 0 : index
    %c16 = arith.constant 16 : index
    %84 = vector.load %arg19[%c0_48, %c16] : memref<14x96xf32, #tpu.memory_space<vmem>>, vector<14x8xf32>
    %c0_49 = arith.constant 0 : index
    %c48 = arith.constant 48 : index
    %85 = vector.load %arg19[%c0_49, %c48] : memref<14x96xf32, #tpu.memory_space<vmem>>, vector<14x8xf32>
    %c0_50 = arith.constant 0 : index
    %c80 = arith.constant 80 : index
    %86 = vector.load %arg19[%c0_50, %c80] : memref<14x96xf32, #tpu.memory_space<vmem>>, vector<14x8xf32>
    %cst_51 = arith.constant dense<0.000000e+00> : vector<14x14xf32>
    %87 = tpu.matmul %84, %85, %cst_51 {dimension_numbers = #tpu.dot_dimension_numbers<[1], [1], [0], [0], [0, 0, 1, 0], [], []>} : vector<14x8xf32>, vector<14x8xf32>, vector<14x14xf32> -> vector<14x14xf32>
    %cst_52 = arith.constant 0.353553385 : f32
    %88 = vector.broadcast %cst_52 : f32 to vector<14x14xf32>
    %89 = arith.mulf %87, %88 : vector<14x14xf32>
    %90 = arith.addf %89, %11 : vector<14x14xf32>
    %cst_53 = arith.constant dense<0xFF800000> : vector<14xf32>
    %91 = vector.multi_reduction <maximumf>, %90, %cst_53 [1] : vector<14x14xf32> to vector<14xf32>
    %92 = vector.shape_cast %91 : vector<14xf32> to vector<14x1xf32>
    %93 = vector.broadcast %92 : vector<14x1xf32> to vector<14x14xf32>
    %94 = arith.subf %90, %93 : vector<14x14xf32>
    %95 = math.exp %94 : vector<14x14xf32>
    %cst_54 = arith.constant dense<0.000000e+00> : vector<14xf32>
    %96 = vector.multi_reduction <add>, %95, %cst_54 [1] : vector<14x14xf32> to vector<14xf32>
    %97 = vector.shape_cast %96 : vector<14xf32> to vector<14x1xf32>
    %98 = tpu.reciprocal %97 {approx = true} : vector<14x1xf32> -> vector<14x1xf32>
    %99 = vector.broadcast %98 : vector<14x1xf32> to vector<14x14xf32>
    %100 = arith.mulf %95, %99 : vector<14x14xf32>
    %cst_55 = arith.constant dense<0.000000e+00> : vector<14x8xf32>
    %101 = tpu.matmul %100, %86, %cst_55 {dimension_numbers = #tpu.dot_dimension_numbers<[1], [0], [0], [1], [0, 0, 1, 1], [], []>} : vector<14x14xf32>, vector<14x8xf32>, vector<14x8xf32> -> vector<14x8xf32>
    %c0_56 = arith.constant 0 : index
    %c16_57 = arith.constant 16 : index
    %102 = vector.load %arg20[%c0_56, %c16_57] : memref<14x32xf32, #tpu.memory_space<vmem>>, vector<14x8xf32>
    tpu.vector_store %arg20[%c0_56, %c16_57], %101 {strides = array<i32>} : memref<14x32xf32, #tpu.memory_space<vmem>>, vector<14x8xf32>,
    %c0_58 = arith.constant 0 : index
    %c24 = arith.constant 24 : index
    %103 = vector.load %arg19[%c0_58, %c24] : memref<14x96xf32, #tpu.memory_space<vmem>>, vector<14x8xf32>
    %c0_59 = arith.constant 0 : index
    %c56 = arith.constant 56 : index
    %104 = vector.load %arg19[%c0_59, %c56] : memref<14x96xf32, #tpu.memory_space<vmem>>, vector<14x8xf32>
    %c0_60 = arith.constant 0 : index
    %c88 = arith.constant 88 : index
    %105 = vector.load %arg19[%c0_60, %c88] : memref<14x96xf32, #tpu.memory_space<vmem>>, vector<14x8xf32>
    %cst_61 = arith.constant dense<0.000000e+00> : vector<14x14xf32>
    %106 = tpu.matmul %103, %104, %cst_61 {dimension_numbers = #tpu.dot_dimension_numbers<[1], [1], [0], [0], [0, 0, 1, 0], [], []>} : vector<14x8xf32>, vector<14x8xf32>, vector<14x14xf32> -> vector<14x14xf32>
    %cst_62 = arith.constant 0.353553385 : f32
    %107 = vector.broadcast %cst_62 : f32 to vector<14x14xf32>
    %108 = arith.mulf %106, %107 : vector<14x14xf32>
    %109 = arith.addf %108, %11 : vector<14x14xf32>
    %cst_63 = arith.constant dense<0xFF800000> : vector<14xf32>
    %110 = vector.multi_reduction <maximumf>, %109, %cst_63 [1] : vector<14x14xf32> to vector<14xf32>
    %111 = vector.shape_cast %110 : vector<14xf32> to vector<14x1xf32>
    %112 = vector.broadcast %111 : vector<14x1xf32> to vector<14x14xf32>
    %113 = arith.subf %109, %112 : vector<14x14xf32>
    %114 = math.exp %113 : vector<14x14xf32>
    %cst_64 = arith.constant dense<0.000000e+00> : vector<14xf32>
    %115 = vector.multi_reduction <add>, %114, %cst_64 [1] : vector<14x14xf32> to vector<14xf32>
    %116 = vector.shape_cast %115 : vector<14xf32> to vector<14x1xf32>
    %117 = tpu.reciprocal %116 {approx = true} : vector<14x1xf32> -> vector<14x1xf32>
    %118 = vector.broadcast %117 : vector<14x1xf32> to vector<14x14xf32>
    %119 = arith.mulf %114, %118 : vector<14x14xf32>
    %cst_65 = arith.constant dense<0.000000e+00> : vector<14x8xf32>
    %120 = tpu.matmul %119, %105, %cst_65 {dimension_numbers = #tpu.dot_dimension_numbers<[1], [0], [0], [1], [0, 0, 1, 1], [], []>} : vector<14x14xf32>, vector<14x8xf32>, vector<14x8xf32> -> vector<14x8xf32>
    %c0_66 = arith.constant 0 : index
    %c24_67 = arith.constant 24 : index
    %121 = vector.load %arg20[%c0_66, %c24_67] : memref<14x32xf32, #tpu.memory_space<vmem>>, vector<14x8xf32>
    tpu.vector_store %arg20[%c0_66, %c24_67], %120 {strides = array<i32>} : memref<14x32xf32, #tpu.memory_space<vmem>>, vector<14x8xf32>,
    %c0_68 = arith.constant 0 : index
    %c0_69 = arith.constant 0 : index
    %122 = vector.load %arg20[%c0_68, %c0_69] : memref<14x32xf32, #tpu.memory_space<vmem>>, vector<14x32xf32>
    %c0_70 = arith.constant 0 : index
    %c0_71 = arith.constant 0 : index
    %c0_72 = arith.constant 0 : index
    %123 = vector.load %arg7[%c0_70, %c0_71, %c0_72] : memref<2x32x32xf32, #tpu.memory_space<vmem>>, vector<1x32x32xf32>
    %124 = vector.shape_cast %123 : vector<1x32x32xf32> to vector<32x32xf32>
    %cst_73 = arith.constant dense<0.000000e+00> : vector<14x32xf32>
    %125 = tpu.matmul %122, %124, %cst_73 {dimension_numbers = #tpu.dot_dimension_numbers<[1], [0], [0], [1], [0, 0, 1, 1], [], []>} : vector<14x32xf32>, vector<32x32xf32>, vector<14x32xf32> -> vector<14x32xf32>
    %126 = arith.addf %13, %125 : vector<14x32xf32>
    %c0_74 = arith.constant 0 : index
    %c0_75 = arith.constant 0 : index
    %c0_76 = arith.constant 0 : index
    %127 = vector.load %arg8[%c0_74, %c0_75, %c0_76] : memref<2x1x32xf32, #tpu.memory_space<vmem>>, vector<1x1x32xf32>
    %128 = vector.shape_cast %127 : vector<1x1x32xf32> to vector<1x32xf32>
    %129 = vector.broadcast %128 : vector<1x32xf32> to vector<14x32xf32>
    %130 = arith.addf %126, %129 : vector<14x32xf32>
    %c0_77 = arith.constant 0 : index
    %c0_78 = arith.constant 0 : index
    %c0_79 = arith.constant 0 : index
    %131 = vector.load %arg9[%c0_77, %c0_78, %c0_79] : memref<2x1x32xf32, #tpu.memory_space<vmem>>, vector<1x1x32xf32>
    %132 = vector.shape_cast %131 : vector<1x1x32xf32> to vector<1x32xf32>
    %c0_80 = arith.constant 0 : index
    %c0_81 = arith.constant 0 : index
    %c0_82 = arith.constant 0 : index
    %133 = vector.load %arg10[%c0_80, %c0_81, %c0_82] : memref<2x1x32xf32, #tpu.memory_space<vmem>>, vector<1x1x32xf32>
    %134 = vector.shape_cast %133 : vector<1x1x32xf32> to vector<1x32xf32>
    %cst_83 = arith.constant dense<0.000000e+00> : vector<14xf32>
    %135 = vector.multi_reduction <add>, %130, %cst_83 [1] : vector<14x32xf32> to vector<14xf32>
    %136 = vector.shape_cast %135 : vector<14xf32> to vector<14x1xf32>
    %cst_84 = arith.constant 3.200000e+01 : f32
    %137 = vector.broadcast %cst_84 : f32 to vector<14x1xf32>
    %138 = arith.divf %136, %137 : vector<14x1xf32>
    %139 = vector.broadcast %138 : vector<14x1xf32> to vector<14x32xf32>
    %140 = arith.subf %130, %139 : vector<14x32xf32>
    %141 = arith.mulf %140, %140 : vector<14x32xf32>
    %cst_85 = arith.constant dense<0.000000e+00> : vector<14xf32>
    %142 = vector.multi_reduction <add>, %141, %cst_85 [1] : vector<14x32xf32> to vector<14xf32>
    %143 = vector.shape_cast %142 : vector<14xf32> to vector<14x1xf32>
    %cst_86 = arith.constant 3.200000e+01 : f32
    %144 = vector.broadcast %cst_86 : f32 to vector<14x1xf32>
    %145 = arith.divf %143, %144 : vector<14x1xf32>
    %cst_87 = arith.constant 9.99999974E-6 : f32
    %146 = vector.broadcast %cst_87 : f32 to vector<14x1xf32>
    %147 = arith.addf %145, %146 : vector<14x1xf32>
    %148 = math.rsqrt %147 : vector<14x1xf32>
    %149 = vector.broadcast %148 : vector<14x1xf32> to vector<14x32xf32>
    %150 = arith.mulf %140, %149 : vector<14x32xf32>
    %151 = vector.broadcast %132 : vector<1x32xf32> to vector<14x32xf32>
    %152 = arith.mulf %150, %151 : vector<14x32xf32>
    %153 = vector.broadcast %134 : vector<1x32xf32> to vector<14x32xf32>
    %154 = arith.addf %152, %153 : vector<14x32xf32>
    %c0_88 = arith.constant 0 : index
    %c0_89 = arith.constant 0 : index
    %c0_90 = arith.constant 0 : index
    %155 = vector.load %arg11[%c0_88, %c0_89, %c0_90] : memref<2x32x128xf32, #tpu.memory_space<vmem>>, vector<1x32x128xf32>
    %156 = vector.shape_cast %155 : vector<1x32x128xf32> to vector<32x128xf32>
    %cst_91 = arith.constant dense<0.000000e+00> : vector<14x128xf32>
    %157 = tpu.matmul %154, %156, %cst_91 {dimension_numbers = #tpu.dot_dimension_numbers<[1], [0], [0], [1], [0, 0, 1, 1], [], []>} : vector<14x32xf32>, vector<32x128xf32>, vector<14x128xf32> -> vector<14x128xf32>
    %c0_92 = arith.constant 0 : index
    %c0_93 = arith.constant 0 : index
    %c0_94 = arith.constant 0 : index
    %158 = vector.load %arg12[%c0_92, %c0_93, %c0_94] : memref<2x1x128xf32, #tpu.memory_space<vmem>>, vector<1x1x128xf32>
    %159 = vector.shape_cast %158 : vector<1x1x128xf32> to vector<1x128xf32>
    %160 = vector.broadcast %159 : vector<1x128xf32> to vector<14x128xf32>
    %161 = arith.addf %157, %160 : vector<14x128xf32>
    %cst_95 = arith.constant 5.000000e-01 : f32
    %162 = vector.broadcast %cst_95 : f32 to vector<14x128xf32>
    %163 = arith.mulf %162, %161 : vector<14x128xf32>
    %cst_96 = arith.constant 4.471500e-02 : f32
    %164 = vector.broadcast %cst_96 : f32 to vector<14x128xf32>
    %165 = arith.mulf %164, %161 : vector<14x128xf32>
    %166 = arith.mulf %165, %161 : vector<14x128xf32>
    %167 = arith.mulf %166, %161 : vector<14x128xf32>
    %168 = arith.addf %161, %167 : vector<14x128xf32>
    %cst_97 = arith.constant 0.797884583 : f32
    %169 = vector.broadcast %cst_97 : f32 to vector<14x128xf32>
    %170 = arith.mulf %169, %168 : vector<14x128xf32>
    %171 = math.tanh %170 : vector<14x128xf32>
    %cst_98 = arith.constant 1.000000e+00 : f32
    %172 = vector.broadcast %cst_98 : f32 to vector<14x128xf32>
    %173 = arith.addf %172, %171 : vector<14x128xf32>
    %174 = arith.mulf %163, %173 : vector<14x128xf32>
    %c0_99 = arith.constant 0 : index
    %c0_100 = arith.constant 0 : index
    %c0_101 = arith.constant 0 : index
    %175 = vector.load %arg13[%c0_99, %c0_100, %c0_101] : memref<2x128x32xf32, #tpu.memory_space<vmem>>, vector<1x128x32xf32>
    %176 = vector.shape_cast %175 : vector<1x128x32xf32> to vector<128x32xf32>
    %cst_102 = arith.constant dense<0.000000e+00> : vector<14x32xf32>
    %177 = tpu.matmul %174, %176, %cst_102 {dimension_numbers = #tpu.dot_dimension_numbers<[1], [0], [0], [1], [0, 0, 1, 1], [], []>} : vector<14x128xf32>, vector<128x32xf32>, vector<14x32xf32> -> vector<14x32xf32>
    %178 = arith.addf %130, %177 : vector<14x32xf32>
    %c0_103 = arith.constant 0 : index
    %c0_104 = arith.constant 0 : index
    %c0_105 = arith.constant 0 : index
    %179 = vector.load %arg14[%c0_103, %c0_104, %c0_105] : memref<2x1x32xf32, #tpu.memory_space<vmem>>, vector<1x1x32xf32>
    %180 = vector.shape_cast %179 : vector<1x1x32xf32> to vector<1x32xf32>
    %181 = vector.broadcast %180 : vector<1x32xf32> to vector<14x32xf32>
    %182 = arith.addf %178, %181 : vector<14x32xf32>
    %c1 = arith.constant 1 : index
    %c0_106 = arith.constant 0 : index
    %c0_107 = arith.constant 0 : index
    %183 = vector.load %arg3[%c1, %c0_106, %c0_107] : memref<2x1x32xf32, #tpu.memory_space<vmem>>, vector<1x1x32xf32>
    %184 = vector.shape_cast %183 : vector<1x1x32xf32> to vector<1x32xf32>
    %c1_108 = arith.constant 1 : index
    %c0_109 = arith.constant 0 : index
    %c0_110 = arith.constant 0 : index
    %185 = vector.load %arg4[%c1_108, %c0_109, %c0_110] : memref<2x1x32xf32, #tpu.memory_space<vmem>>, vector<1x1x32xf32>
    %186 = vector.shape_cast %185 : vector<1x1x32xf32> to vector<1x32xf32>
    %cst_111 = arith.constant dense<0.000000e+00> : vector<14xf32>
    %187 = vector.multi_reduction <add>, %182, %cst_111 [1] : vector<14x32xf32> to vector<14xf32>
    %188 = vector.shape_cast %187 : vector<14xf32> to vector<14x1xf32>
    %cst_112 = arith.constant 3.200000e+01 : f32
    %189 = vector.broadcast %cst_112 : f32 to vector<14x1xf32>
    %190 = arith.divf %188, %189 : vector<14x1xf32>
    %191 = vector.broadcast %190 : vector<14x1xf32> to vector<14x32xf32>
    %192 = arith.subf %182, %191 : vector<14x32xf32>
    %193 = arith.mulf %192, %192 : vector<14x32xf32>
    %cst_113 = arith.constant dense<0.000000e+00> : vector<14xf32>
    %194 = vector.multi_reduction <add>, %193, %cst_113 [1] : vector<14x32xf32> to vector<14xf32>
    %195 = vector.shape_cast %194 : vector<14xf32> to vector<14x1xf32>
    %cst_114 = arith.constant 3.200000e+01 : f32
    %196 = vector.broadcast %cst_114 : f32 to vector<14x1xf32>
    %197 = arith.divf %195, %196 : vector<14x1xf32>
    %cst_115 = arith.constant 9.99999974E-6 : f32
    %198 = vector.broadcast %cst_115 : f32 to vector<14x1xf32>
    %199 = arith.addf %197, %198 : vector<14x1xf32>
    %200 = math.rsqrt %199 : vector<14x1xf32>
    %201 = vector.broadcast %200 : vector<14x1xf32> to vector<14x32xf32>
    %202 = arith.mulf %192, %201 : vector<14x32xf32>
    %203 = vector.broadcast %184 : vector<1x32xf32> to vector<14x32xf32>
    %204 = arith.mulf %202, %203 : vector<14x32xf32>
    %205 = vector.broadcast %186 : vector<1x32xf32> to vector<14x32xf32>
    %206 = arith.addf %204, %205 : vector<14x32xf32>
    %c1_116 = arith.constant 1 : index
    %c0_117 = arith.constant 0 : index
    %c0_118 = arith.constant 0 : index
    %207 = vector.load %arg5[%c1_116, %c0_117, %c0_118] : memref<2x32x96xf32, #tpu.memory_space<vmem>>, vector<1x32x96xf32>
    %208 = vector.shape_cast %207 : vector<1x32x96xf32> to vector<32x96xf32>
    %cst_119 = arith.constant dense<0.000000e+00> : vector<14x96xf32>
    %209 = tpu.matmul %206, %208, %cst_119 {dimension_numbers = #tpu.dot_dimension_numbers<[1], [0], [0], [1], [0, 0, 1, 1], [], []>} : vector<14x32xf32>, vector<32x96xf32>, vector<14x96xf32> -> vector<14x96xf32>
    %c1_120 = arith.constant 1 : index
    %c0_121 = arith.constant 0 : index
    %c0_122 = arith.constant 0 : index
    %210 = vector.load %arg6[%c1_120, %c0_121, %c0_122] : memref<2x1x96xf32, #tpu.memory_space<vmem>>, vector<1x1x96xf32>
    %211 = vector.shape_cast %210 : vector<1x1x96xf32> to vector<1x96xf32>
    %212 = vector.broadcast %211 : vector<1x96xf32> to vector<14x96xf32>
    %213 = arith.addf %209, %212 : vector<14x96xf32>
    %c0_123 = arith.constant 0 : index
    %c0_124 = arith.constant 0 : index
    %214 = vector.load %arg19[%c0_123, %c0_124] : memref<14x96xf32, #tpu.memory_space<vmem>>, vector<14x96xf32>
    tpu.vector_store %arg19[%c0_123, %c0_124], %213 {strides = array<i32>} : memref<14x96xf32, #tpu.memory_space<vmem>>, vector<14x96xf32>,
    %c0_125 = arith.constant 0 : index
    %c0_126 = arith.constant 0 : index
    %215 = vector.load %arg19[%c0_125, %c0_126] : memref<14x96xf32, #tpu.memory_space<vmem>>, vector<14x8xf32>
    %c0_127 = arith.constant 0 : index
    %c32_128 = arith.constant 32 : index
    %216 = vector.load %arg19[%c0_127, %c32_128] : memref<14x96xf32, #tpu.memory_space<vmem>>, vector<14x8xf32>
    %c0_129 = arith.constant 0 : index
    %c64_130 = arith.constant 64 : index
    %217 = vector.load %arg19[%c0_129, %c64_130] : memref<14x96xf32, #tpu.memory_space<vmem>>, vector<14x8xf32>
    %cst_131 = arith.constant dense<0.000000e+00> : vector<14x14xf32>
    %218 = tpu.matmul %215, %216, %cst_131 {dimension_numbers = #tpu.dot_dimension_numbers<[1], [1], [0], [0], [0, 0, 1, 0], [], []>} : vector<14x8xf32>, vector<14x8xf32>, vector<14x14xf32> -> vector<14x14xf32>
    %cst_132 = arith.constant 0.353553385 : f32
    %219 = vector.broadcast %cst_132 : f32 to vector<14x14xf32>
    %220 = arith.mulf %218, %219 : vector<14x14xf32>
    %221 = arith.addf %220, %11 : vector<14x14xf32>
    %cst_133 = arith.constant dense<0xFF800000> : vector<14xf32>
    %222 = vector.multi_reduction <maximumf>, %221, %cst_133 [1] : vector<14x14xf32> to vector<14xf32>
    %223 = vector.shape_cast %222 : vector<14xf32> to vector<14x1xf32>
    %224 = vector.broadcast %223 : vector<14x1xf32> to vector<14x14xf32>
    %225 = arith.subf %221, %224 : vector<14x14xf32>
    %226 = math.exp %225 : vector<14x14xf32>
    %cst_134 = arith.constant dense<0.000000e+00> : vector<14xf32>
    %227 = vector.multi_reduction <add>, %226, %cst_134 [1] : vector<14x14xf32> to vector<14xf32>
    %228 = vector.shape_cast %227 : vector<14xf32> to vector<14x1xf32>
    %229 = tpu.reciprocal %228 {approx = true} : vector<14x1xf32> -> vector<14x1xf32>
    %230 = vector.broadcast %229 : vector<14x1xf32> to vector<14x14xf32>
    %231 = arith.mulf %226, %230 : vector<14x14xf32>
    %cst_135 = arith.constant dense<0.000000e+00> : vector<14x8xf32>
    %232 = tpu.matmul %231, %217, %cst_135 {dimension_numbers = #tpu.dot_dimension_numbers<[1], [0], [0], [1], [0, 0, 1, 1], [], []>} : vector<14x14xf32>, vector<14x8xf32>, vector<14x8xf32> -> vector<14x8xf32>
    %c0_136 = arith.constant 0 : index
    %c0_137 = arith.constant 0 : index
    %233 = vector.load %arg20[%c0_136, %c0_137] : memref<14x32xf32, #tpu.memory_space<vmem>>, vector<14x8xf32>
    tpu.vector_store %arg20[%c0_136, %c0_137], %232 {strides = array<i32>} : memref<14x32xf32, #tpu.memory_space<vmem>>, vector<14x8xf32>,
    %c0_138 = arith.constant 0 : index
    %c8_139 = arith.constant 8 : index
    %234 = vector.load %arg19[%c0_138, %c8_139] : memref<14x96xf32, #tpu.memory_space<vmem>>, vector<14x8xf32>
    %c0_140 = arith.constant 0 : index
    %c40_141 = arith.constant 40 : index
    %235 = vector.load %arg19[%c0_140, %c40_141] : memref<14x96xf32, #tpu.memory_space<vmem>>, vector<14x8xf32>
    %c0_142 = arith.constant 0 : index
    %c72_143 = arith.constant 72 : index
    %236 = vector.load %arg19[%c0_142, %c72_143] : memref<14x96xf32, #tpu.memory_space<vmem>>, vector<14x8xf32>
    %cst_144 = arith.constant dense<0.000000e+00> : vector<14x14xf32>
    %237 = tpu.matmul %234, %235, %cst_144 {dimension_numbers = #tpu.dot_dimension_numbers<[1], [1], [0], [0], [0, 0, 1, 0], [], []>} : vector<14x8xf32>, vector<14x8xf32>, vector<14x14xf32> -> vector<14x14xf32>
    %cst_145 = arith.constant 0.353553385 : f32
    %238 = vector.broadcast %cst_145 : f32 to vector<14x14xf32>
    %239 = arith.mulf %237, %238 : vector<14x14xf32>
    %240 = arith.addf %239, %11 : vector<14x14xf32>
    %cst_146 = arith.constant dense<0xFF800000> : vector<14xf32>
    %241 = vector.multi_reduction <maximumf>, %240, %cst_146 [1] : vector<14x14xf32> to vector<14xf32>
    %242 = vector.shape_cast %241 : vector<14xf32> to vector<14x1xf32>
    %243 = vector.broadcast %242 : vector<14x1xf32> to vector<14x14xf32>
    %244 = arith.subf %240, %243 : vector<14x14xf32>
    %245 = math.exp %244 : vector<14x14xf32>
    %cst_147 = arith.constant dense<0.000000e+00> : vector<14xf32>
    %246 = vector.multi_reduction <add>, %245, %cst_147 [1] : vector<14x14xf32> to vector<14xf32>
    %247 = vector.shape_cast %246 : vector<14xf32> to vector<14x1xf32>
    %248 = tpu.reciprocal %247 {approx = true} : vector<14x1xf32> -> vector<14x1xf32>
    %249 = vector.broadcast %248 : vector<14x1xf32> to vector<14x14xf32>
    %250 = arith.mulf %245, %249 : vector<14x14xf32>
    %cst_148 = arith.constant dense<0.000000e+00> : vector<14x8xf32>
    %251 = tpu.matmul %250, %236, %cst_148 {dimension_numbers = #tpu.dot_dimension_numbers<[1], [0], [0], [1], [0, 0, 1, 1], [], []>} : vector<14x14xf32>, vector<14x8xf32>, vector<14x8xf32> -> vector<14x8xf32>
    %c0_149 = arith.constant 0 : index
    %c8_150 = arith.constant 8 : index
    %252 = vector.load %arg20[%c0_149, %c8_150] : memref<14x32xf32, #tpu.memory_space<vmem>>, vector<14x8xf32>
    tpu.vector_store %arg20[%c0_149, %c8_150], %251 {strides = array<i32>} : memref<14x32xf32, #tpu.memory_space<vmem>>, vector<14x8xf32>,
    %c0_151 = arith.constant 0 : index
    %c16_152 = arith.constant 16 : index
    %253 = vector.load %arg19[%c0_151, %c16_152] : memref<14x96xf32, #tpu.memory_space<vmem>>, vector<14x8xf32>
    %c0_153 = arith.constant 0 : index
    %c48_154 = arith.constant 48 : index
    %254 = vector.load %arg19[%c0_153, %c48_154] : memref<14x96xf32, #tpu.memory_space<vmem>>, vector<14x8xf32>
    %c0_155 = arith.constant 0 : index
    %c80_156 = arith.constant 80 : index
    %255 = vector.load %arg19[%c0_155, %c80_156] : memref<14x96xf32, #tpu.memory_space<vmem>>, vector<14x8xf32>
    %cst_157 = arith.constant dense<0.000000e+00> : vector<14x14xf32>
    %256 = tpu.matmul %253, %254, %cst_157 {dimension_numbers = #tpu.dot_dimension_numbers<[1], [1], [0], [0], [0, 0, 1, 0], [], []>} : vector<14x8xf32>, vector<14x8xf32>, vector<14x14xf32> -> vector<14x14xf32>
    %cst_158 = arith.constant 0.353553385 : f32
    %257 = vector.broadcast %cst_158 : f32 to vector<14x14xf32>
    %258 = arith.mulf %256, %257 : vector<14x14xf32>
    %259 = arith.addf %258, %11 : vector<14x14xf32>
    %cst_159 = arith.constant dense<0xFF800000> : vector<14xf32>
    %260 = vector.multi_reduction <maximumf>, %259, %cst_159 [1] : vector<14x14xf32> to vector<14xf32>
    %261 = vector.shape_cast %260 : vector<14xf32> to vector<14x1xf32>
    %262 = vector.broadcast %261 : vector<14x1xf32> to vector<14x14xf32>
    %263 = arith.subf %259, %262 : vector<14x14xf32>
    %264 = math.exp %263 : vector<14x14xf32>
    %cst_160 = arith.constant dense<0.000000e+00> : vector<14xf32>
    %265 = vector.multi_reduction <add>, %264, %cst_160 [1] : vector<14x14xf32> to vector<14xf32>
    %266 = vector.shape_cast %265 : vector<14xf32> to vector<14x1xf32>
    %267 = tpu.reciprocal %266 {approx = true} : vector<14x1xf32> -> vector<14x1xf32>
    %268 = vector.broadcast %267 : vector<14x1xf32> to vector<14x14xf32>
    %269 = arith.mulf %264, %268 : vector<14x14xf32>
    %cst_161 = arith.constant dense<0.000000e+00> : vector<14x8xf32>
    %270 = tpu.matmul %269, %255, %cst_161 {dimension_numbers = #tpu.dot_dimension_numbers<[1], [0], [0], [1], [0, 0, 1, 1], [], []>} : vector<14x14xf32>, vector<14x8xf32>, vector<14x8xf32> -> vector<14x8xf32>
    %c0_162 = arith.constant 0 : index
    %c16_163 = arith.constant 16 : index
    %271 = vector.load %arg20[%c0_162, %c16_163] : memref<14x32xf32, #tpu.memory_space<vmem>>, vector<14x8xf32>
    tpu.vector_store %arg20[%c0_162, %c16_163], %270 {strides = array<i32>} : memref<14x32xf32, #tpu.memory_space<vmem>>, vector<14x8xf32>,
    %c0_164 = arith.constant 0 : index
    %c24_165 = arith.constant 24 : index
    %272 = vector.load %arg19[%c0_164, %c24_165] : memref<14x96xf32, #tpu.memory_space<vmem>>, vector<14x8xf32>
    %c0_166 = arith.constant 0 : index
    %c56_167 = arith.constant 56 : index
    %273 = vector.load %arg19[%c0_166, %c56_167] : memref<14x96xf32, #tpu.memory_space<vmem>>, vector<14x8xf32>
    %c0_168 = arith.constant 0 : index
    %c88_169 = arith.constant 88 : index
    %274 = vector.load %arg19[%c0_168, %c88_169] : memref<14x96xf32, #tpu.memory_space<vmem>>, vector<14x8xf32>
    %cst_170 = arith.constant dense<0.000000e+00> : vector<14x14xf32>
    %275 = tpu.matmul %272, %273, %cst_170 {dimension_numbers = #tpu.dot_dimension_numbers<[1], [1], [0], [0], [0, 0, 1, 0], [], []>} : vector<14x8xf32>, vector<14x8xf32>, vector<14x14xf32> -> vector<14x14xf32>
    %cst_171 = arith.constant 0.353553385 : f32
    %276 = vector.broadcast %cst_171 : f32 to vector<14x14xf32>
    %277 = arith.mulf %275, %276 : vector<14x14xf32>
    %278 = arith.addf %277, %11 : vector<14x14xf32>
    %cst_172 = arith.constant dense<0xFF800000> : vector<14xf32>
    %279 = vector.multi_reduction <maximumf>, %278, %cst_172 [1] : vector<14x14xf32> to vector<14xf32>
    %280 = vector.shape_cast %279 : vector<14xf32> to vector<14x1xf32>
    %281 = vector.broadcast %280 : vector<14x1xf32> to vector<14x14xf32>
    %282 = arith.subf %278, %281 : vector<14x14xf32>
    %283 = math.exp %282 : vector<14x14xf32>
    %cst_173 = arith.constant dense<0.000000e+00> : vector<14xf32>
    %284 = vector.multi_reduction <add>, %283, %cst_173 [1] : vector<14x14xf32> to vector<14xf32>
    %285 = vector.shape_cast %284 : vector<14xf32> to vector<14x1xf32>
    %286 = tpu.reciprocal %285 {approx = true} : vector<14x1xf32> -> vector<14x1xf32>
    %287 = vector.broadcast %286 : vector<14x1xf32> to vector<14x14xf32>
    %288 = arith.mulf %283, %287 : vector<14x14xf32>
    %cst_174 = arith.constant dense<0.000000e+00> : vector<14x8xf32>
    %289 = tpu.matmul %288, %274, %cst_174 {dimension_numbers = #tpu.dot_dimension_numbers<[1], [0], [0], [1], [0, 0, 1, 1], [], []>} : vector<14x14xf32>, vector<14x8xf32>, vector<14x8xf32> -> vector<14x8xf32>
    %c0_175 = arith.constant 0 : index
    %c24_176 = arith.constant 24 : index
    %290 = vector.load %arg20[%c0_175, %c24_176] : memref<14x32xf32, #tpu.memory_space<vmem>>, vector<14x8xf32>
    tpu.vector_store %arg20[%c0_175, %c24_176], %289 {strides = array<i32>} : memref<14x32xf32, #tpu.memory_space<vmem>>, vector<14x8xf32>,
    %c0_177 = arith.constant 0 : index
    %c0_178 = arith.constant 0 : index
    %291 = vector.load %arg20[%c0_177, %c0_178] : memref<14x32xf32, #tpu.memory_space<vmem>>, vector<14x32xf32>
    %c1_179 = arith.constant 1 : index
    %c0_180 = arith.constant 0 : index
    %c0_181 = arith.constant 0 : index
    %292 = vector.load %arg7[%c1_179, %c0_180, %c0_181] : memref<2x32x32xf32, #tpu.memory_space<vmem>>, vector<1x32x32xf32>
    %293 = vector.shape_cast %292 : vector<1x32x32xf32> to vector<32x32xf32>
    %cst_182 = arith.constant dense<0.000000e+00> : vector<14x32xf32>
    %294 = tpu.matmul %291, %293, %cst_182 {dimension_numbers = #tpu.dot_dimension_numbers<[1], [0], [0], [1], [0, 0, 1, 1], [], []>} : vector<14x32xf32>, vector<32x32xf32>, vector<14x32xf32> -> vector<14x32xf32>
    %295 = arith.addf %182, %294 : vector<14x32xf32>
    %c1_183 = arith.constant 1 : index
    %c0_184 = arith.constant 0 : index
    %c0_185 = arith.constant 0 : index
    %296 = vector.load %arg8[%c1_183, %c0_184, %c0_185] : memref<2x1x32xf32, #tpu.memory_space<vmem>>, vector<1x1x32xf32>
    %297 = vector.shape_cast %296 : vector<1x1x32xf32> to vector<1x32xf32>
    %298 = vector.broadcast %297 : vector<1x32xf32> to vector<14x32xf32>
    %299 = arith.addf %295, %298 : vector<14x32xf32>
    %c1_186 = arith.constant 1 : index
    %c0_187 = arith.constant 0 : index
    %c0_188 = arith.constant 0 : index
    %300 = vector.load %arg9[%c1_186, %c0_187, %c0_188] : memref<2x1x32xf32, #tpu.memory_space<vmem>>, vector<1x1x32xf32>
    %301 = vector.shape_cast %300 : vector<1x1x32xf32> to vector<1x32xf32>
    %c1_189 = arith.constant 1 : index
    %c0_190 = arith.constant 0 : index
    %c0_191 = arith.constant 0 : index
    %302 = vector.load %arg10[%c1_189, %c0_190, %c0_191] : memref<2x1x32xf32, #tpu.memory_space<vmem>>, vector<1x1x32xf32>
    %303 = vector.shape_cast %302 : vector<1x1x32xf32> to vector<1x32xf32>
    %cst_192 = arith.constant dense<0.000000e+00> : vector<14xf32>
    %304 = vector.multi_reduction <add>, %299, %cst_192 [1] : vector<14x32xf32> to vector<14xf32>
    %305 = vector.shape_cast %304 : vector<14xf32> to vector<14x1xf32>
    %cst_193 = arith.constant 3.200000e+01 : f32
    %306 = vector.broadcast %cst_193 : f32 to vector<14x1xf32>
    %307 = arith.divf %305, %306 : vector<14x1xf32>
    %308 = vector.broadcast %307 : vector<14x1xf32> to vector<14x32xf32>
    %309 = arith.subf %299, %308 : vector<14x32xf32>
    %310 = arith.mulf %309, %309 : vector<14x32xf32>
    %cst_194 = arith.constant dense<0.000000e+00> : vector<14xf32>
    %311 = vector.multi_reduction <add>, %310, %cst_194 [1] : vector<14x32xf32> to vector<14xf32>
    %312 = vector.shape_cast %311 : vector<14xf32> to vector<14x1xf32>
    %cst_195 = arith.constant 3.200000e+01 : f32
    %313 = vector.broadcast %cst_195 : f32 to vector<14x1xf32>
    %314 = arith.divf %312, %313 : vector<14x1xf32>
    %cst_196 = arith.constant 9.99999974E-6 : f32
    %315 = vector.broadcast %cst_196 : f32 to vector<14x1xf32>
    %316 = arith.addf %314, %315 : vector<14x1xf32>
    %317 = math.rsqrt %316 : vector<14x1xf32>
    %318 = vector.broadcast %317 : vector<14x1xf32> to vector<14x32xf32>
    %319 = arith.mulf %309, %318 : vector<14x32xf32>
    %320 = vector.broadcast %301 : vector<1x32xf32> to vector<14x32xf32>
    %321 = arith.mulf %319, %320 : vector<14x32xf32>
    %322 = vector.broadcast %303 : vector<1x32xf32> to vector<14x32xf32>
    %323 = arith.addf %321, %322 : vector<14x32xf32>
    %c1_197 = arith.constant 1 : index
    %c0_198 = arith.constant 0 : index
    %c0_199 = arith.constant 0 : index
    %324 = vector.load %arg11[%c1_197, %c0_198, %c0_199] : memref<2x32x128xf32, #tpu.memory_space<vmem>>, vector<1x32x128xf32>
    %325 = vector.shape_cast %324 : vector<1x32x128xf32> to vector<32x128xf32>
    %cst_200 = arith.constant dense<0.000000e+00> : vector<14x128xf32>
    %326 = tpu.matmul %323, %325, %cst_200 {dimension_numbers = #tpu.dot_dimension_numbers<[1], [0], [0], [1], [0, 0, 1, 1], [], []>} : vector<14x32xf32>, vector<32x128xf32>, vector<14x128xf32> -> vector<14x128xf32>
    %c1_201 = arith.constant 1 : index
    %c0_202 = arith.constant 0 : index
    %c0_203 = arith.constant 0 : index
    %327 = vector.load %arg12[%c1_201, %c0_202, %c0_203] : memref<2x1x128xf32, #tpu.memory_space<vmem>>, vector<1x1x128xf32>
    %328 = vector.shape_cast %327 : vector<1x1x128xf32> to vector<1x128xf32>
    %329 = vector.broadcast %328 : vector<1x128xf32> to vector<14x128xf32>
    %330 = arith.addf %326, %329 : vector<14x128xf32>
    %cst_204 = arith.constant 5.000000e-01 : f32
    %331 = vector.broadcast %cst_204 : f32 to vector<14x128xf32>
    %332 = arith.mulf %331, %330 : vector<14x128xf32>
    %cst_205 = arith.constant 4.471500e-02 : f32
    %333 = vector.broadcast %cst_205 : f32 to vector<14x128xf32>
    %334 = arith.mulf %333, %330 : vector<14x128xf32>
    %335 = arith.mulf %334, %330 : vector<14x128xf32>
    %336 = arith.mulf %335, %330 : vector<14x128xf32>
    %337 = arith.addf %330, %336 : vector<14x128xf32>
    %cst_206 = arith.constant 0.797884583 : f32
    %338 = vector.broadcast %cst_206 : f32 to vector<14x128xf32>
    %339 = arith.mulf %338, %337 : vector<14x128xf32>
    %340 = math.tanh %339 : vector<14x128xf32>
    %cst_207 = arith.constant 1.000000e+00 : f32
    %341 = vector.broadcast %cst_207 : f32 to vector<14x128xf32>
    %342 = arith.addf %341, %340 : vector<14x128xf32>
    %343 = arith.mulf %332, %342 : vector<14x128xf32>
    %c1_208 = arith.constant 1 : index
    %c0_209 = arith.constant 0 : index
    %c0_210 = arith.constant 0 : index
    %344 = vector.load %arg13[%c1_208, %c0_209, %c0_210] : memref<2x128x32xf32, #tpu.memory_space<vmem>>, vector<1x128x32xf32>
    %345 = vector.shape_cast %344 : vector<1x128x32xf32> to vector<128x32xf32>
    %cst_211 = arith.constant dense<0.000000e+00> : vector<14x32xf32>
    %346 = tpu.matmul %343, %345, %cst_211 {dimension_numbers = #tpu.dot_dimension_numbers<[1], [0], [0], [1], [0, 0, 1, 1], [], []>} : vector<14x128xf32>, vector<128x32xf32>, vector<14x32xf32> -> vector<14x32xf32>
    %347 = arith.addf %299, %346 : vector<14x32xf32>
    %c1_212 = arith.constant 1 : index
    %c0_213 = arith.constant 0 : index
    %c0_214 = arith.constant 0 : index
    %348 = vector.load %arg14[%c1_212, %c0_213, %c0_214] : memref<2x1x32xf32, #tpu.memory_space<vmem>>, vector<1x1x32xf32>
    %349 = vector.shape_cast %348 : vector<1x1x32xf32> to vector<1x32xf32>
    %350 = vector.broadcast %349 : vector<1x32xf32> to vector<14x32xf32>
    %351 = arith.addf %347, %350 : vector<14x32xf32>
    %c0_215 = arith.constant 0 : index
    %c0_216 = arith.constant 0 : index
    %352 = vector.load %arg15[%c0_215, %c0_216] : memref<1x32xf32, #tpu.memory_space<vmem>>, vector<1x32xf32>
    %c0_217 = arith.constant 0 : index
    %c0_218 = arith.constant 0 : index
    %353 = vector.load %arg16[%c0_217, %c0_218] : memref<1x32xf32, #tpu.memory_space<vmem>>, vector<1x32xf32>
    %cst_219 = arith.constant dense<0.000000e+00> : vector<14xf32>
    %354 = vector.multi_reduction <add>, %351, %cst_219 [1] : vector<14x32xf32> to vector<14xf32>
    %355 = vector.shape_cast %354 : vector<14xf32> to vector<14x1xf32>
    %cst_220 = arith.constant 3.200000e+01 : f32
    %356 = vector.broadcast %cst_220 : f32 to vector<14x1xf32>
    %357 = arith.divf %355, %356 : vector<14x1xf32>
    %358 = vector.broadcast %357 : vector<14x1xf32> to vector<14x32xf32>
    %359 = arith.subf %351, %358 : vector<14x32xf32>
    %360 = arith.mulf %359, %359 : vector<14x32xf32>
    %cst_221 = arith.constant dense<0.000000e+00> : vector<14xf32>
    %361 = vector.multi_reduction <add>, %360, %cst_221 [1] : vector<14x32xf32> to vector<14xf32>
    %362 = vector.shape_cast %361 : vector<14xf32> to vector<14x1xf32>
    %cst_222 = arith.constant 3.200000e+01 : f32
    %363 = vector.broadcast %cst_222 : f32 to vector<14x1xf32>
    %364 = arith.divf %362, %363 : vector<14x1xf32>
    %cst_223 = arith.constant 9.99999974E-6 : f32
    %365 = vector.broadcast %cst_223 : f32 to vector<14x1xf32>
    %366 = arith.addf %364, %365 : vector<14x1xf32>
    %367 = math.rsqrt %366 : vector<14x1xf32>
    %368 = vector.broadcast %367 : vector<14x1xf32> to vector<14x32xf32>
    %369 = arith.mulf %359, %368 : vector<14x32xf32>
    %370 = vector.broadcast %352 : vector<1x32xf32> to vector<14x32xf32>
    %371 = arith.mulf %369, %370 : vector<14x32xf32>
    %372 = vector.broadcast %353 : vector<1x32xf32> to vector<14x32xf32>
    %373 = arith.addf %371, %372 : vector<14x32xf32>
    %c0_224 = arith.constant 0 : index
    %c0_225 = arith.constant 0 : index
    %374 = vector.load %arg17[%c0_224, %c0_225] : memref<32x128xf32, #tpu.memory_space<vmem>>, vector<32x128xf32>
    %cst_226 = arith.constant dense<0.000000e+00> : vector<14x128xf32>
    %375 = tpu.matmul %373, %374, %cst_226 {dimension_numbers = #tpu.dot_dimension_numbers<[1], [0], [0], [1], [0, 0, 1, 1], [], []>} : vector<14x32xf32>, vector<32x128xf32>, vector<14x128xf32> -> vector<14x128xf32>
    %c0_227 = arith.constant 0 : index
    %c0_228 = arith.constant 0 : index
    %c0_229 = arith.constant 0 : index
    %376 = vector.load %arg18[%c0_227, %c0_228, %c0_229] : memref<2x14x128xf32, #tpu.memory_space<vmem>>, vector<1x14x128xf32>
    %377 = vector.shape_cast %376 : vector<1x14x128xf32> to vector<14x128xf32>
    %378 = vector.shape_cast %375 : vector<14x128xf32> to vector<1x14x128xf32>
    tpu.vector_store %arg18[%c0_227, %c0_228, %c0_229], %378 {strides = array<i32>} : memref<2x14x128xf32, #tpu.memory_space<vmem>>, vector<1x14x128xf32>,
    %c1_230 = arith.constant 1 : index
    %c0_231 = arith.constant 0 : index
    %c0_232 = arith.constant 0 : index
    %379 = vector.load %arg2[%c1_230, %c0_231, %c0_232] : memref<2x1x14xf32, #tpu.memory_space<vmem>>, vector<1x1x14xf32>
    %380 = vector.shape_cast %379 : vector<1x1x14xf32> to vector<1x14xf32>
    %cst_233 = arith.constant 5.000000e-01 : f32
    %381 = vector.broadcast %cst_233 : f32 to vector<1x14xf32>
    %382 = arith.cmpf ogt, %380, %381 : vector<1x14xf32>
    %383 = vector.broadcast %382 : vector<1x14xi1> to vector<14x14xi1>
    %384 = arith.andi %2, %383 : vector<14x14xi1>
    %cst_234 = arith.constant 0.000000e+00 : f32
    %cst_235 = arith.constant -1.000000e+09 : f32
    %385 = vector.broadcast %cst_234 : f32 to vector<14x14xf32>
    %386 = vector.broadcast %cst_235 : f32 to vector<14x14xf32>
    %387 = arith.select %384, %385, %386 : vector<14x14xi1>, vector<14x14xf32>
    %c1_236 = arith.constant 1 : index
    %c0_237 = arith.constant 0 : index
    %c0_238 = arith.constant 0 : index
    %388 = vector.load %arg1[%c1_236, %c0_237, %c0_238] : memref<2x14x32xf32, #tpu.memory_space<vmem>>, vector<1x14x32xf32>
    %389 = vector.shape_cast %388 : vector<1x14x32xf32> to vector<14x32xf32>
    %c0_239 = arith.constant 0 : index
    %c0_240 = arith.constant 0 : index
    %c0_241 = arith.constant 0 : index
    %390 = vector.load %arg3[%c0_239, %c0_240, %c0_241] : memref<2x1x32xf32, #tpu.memory_space<vmem>>, vector<1x1x32xf32>
    %391 = vector.shape_cast %390 : vector<1x1x32xf32> to vector<1x32xf32>
    %c0_242 = arith.constant 0 : index
    %c0_243 = arith.constant 0 : index
    %c0_244 = arith.constant 0 : index
    %392 = vector.load %arg4[%c0_242, %c0_243, %c0_244] : memref<2x1x32xf32, #tpu.memory_space<vmem>>, vector<1x1x32xf32>
    %393 = vector.shape_cast %392 : vector<1x1x32xf32> to vector<1x32xf32>
    %cst_245 = arith.constant dense<0.000000e+00> : vector<14xf32>
    %394 = vector.multi_reduction <add>, %389, %cst_245 [1] : vector<14x32xf32> to vector<14xf32>
    %395 = vector.shape_cast %394 : vector<14xf32> to vector<14x1xf32>
    %cst_246 = arith.constant 3.200000e+01 : f32
    %396 = vector.broadcast %cst_246 : f32 to vector<14x1xf32>
    %397 = arith.divf %395, %396 : vector<14x1xf32>
    %398 = vector.broadcast %397 : vector<14x1xf32> to vector<14x32xf32>
    %399 = arith.subf %389, %398 : vector<14x32xf32>
    %400 = arith.mulf %399, %399 : vector<14x32xf32>
    %cst_247 = arith.constant dense<0.000000e+00> : vector<14xf32>
    %401 = vector.multi_reduction <add>, %400, %cst_247 [1] : vector<14x32xf32> to vector<14xf32>
    %402 = vector.shape_cast %401 : vector<14xf32> to vector<14x1xf32>
    %cst_248 = arith.constant 3.200000e+01 : f32
    %403 = vector.broadcast %cst_248 : f32 to vector<14x1xf32>
    %404 = arith.divf %402, %403 : vector<14x1xf32>
    %cst_249 = arith.constant 9.99999974E-6 : f32
    %405 = vector.broadcast %cst_249 : f32 to vector<14x1xf32>
    %406 = arith.addf %404, %405 : vector<14x1xf32>
    %407 = math.rsqrt %406 : vector<14x1xf32>
    %408 = vector.broadcast %407 : vector<14x1xf32> to vector<14x32xf32>
    %409 = arith.mulf %399, %408 : vector<14x32xf32>
    %410 = vector.broadcast %391 : vector<1x32xf32> to vector<14x32xf32>
    %411 = arith.mulf %409, %410 : vector<14x32xf32>
    %412 = vector.broadcast %393 : vector<1x32xf32> to vector<14x32xf32>
    %413 = arith.addf %411, %412 : vector<14x32xf32>
    %c0_250 = arith.constant 0 : index
    %c0_251 = arith.constant 0 : index
    %c0_252 = arith.constant 0 : index
    %414 = vector.load %arg5[%c0_250, %c0_251, %c0_252] : memref<2x32x96xf32, #tpu.memory_space<vmem>>, vector<1x32x96xf32>
    %415 = vector.shape_cast %414 : vector<1x32x96xf32> to vector<32x96xf32>
    %cst_253 = arith.constant dense<0.000000e+00> : vector<14x96xf32>
    %416 = tpu.matmul %413, %415, %cst_253 {dimension_numbers = #tpu.dot_dimension_numbers<[1], [0], [0], [1], [0, 0, 1, 1], [], []>} : vector<14x32xf32>, vector<32x96xf32>, vector<14x96xf32> -> vector<14x96xf32>
    %c0_254 = arith.constant 0 : index
    %c0_255 = arith.constant 0 : index
    %c0_256 = arith.constant 0 : index
    %417 = vector.load %arg6[%c0_254, %c0_255, %c0_256] : memref<2x1x96xf32, #tpu.memory_space<vmem>>, vector<1x1x96xf32>
    %418 = vector.shape_cast %417 : vector<1x1x96xf32> to vector<1x96xf32>
    %419 = vector.broadcast %418 : vector<1x96xf32> to vector<14x96xf32>
    %420 = arith.addf %416, %419 : vector<14x96xf32>
    %c0_257 = arith.constant 0 : index
    %c0_258 = arith.constant 0 : index
    %421 = vector.load %arg19[%c0_257, %c0_258] : memref<14x96xf32, #tpu.memory_space<vmem>>, vector<14x96xf32>
    tpu.vector_store %arg19[%c0_257, %c0_258], %420 {strides = array<i32>} : memref<14x96xf32, #tpu.memory_space<vmem>>, vector<14x96xf32>,
    %c0_259 = arith.constant 0 : index
    %c0_260 = arith.constant 0 : index
    %422 = vector.load %arg19[%c0_259, %c0_260] : memref<14x96xf32, #tpu.memory_space<vmem>>, vector<14x8xf32>
    %c0_261 = arith.constant 0 : index
    %c32_262 = arith.constant 32 : index
    %423 = vector.load %arg19[%c0_261, %c32_262] : memref<14x96xf32, #tpu.memory_space<vmem>>, vector<14x8xf32>
    %c0_263 = arith.constant 0 : index
    %c64_264 = arith.constant 64 : index
    %424 = vector.load %arg19[%c0_263, %c64_264] : memref<14x96xf32, #tpu.memory_space<vmem>>, vector<14x8xf32>
    %cst_265 = arith.constant dense<0.000000e+00> : vector<14x14xf32>
    %425 = tpu.matmul %422, %423, %cst_265 {dimension_numbers = #tpu.dot_dimension_numbers<[1], [1], [0], [0], [0, 0, 1, 0], [], []>} : vector<14x8xf32>, vector<14x8xf32>, vector<14x14xf32> -> vector<14x14xf32>
    %cst_266 = arith.constant 0.353553385 : f32
    %426 = vector.broadcast %cst_266 : f32 to vector<14x14xf32>
    %427 = arith.mulf %425, %426 : vector<14x14xf32>
    %428 = arith.addf %427, %387 : vector<14x14xf32>
    %cst_267 = arith.constant dense<0xFF800000> : vector<14xf32>
    %429 = vector.multi_reduction <maximumf>, %428, %cst_267 [1] : vector<14x14xf32> to vector<14xf32>
    %430 = vector.shape_cast %429 : vector<14xf32> to vector<14x1xf32>
    %431 = vector.broadcast %430 : vector<14x1xf32> to vector<14x14xf32>
    %432 = arith.subf %428, %431 : vector<14x14xf32>
    %433 = math.exp %432 : vector<14x14xf32>
    %cst_268 = arith.constant dense<0.000000e+00> : vector<14xf32>
    %434 = vector.multi_reduction <add>, %433, %cst_268 [1] : vector<14x14xf32> to vector<14xf32>
    %435 = vector.shape_cast %434 : vector<14xf32> to vector<14x1xf32>
    %436 = tpu.reciprocal %435 {approx = true} : vector<14x1xf32> -> vector<14x1xf32>
    %437 = vector.broadcast %436 : vector<14x1xf32> to vector<14x14xf32>
    %438 = arith.mulf %433, %437 : vector<14x14xf32>
    %cst_269 = arith.constant dense<0.000000e+00> : vector<14x8xf32>
    %439 = tpu.matmul %438, %424, %cst_269 {dimension_numbers = #tpu.dot_dimension_numbers<[1], [0], [0], [1], [0, 0, 1, 1], [], []>} : vector<14x14xf32>, vector<14x8xf32>, vector<14x8xf32> -> vector<14x8xf32>
    %c0_270 = arith.constant 0 : index
    %c0_271 = arith.constant 0 : index
    %440 = vector.load %arg20[%c0_270, %c0_271] : memref<14x32xf32, #tpu.memory_space<vmem>>, vector<14x8xf32>
    tpu.vector_store %arg20[%c0_270, %c0_271], %439 {strides = array<i32>} : memref<14x32xf32, #tpu.memory_space<vmem>>, vector<14x8xf32>,
    %c0_272 = arith.constant 0 : index
    %c8_273 = arith.constant 8 : index
    %441 = vector.load %arg19[%c0_272, %c8_273] : memref<14x96xf32, #tpu.memory_space<vmem>>, vector<14x8xf32>
    %c0_274 = arith.constant 0 : index
    %c40_275 = arith.constant 40 : index
    %442 = vector.load %arg19[%c0_274, %c40_275] : memref<14x96xf32, #tpu.memory_space<vmem>>, vector<14x8xf32>
    %c0_276 = arith.constant 0 : index
    %c72_277 = arith.constant 72 : index
    %443 = vector.load %arg19[%c0_276, %c72_277] : memref<14x96xf32, #tpu.memory_space<vmem>>, vector<14x8xf32>
    %cst_278 = arith.constant dense<0.000000e+00> : vector<14x14xf32>
    %444 = tpu.matmul %441, %442, %cst_278 {dimension_numbers = #tpu.dot_dimension_numbers<[1], [1], [0], [0], [0, 0, 1, 0], [], []>} : vector<14x8xf32>, vector<14x8xf32>, vector<14x14xf32> -> vector<14x14xf32>
    %cst_279 = arith.constant 0.353553385 : f32
    %445 = vector.broadcast %cst_279 : f32 to vector<14x14xf32>
    %446 = arith.mulf %444, %445 : vector<14x14xf32>
    %447 = arith.addf %446, %387 : vector<14x14xf32>
    %cst_280 = arith.constant dense<0xFF800000> : vector<14xf32>
    %448 = vector.multi_reduction <maximumf>, %447, %cst_280 [1] : vector<14x14xf32> to vector<14xf32>
    %449 = vector.shape_cast %448 : vector<14xf32> to vector<14x1xf32>
    %450 = vector.broadcast %449 : vector<14x1xf32> to vector<14x14xf32>
    %451 = arith.subf %447, %450 : vector<14x14xf32>
    %452 = math.exp %451 : vector<14x14xf32>
    %cst_281 = arith.constant dense<0.000000e+00> : vector<14xf32>
    %453 = vector.multi_reduction <add>, %452, %cst_281 [1] : vector<14x14xf32> to vector<14xf32>
    %454 = vector.shape_cast %453 : vector<14xf32> to vector<14x1xf32>
    %455 = tpu.reciprocal %454 {approx = true} : vector<14x1xf32> -> vector<14x1xf32>
    %456 = vector.broadcast %455 : vector<14x1xf32> to vector<14x14xf32>
    %457 = arith.mulf %452, %456 : vector<14x14xf32>
    %cst_282 = arith.constant dense<0.000000e+00> : vector<14x8xf32>
    %458 = tpu.matmul %457, %443, %cst_282 {dimension_numbers = #tpu.dot_dimension_numbers<[1], [0], [0], [1], [0, 0, 1, 1], [], []>} : vector<14x14xf32>, vector<14x8xf32>, vector<14x8xf32> -> vector<14x8xf32>
    %c0_283 = arith.constant 0 : index
    %c8_284 = arith.constant 8 : index
    %459 = vector.load %arg20[%c0_283, %c8_284] : memref<14x32xf32, #tpu.memory_space<vmem>>, vector<14x8xf32>
    tpu.vector_store %arg20[%c0_283, %c8_284], %458 {strides = array<i32>} : memref<14x32xf32, #tpu.memory_space<vmem>>, vector<14x8xf32>,
    %c0_285 = arith.constant 0 : index
    %c16_286 = arith.constant 16 : index
    %460 = vector.load %arg19[%c0_285, %c16_286] : memref<14x96xf32, #tpu.memory_space<vmem>>, vector<14x8xf32>
    %c0_287 = arith.constant 0 : index
    %c48_288 = arith.constant 48 : index
    %461 = vector.load %arg19[%c0_287, %c48_288] : memref<14x96xf32, #tpu.memory_space<vmem>>, vector<14x8xf32>
    %c0_289 = arith.constant 0 : index
    %c80_290 = arith.constant 80 : index
    %462 = vector.load %arg19[%c0_289, %c80_290] : memref<14x96xf32, #tpu.memory_space<vmem>>, vector<14x8xf32>
    %cst_291 = arith.constant dense<0.000000e+00> : vector<14x14xf32>
    %463 = tpu.matmul %460, %461, %cst_291 {dimension_numbers = #tpu.dot_dimension_numbers<[1], [1], [0], [0], [0, 0, 1, 0], [], []>} : vector<14x8xf32>, vector<14x8xf32>, vector<14x14xf32> -> vector<14x14xf32>
    %cst_292 = arith.constant 0.353553385 : f32
    %464 = vector.broadcast %cst_292 : f32 to vector<14x14xf32>
    %465 = arith.mulf %463, %464 : vector<14x14xf32>
    %466 = arith.addf %465, %387 : vector<14x14xf32>
    %cst_293 = arith.constant dense<0xFF800000> : vector<14xf32>
    %467 = vector.multi_reduction <maximumf>, %466, %cst_293 [1] : vector<14x14xf32> to vector<14xf32>
    %468 = vector.shape_cast %467 : vector<14xf32> to vector<14x1xf32>
    %469 = vector.broadcast %468 : vector<14x1xf32> to vector<14x14xf32>
    %470 = arith.subf %466, %469 : vector<14x14xf32>
    %471 = math.exp %470 : vector<14x14xf32>
    %cst_294 = arith.constant dense<0.000000e+00> : vector<14xf32>
    %472 = vector.multi_reduction <add>, %471, %cst_294 [1] : vector<14x14xf32> to vector<14xf32>
    %473 = vector.shape_cast %472 : vector<14xf32> to vector<14x1xf32>
    %474 = tpu.reciprocal %473 {approx = true} : vector<14x1xf32> -> vector<14x1xf32>
    %475 = vector.broadcast %474 : vector<14x1xf32> to vector<14x14xf32>
    %476 = arith.mulf %471, %475 : vector<14x14xf32>
    %cst_295 = arith.constant dense<0.000000e+00> : vector<14x8xf32>
    %477 = tpu.matmul %476, %462, %cst_295 {dimension_numbers = #tpu.dot_dimension_numbers<[1], [0], [0], [1], [0, 0, 1, 1], [], []>} : vector<14x14xf32>, vector<14x8xf32>, vector<14x8xf32> -> vector<14x8xf32>
    %c0_296 = arith.constant 0 : index
    %c16_297 = arith.constant 16 : index
    %478 = vector.load %arg20[%c0_296, %c16_297] : memref<14x32xf32, #tpu.memory_space<vmem>>, vector<14x8xf32>
    tpu.vector_store %arg20[%c0_296, %c16_297], %477 {strides = array<i32>} : memref<14x32xf32, #tpu.memory_space<vmem>>, vector<14x8xf32>,
    %c0_298 = arith.constant 0 : index
    %c24_299 = arith.constant 24 : index
    %479 = vector.load %arg19[%c0_298, %c24_299] : memref<14x96xf32, #tpu.memory_space<vmem>>, vector<14x8xf32>
    %c0_300 = arith.constant 0 : index
    %c56_301 = arith.constant 56 : index
    %480 = vector.load %arg19[%c0_300, %c56_301] : memref<14x96xf32, #tpu.memory_space<vmem>>, vector<14x8xf32>
    %c0_302 = arith.constant 0 : index
    %c88_303 = arith.constant 88 : index
    %481 = vector.load %arg19[%c0_302, %c88_303] : memref<14x96xf32, #tpu.memory_space<vmem>>, vector<14x8xf32>
    %cst_304 = arith.constant dense<0.000000e+00> : vector<14x14xf32>
    %482 = tpu.matmul %479, %480, %cst_304 {dimension_numbers = #tpu.dot_dimension_numbers<[1], [1], [0], [0], [0, 0, 1, 0], [], []>} : vector<14x8xf32>, vector<14x8xf32>, vector<14x14xf32> -> vector<14x14xf32>
    %cst_305 = arith.constant 0.353553385 : f32
    %483 = vector.broadcast %cst_305 : f32 to vector<14x14xf32>
    %484 = arith.mulf %482, %483 : vector<14x14xf32>
    %485 = arith.addf %484, %387 : vector<14x14xf32>
    %cst_306 = arith.constant dense<0xFF800000> : vector<14xf32>
    %486 = vector.multi_reduction <maximumf>, %485, %cst_306 [1] : vector<14x14xf32> to vector<14xf32>
    %487 = vector.shape_cast %486 : vector<14xf32> to vector<14x1xf32>
    %488 = vector.broadcast %487 : vector<14x1xf32> to vector<14x14xf32>
    %489 = arith.subf %485, %488 : vector<14x14xf32>
    %490 = math.exp %489 : vector<14x14xf32>
    %cst_307 = arith.constant dense<0.000000e+00> : vector<14xf32>
    %491 = vector.multi_reduction <add>, %490, %cst_307 [1] : vector<14x14xf32> to vector<14xf32>
    %492 = vector.shape_cast %491 : vector<14xf32> to vector<14x1xf32>
    %493 = tpu.reciprocal %492 {approx = true} : vector<14x1xf32> -> vector<14x1xf32>
    %494 = vector.broadcast %493 : vector<14x1xf32> to vector<14x14xf32>
    %495 = arith.mulf %490, %494 : vector<14x14xf32>
    %cst_308 = arith.constant dense<0.000000e+00> : vector<14x8xf32>
    %496 = tpu.matmul %495, %481, %cst_308 {dimension_numbers = #tpu.dot_dimension_numbers<[1], [0], [0], [1], [0, 0, 1, 1], [], []>} : vector<14x14xf32>, vector<14x8xf32>, vector<14x8xf32> -> vector<14x8xf32>
    %c0_309 = arith.constant 0 : index
    %c24_310 = arith.constant 24 : index
    %497 = vector.load %arg20[%c0_309, %c24_310] : memref<14x32xf32, #tpu.memory_space<vmem>>, vector<14x8xf32>
    tpu.vector_store %arg20[%c0_309, %c24_310], %496 {strides = array<i32>} : memref<14x32xf32, #tpu.memory_space<vmem>>, vector<14x8xf32>,
    %c0_311 = arith.constant 0 : index
    %c0_312 = arith.constant 0 : index
    %498 = vector.load %arg20[%c0_311, %c0_312] : memref<14x32xf32, #tpu.memory_space<vmem>>, vector<14x32xf32>
    %c0_313 = arith.constant 0 : index
    %c0_314 = arith.constant 0 : index
    %c0_315 = arith.constant 0 : index
    %499 = vector.load %arg7[%c0_313, %c0_314, %c0_315] : memref<2x32x32xf32, #tpu.memory_space<vmem>>, vector<1x32x32xf32>
    %500 = vector.shape_cast %499 : vector<1x32x32xf32> to vector<32x32xf32>
    %cst_316 = arith.constant dense<0.000000e+00> : vector<14x32xf32>
    %501 = tpu.matmul %498, %500, %cst_316 {dimension_numbers = #tpu.dot_dimension_numbers<[1], [0], [0], [1], [0, 0, 1, 1], [], []>} : vector<14x32xf32>, vector<32x32xf32>, vector<14x32xf32> -> vector<14x32xf32>
    %502 = arith.addf %389, %501 : vector<14x32xf32>
    %c0_317 = arith.constant 0 : index
    %c0_318 = arith.constant 0 : index
    %c0_319 = arith.constant 0 : index
    %503 = vector.load %arg8[%c0_317, %c0_318, %c0_319] : memref<2x1x32xf32, #tpu.memory_space<vmem>>, vector<1x1x32xf32>
    %504 = vector.shape_cast %503 : vector<1x1x32xf32> to vector<1x32xf32>
    %505 = vector.broadcast %504 : vector<1x32xf32> to vector<14x32xf32>
    %506 = arith.addf %502, %505 : vector<14x32xf32>
    %c0_320 = arith.constant 0 : index
    %c0_321 = arith.constant 0 : index
    %c0_322 = arith.constant 0 : index
    %507 = vector.load %arg9[%c0_320, %c0_321, %c0_322] : memref<2x1x32xf32, #tpu.memory_space<vmem>>, vector<1x1x32xf32>
    %508 = vector.shape_cast %507 : vector<1x1x32xf32> to vector<1x32xf32>
    %c0_323 = arith.constant 0 : index
    %c0_324 = arith.constant 0 : index
    %c0_325 = arith.constant 0 : index
    %509 = vector.load %arg10[%c0_323, %c0_324, %c0_325] : memref<2x1x32xf32, #tpu.memory_space<vmem>>, vector<1x1x32xf32>
    %510 = vector.shape_cast %509 : vector<1x1x32xf32> to vector<1x32xf32>
    %cst_326 = arith.constant dense<0.000000e+00> : vector<14xf32>
    %511 = vector.multi_reduction <add>, %506, %cst_326 [1] : vector<14x32xf32> to vector<14xf32>
    %512 = vector.shape_cast %511 : vector<14xf32> to vector<14x1xf32>
    %cst_327 = arith.constant 3.200000e+01 : f32
    %513 = vector.broadcast %cst_327 : f32 to vector<14x1xf32>
    %514 = arith.divf %512, %513 : vector<14x1xf32>
    %515 = vector.broadcast %514 : vector<14x1xf32> to vector<14x32xf32>
    %516 = arith.subf %506, %515 : vector<14x32xf32>
    %517 = arith.mulf %516, %516 : vector<14x32xf32>
    %cst_328 = arith.constant dense<0.000000e+00> : vector<14xf32>
    %518 = vector.multi_reduction <add>, %517, %cst_328 [1] : vector<14x32xf32> to vector<14xf32>
    %519 = vector.shape_cast %518 : vector<14xf32> to vector<14x1xf32>
    %cst_329 = arith.constant 3.200000e+01 : f32
    %520 = vector.broadcast %cst_329 : f32 to vector<14x1xf32>
    %521 = arith.divf %519, %520 : vector<14x1xf32>
    %cst_330 = arith.constant 9.99999974E-6 : f32
    %522 = vector.broadcast %cst_330 : f32 to vector<14x1xf32>
    %523 = arith.addf %521, %522 : vector<14x1xf32>
    %524 = math.rsqrt %523 : vector<14x1xf32>
    %525 = vector.broadcast %524 : vector<14x1xf32> to vector<14x32xf32>
    %526 = arith.mulf %516, %525 : vector<14x32xf32>
    %527 = vector.broadcast %508 : vector<1x32xf32> to vector<14x32xf32>
    %528 = arith.mulf %526, %527 : vector<14x32xf32>
    %529 = vector.broadcast %510 : vector<1x32xf32> to vector<14x32xf32>
    %530 = arith.addf %528, %529 : vector<14x32xf32>
    %c0_331 = arith.constant 0 : index
    %c0_332 = arith.constant 0 : index
    %c0_333 = arith.constant 0 : index
    %531 = vector.load %arg11[%c0_331, %c0_332, %c0_333] : memref<2x32x128xf32, #tpu.memory_space<vmem>>, vector<1x32x128xf32>
    %532 = vector.shape_cast %531 : vector<1x32x128xf32> to vector<32x128xf32>
    %cst_334 = arith.constant dense<0.000000e+00> : vector<14x128xf32>
    %533 = tpu.matmul %530, %532, %cst_334 {dimension_numbers = #tpu.dot_dimension_numbers<[1], [0], [0], [1], [0, 0, 1, 1], [], []>} : vector<14x32xf32>, vector<32x128xf32>, vector<14x128xf32> -> vector<14x128xf32>
    %c0_335 = arith.constant 0 : index
    %c0_336 = arith.constant 0 : index
    %c0_337 = arith.constant 0 : index
    %534 = vector.load %arg12[%c0_335, %c0_336, %c0_337] : memref<2x1x128xf32, #tpu.memory_space<vmem>>, vector<1x1x128xf32>
    %535 = vector.shape_cast %534 : vector<1x1x128xf32> to vector<1x128xf32>
    %536 = vector.broadcast %535 : vector<1x128xf32> to vector<14x128xf32>
    %537 = arith.addf %533, %536 : vector<14x128xf32>
    %cst_338 = arith.constant 5.000000e-01 : f32
    %538 = vector.broadcast %cst_338 : f32 to vector<14x128xf32>
    %539 = arith.mulf %538, %537 : vector<14x128xf32>
    %cst_339 = arith.constant 4.471500e-02 : f32
    %540 = vector.broadcast %cst_339 : f32 to vector<14x128xf32>
    %541 = arith.mulf %540, %537 : vector<14x128xf32>
    %542 = arith.mulf %541, %537 : vector<14x128xf32>
    %543 = arith.mulf %542, %537 : vector<14x128xf32>
    %544 = arith.addf %537, %543 : vector<14x128xf32>
    %cst_340 = arith.constant 0.797884583 : f32
    %545 = vector.broadcast %cst_340 : f32 to vector<14x128xf32>
    %546 = arith.mulf %545, %544 : vector<14x128xf32>
    %547 = math.tanh %546 : vector<14x128xf32>
    %cst_341 = arith.constant 1.000000e+00 : f32
    %548 = vector.broadcast %cst_341 : f32 to vector<14x128xf32>
    %549 = arith.addf %548, %547 : vector<14x128xf32>
    %550 = arith.mulf %539, %549 : vector<14x128xf32>
    %c0_342 = arith.constant 0 : index
    %c0_343 = arith.constant 0 : index
    %c0_344 = arith.constant 0 : index
    %551 = vector.load %arg13[%c0_342, %c0_343, %c0_344] : memref<2x128x32xf32, #tpu.memory_space<vmem>>, vector<1x128x32xf32>
    %552 = vector.shape_cast %551 : vector<1x128x32xf32> to vector<128x32xf32>
    %cst_345 = arith.constant dense<0.000000e+00> : vector<14x32xf32>
    %553 = tpu.matmul %550, %552, %cst_345 {dimension_numbers = #tpu.dot_dimension_numbers<[1], [0], [0], [1], [0, 0, 1, 1], [], []>} : vector<14x128xf32>, vector<128x32xf32>, vector<14x32xf32> -> vector<14x32xf32>
    %554 = arith.addf %506, %553 : vector<14x32xf32>
    %c0_346 = arith.constant 0 : index
    %c0_347 = arith.constant 0 : index
    %c0_348 = arith.constant 0 : index
    %555 = vector.load %arg14[%c0_346, %c0_347, %c0_348] : memref<2x1x32xf32, #tpu.memory_space<vmem>>, vector<1x1x32xf32>
    %556 = vector.shape_cast %555 : vector<1x1x32xf32> to vector<1x32xf32>
    %557 = vector.broadcast %556 : vector<1x32xf32> to vector<14x32xf32>
    %558 = arith.addf %554, %557 : vector<14x32xf32>
    %c1_349 = arith.constant 1 : index
    %c0_350 = arith.constant 0 : index
    %c0_351 = arith.constant 0 : index
    %559 = vector.load %arg3[%c1_349, %c0_350, %c0_351] : memref<2x1x32xf32, #tpu.memory_space<vmem>>, vector<1x1x32xf32>
    %560 = vector.shape_cast %559 : vector<1x1x32xf32> to vector<1x32xf32>
    %c1_352 = arith.constant 1 : index
    %c0_353 = arith.constant 0 : index
    %c0_354 = arith.constant 0 : index
    %561 = vector.load %arg4[%c1_352, %c0_353, %c0_354] : memref<2x1x32xf32, #tpu.memory_space<vmem>>, vector<1x1x32xf32>
    %562 = vector.shape_cast %561 : vector<1x1x32xf32> to vector<1x32xf32>
    %cst_355 = arith.constant dense<0.000000e+00> : vector<14xf32>
    %563 = vector.multi_reduction <add>, %558, %cst_355 [1] : vector<14x32xf32> to vector<14xf32>
    %564 = vector.shape_cast %563 : vector<14xf32> to vector<14x1xf32>
    %cst_356 = arith.constant 3.200000e+01 : f32
    %565 = vector.broadcast %cst_356 : f32 to vector<14x1xf32>
    %566 = arith.divf %564, %565 : vector<14x1xf32>
    %567 = vector.broadcast %566 : vector<14x1xf32> to vector<14x32xf32>
    %568 = arith.subf %558, %567 : vector<14x32xf32>
    %569 = arith.mulf %568, %568 : vector<14x32xf32>
    %cst_357 = arith.constant dense<0.000000e+00> : vector<14xf32>
    %570 = vector.multi_reduction <add>, %569, %cst_357 [1] : vector<14x32xf32> to vector<14xf32>
    %571 = vector.shape_cast %570 : vector<14xf32> to vector<14x1xf32>
    %cst_358 = arith.constant 3.200000e+01 : f32
    %572 = vector.broadcast %cst_358 : f32 to vector<14x1xf32>
    %573 = arith.divf %571, %572 : vector<14x1xf32>
    %cst_359 = arith.constant 9.99999974E-6 : f32
    %574 = vector.broadcast %cst_359 : f32 to vector<14x1xf32>
    %575 = arith.addf %573, %574 : vector<14x1xf32>
    %576 = math.rsqrt %575 : vector<14x1xf32>
    %577 = vector.broadcast %576 : vector<14x1xf32> to vector<14x32xf32>
    %578 = arith.mulf %568, %577 : vector<14x32xf32>
    %579 = vector.broadcast %560 : vector<1x32xf32> to vector<14x32xf32>
    %580 = arith.mulf %578, %579 : vector<14x32xf32>
    %581 = vector.broadcast %562 : vector<1x32xf32> to vector<14x32xf32>
    %582 = arith.addf %580, %581 : vector<14x32xf32>
    %c1_360 = arith.constant 1 : index
    %c0_361 = arith.constant 0 : index
    %c0_362 = arith.constant 0 : index
    %583 = vector.load %arg5[%c1_360, %c0_361, %c0_362] : memref<2x32x96xf32, #tpu.memory_space<vmem>>, vector<1x32x96xf32>
    %584 = vector.shape_cast %583 : vector<1x32x96xf32> to vector<32x96xf32>
    %cst_363 = arith.constant dense<0.000000e+00> : vector<14x96xf32>
    %585 = tpu.matmul %582, %584, %cst_363 {dimension_numbers = #tpu.dot_dimension_numbers<[1], [0], [0], [1], [0, 0, 1, 1], [], []>} : vector<14x32xf32>, vector<32x96xf32>, vector<14x96xf32> -> vector<14x96xf32>
    %c1_364 = arith.constant 1 : index
    %c0_365 = arith.constant 0 : index
    %c0_366 = arith.constant 0 : index
    %586 = vector.load %arg6[%c1_364, %c0_365, %c0_366] : memref<2x1x96xf32, #tpu.memory_space<vmem>>, vector<1x1x96xf32>
    %587 = vector.shape_cast %586 : vector<1x1x96xf32> to vector<1x96xf32>
    %588 = vector.broadcast %587 : vector<1x96xf32> to vector<14x96xf32>
    %589 = arith.addf %585, %588 : vector<14x96xf32>
    %c0_367 = arith.constant 0 : index
    %c0_368 = arith.constant 0 : index
    %590 = vector.load %arg19[%c0_367, %c0_368] : memref<14x96xf32, #tpu.memory_space<vmem>>, vector<14x96xf32>
    tpu.vector_store %arg19[%c0_367, %c0_368], %589 {strides = array<i32>} : memref<14x96xf32, #tpu.memory_space<vmem>>, vector<14x96xf32>,
    %c0_369 = arith.constant 0 : index
    %c0_370 = arith.constant 0 : index
    %591 = vector.load %arg19[%c0_369, %c0_370] : memref<14x96xf32, #tpu.memory_space<vmem>>, vector<14x8xf32>
    %c0_371 = arith.constant 0 : index
    %c32_372 = arith.constant 32 : index
    %592 = vector.load %arg19[%c0_371, %c32_372] : memref<14x96xf32, #tpu.memory_space<vmem>>, vector<14x8xf32>
    %c0_373 = arith.constant 0 : index
    %c64_374 = arith.constant 64 : index
    %593 = vector.load %arg19[%c0_373, %c64_374] : memref<14x96xf32, #tpu.memory_space<vmem>>, vector<14x8xf32>
    %cst_375 = arith.constant dense<0.000000e+00> : vector<14x14xf32>
    %594 = tpu.matmul %591, %592, %cst_375 {dimension_numbers = #tpu.dot_dimension_numbers<[1], [1], [0], [0], [0, 0, 1, 0], [], []>} : vector<14x8xf32>, vector<14x8xf32>, vector<14x14xf32> -> vector<14x14xf32>
    %cst_376 = arith.constant 0.353553385 : f32
    %595 = vector.broadcast %cst_376 : f32 to vector<14x14xf32>
    %596 = arith.mulf %594, %595 : vector<14x14xf32>
    %597 = arith.addf %596, %387 : vector<14x14xf32>
    %cst_377 = arith.constant dense<0xFF800000> : vector<14xf32>
    %598 = vector.multi_reduction <maximumf>, %597, %cst_377 [1] : vector<14x14xf32> to vector<14xf32>
    %599 = vector.shape_cast %598 : vector<14xf32> to vector<14x1xf32>
    %600 = vector.broadcast %599 : vector<14x1xf32> to vector<14x14xf32>
    %601 = arith.subf %597, %600 : vector<14x14xf32>
    %602 = math.exp %601 : vector<14x14xf32>
    %cst_378 = arith.constant dense<0.000000e+00> : vector<14xf32>
    %603 = vector.multi_reduction <add>, %602, %cst_378 [1] : vector<14x14xf32> to vector<14xf32>
    %604 = vector.shape_cast %603 : vector<14xf32> to vector<14x1xf32>
    %605 = tpu.reciprocal %604 {approx = true} : vector<14x1xf32> -> vector<14x1xf32>
    %606 = vector.broadcast %605 : vector<14x1xf32> to vector<14x14xf32>
    %607 = arith.mulf %602, %606 : vector<14x14xf32>
    %cst_379 = arith.constant dense<0.000000e+00> : vector<14x8xf32>
    %608 = tpu.matmul %607, %593, %cst_379 {dimension_numbers = #tpu.dot_dimension_numbers<[1], [0], [0], [1], [0, 0, 1, 1], [], []>} : vector<14x14xf32>, vector<14x8xf32>, vector<14x8xf32> -> vector<14x8xf32>
    %c0_380 = arith.constant 0 : index
    %c0_381 = arith.constant 0 : index
    %609 = vector.load %arg20[%c0_380, %c0_381] : memref<14x32xf32, #tpu.memory_space<vmem>>, vector<14x8xf32>
    tpu.vector_store %arg20[%c0_380, %c0_381], %608 {strides = array<i32>} : memref<14x32xf32, #tpu.memory_space<vmem>>, vector<14x8xf32>,
    %c0_382 = arith.constant 0 : index
    %c8_383 = arith.constant 8 : index
    %610 = vector.load %arg19[%c0_382, %c8_383] : memref<14x96xf32, #tpu.memory_space<vmem>>, vector<14x8xf32>
    %c0_384 = arith.constant 0 : index
    %c40_385 = arith.constant 40 : index
    %611 = vector.load %arg19[%c0_384, %c40_385] : memref<14x96xf32, #tpu.memory_space<vmem>>, vector<14x8xf32>
    %c0_386 = arith.constant 0 : index
    %c72_387 = arith.constant 72 : index
    %612 = vector.load %arg19[%c0_386, %c72_387] : memref<14x96xf32, #tpu.memory_space<vmem>>, vector<14x8xf32>
    %cst_388 = arith.constant dense<0.000000e+00> : vector<14x14xf32>
    %613 = tpu.matmul %610, %611, %cst_388 {dimension_numbers = #tpu.dot_dimension_numbers<[1], [1], [0], [0], [0, 0, 1, 0], [], []>} : vector<14x8xf32>, vector<14x8xf32>, vector<14x14xf32> -> vector<14x14xf32>
    %cst_389 = arith.constant 0.353553385 : f32
    %614 = vector.broadcast %cst_389 : f32 to vector<14x14xf32>
    %615 = arith.mulf %613, %614 : vector<14x14xf32>
    %616 = arith.addf %615, %387 : vector<14x14xf32>
    %cst_390 = arith.constant dense<0xFF800000> : vector<14xf32>
    %617 = vector.multi_reduction <maximumf>, %616, %cst_390 [1] : vector<14x14xf32> to vector<14xf32>
    %618 = vector.shape_cast %617 : vector<14xf32> to vector<14x1xf32>
    %619 = vector.broadcast %618 : vector<14x1xf32> to vector<14x14xf32>
    %620 = arith.subf %616, %619 : vector<14x14xf32>
    %621 = math.exp %620 : vector<14x14xf32>
    %cst_391 = arith.constant dense<0.000000e+00> : vector<14xf32>
    %622 = vector.multi_reduction <add>, %621, %cst_391 [1] : vector<14x14xf32> to vector<14xf32>
    %623 = vector.shape_cast %622 : vector<14xf32> to vector<14x1xf32>
    %624 = tpu.reciprocal %623 {approx = true} : vector<14x1xf32> -> vector<14x1xf32>
    %625 = vector.broadcast %624 : vector<14x1xf32> to vector<14x14xf32>
    %626 = arith.mulf %621, %625 : vector<14x14xf32>
    %cst_392 = arith.constant dense<0.000000e+00> : vector<14x8xf32>
    %627 = tpu.matmul %626, %612, %cst_392 {dimension_numbers = #tpu.dot_dimension_numbers<[1], [0], [0], [1], [0, 0, 1, 1], [], []>} : vector<14x14xf32>, vector<14x8xf32>, vector<14x8xf32> -> vector<14x8xf32>
    %c0_393 = arith.constant 0 : index
    %c8_394 = arith.constant 8 : index
    %628 = vector.load %arg20[%c0_393, %c8_394] : memref<14x32xf32, #tpu.memory_space<vmem>>, vector<14x8xf32>
    tpu.vector_store %arg20[%c0_393, %c8_394], %627 {strides = array<i32>} : memref<14x32xf32, #tpu.memory_space<vmem>>, vector<14x8xf32>,
    %c0_395 = arith.constant 0 : index
    %c16_396 = arith.constant 16 : index
    %629 = vector.load %arg19[%c0_395, %c16_396] : memref<14x96xf32, #tpu.memory_space<vmem>>, vector<14x8xf32>
    %c0_397 = arith.constant 0 : index
    %c48_398 = arith.constant 48 : index
    %630 = vector.load %arg19[%c0_397, %c48_398] : memref<14x96xf32, #tpu.memory_space<vmem>>, vector<14x8xf32>
    %c0_399 = arith.constant 0 : index
    %c80_400 = arith.constant 80 : index
    %631 = vector.load %arg19[%c0_399, %c80_400] : memref<14x96xf32, #tpu.memory_space<vmem>>, vector<14x8xf32>
    %cst_401 = arith.constant dense<0.000000e+00> : vector<14x14xf32>
    %632 = tpu.matmul %629, %630, %cst_401 {dimension_numbers = #tpu.dot_dimension_numbers<[1], [1], [0], [0], [0, 0, 1, 0], [], []>} : vector<14x8xf32>, vector<14x8xf32>, vector<14x14xf32> -> vector<14x14xf32>
    %cst_402 = arith.constant 0.353553385 : f32
    %633 = vector.broadcast %cst_402 : f32 to vector<14x14xf32>
    %634 = arith.mulf %632, %633 : vector<14x14xf32>
    %635 = arith.addf %634, %387 : vector<14x14xf32>
    %cst_403 = arith.constant dense<0xFF800000> : vector<14xf32>
    %636 = vector.multi_reduction <maximumf>, %635, %cst_403 [1] : vector<14x14xf32> to vector<14xf32>
    %637 = vector.shape_cast %636 : vector<14xf32> to vector<14x1xf32>
    %638 = vector.broadcast %637 : vector<14x1xf32> to vector<14x14xf32>
    %639 = arith.subf %635, %638 : vector<14x14xf32>
    %640 = math.exp %639 : vector<14x14xf32>
    %cst_404 = arith.constant dense<0.000000e+00> : vector<14xf32>
    %641 = vector.multi_reduction <add>, %640, %cst_404 [1] : vector<14x14xf32> to vector<14xf32>
    %642 = vector.shape_cast %641 : vector<14xf32> to vector<14x1xf32>
    %643 = tpu.reciprocal %642 {approx = true} : vector<14x1xf32> -> vector<14x1xf32>
    %644 = vector.broadcast %643 : vector<14x1xf32> to vector<14x14xf32>
    %645 = arith.mulf %640, %644 : vector<14x14xf32>
    %cst_405 = arith.constant dense<0.000000e+00> : vector<14x8xf32>
    %646 = tpu.matmul %645, %631, %cst_405 {dimension_numbers = #tpu.dot_dimension_numbers<[1], [0], [0], [1], [0, 0, 1, 1], [], []>} : vector<14x14xf32>, vector<14x8xf32>, vector<14x8xf32> -> vector<14x8xf32>
    %c0_406 = arith.constant 0 : index
    %c16_407 = arith.constant 16 : index
    %647 = vector.load %arg20[%c0_406, %c16_407] : memref<14x32xf32, #tpu.memory_space<vmem>>, vector<14x8xf32>
    tpu.vector_store %arg20[%c0_406, %c16_407], %646 {strides = array<i32>} : memref<14x32xf32, #tpu.memory_space<vmem>>, vector<14x8xf32>,
    %c0_408 = arith.constant 0 : index
    %c24_409 = arith.constant 24 : index
    %648 = vector.load %arg19[%c0_408, %c24_409] : memref<14x96xf32, #tpu.memory_space<vmem>>, vector<14x8xf32>
    %c0_410 = arith.constant 0 : index
    %c56_411 = arith.constant 56 : index
    %649 = vector.load %arg19[%c0_410, %c56_411] : memref<14x96xf32, #tpu.memory_space<vmem>>, vector<14x8xf32>
    %c0_412 = arith.constant 0 : index
    %c88_413 = arith.constant 88 : index
    %650 = vector.load %arg19[%c0_412, %c88_413] : memref<14x96xf32, #tpu.memory_space<vmem>>, vector<14x8xf32>
    %cst_414 = arith.constant dense<0.000000e+00> : vector<14x14xf32>
    %651 = tpu.matmul %648, %649, %cst_414 {dimension_numbers = #tpu.dot_dimension_numbers<[1], [1], [0], [0], [0, 0, 1, 0], [], []>} : vector<14x8xf32>, vector<14x8xf32>, vector<14x14xf32> -> vector<14x14xf32>
    %cst_415 = arith.constant 0.353553385 : f32
    %652 = vector.broadcast %cst_415 : f32 to vector<14x14xf32>
    %653 = arith.mulf %651, %652 : vector<14x14xf32>
    %654 = arith.addf %653, %387 : vector<14x14xf32>
    %cst_416 = arith.constant dense<0xFF800000> : vector<14xf32>
    %655 = vector.multi_reduction <maximumf>, %654, %cst_416 [1] : vector<14x14xf32> to vector<14xf32>
    %656 = vector.shape_cast %655 : vector<14xf32> to vector<14x1xf32>
    %657 = vector.broadcast %656 : vector<14x1xf32> to vector<14x14xf32>
    %658 = arith.subf %654, %657 : vector<14x14xf32>
    %659 = math.exp %658 : vector<14x14xf32>
    %cst_417 = arith.constant dense<0.000000e+00> : vector<14xf32>
    %660 = vector.multi_reduction <add>, %659, %cst_417 [1] : vector<14x14xf32> to vector<14xf32>
    %661 = vector.shape_cast %660 : vector<14xf32> to vector<14x1xf32>
    %662 = tpu.reciprocal %661 {approx = true} : vector<14x1xf32> -> vector<14x1xf32>
    %663 = vector.broadcast %662 : vector<14x1xf32> to vector<14x14xf32>
    %664 = arith.mulf %659, %663 : vector<14x14xf32>
    %cst_418 = arith.constant dense<0.000000e+00> : vector<14x8xf32>
    %665 = tpu.matmul %664, %650, %cst_418 {dimension_numbers = #tpu.dot_dimension_numbers<[1], [0], [0], [1], [0, 0, 1, 1], [], []>} : vector<14x14xf32>, vector<14x8xf32>, vector<14x8xf32> -> vector<14x8xf32>
    %c0_419 = arith.constant 0 : index
    %c24_420 = arith.constant 24 : index
    %666 = vector.load %arg20[%c0_419, %c24_420] : memref<14x32xf32, #tpu.memory_space<vmem>>, vector<14x8xf32>
    tpu.vector_store %arg20[%c0_419, %c24_420], %665 {strides = array<i32>} : memref<14x32xf32, #tpu.memory_space<vmem>>, vector<14x8xf32>,
    %c0_421 = arith.constant 0 : index
    %c0_422 = arith.constant 0 : index
    %667 = vector.load %arg20[%c0_421, %c0_422] : memref<14x32xf32, #tpu.memory_space<vmem>>, vector<14x32xf32>
    %c1_423 = arith.constant 1 : index
    %c0_424 = arith.constant 0 : index
    %c0_425 = arith.constant 0 : index
    %668 = vector.load %arg7[%c1_423, %c0_424, %c0_425] : memref<2x32x32xf32, #tpu.memory_space<vmem>>, vector<1x32x32xf32>
    %669 = vector.shape_cast %668 : vector<1x32x32xf32> to vector<32x32xf32>
    %cst_426 = arith.constant dense<0.000000e+00> : vector<14x32xf32>
    %670 = tpu.matmul %667, %669, %cst_426 {dimension_numbers = #tpu.dot_dimension_numbers<[1], [0], [0], [1], [0, 0, 1, 1], [], []>} : vector<14x32xf32>, vector<32x32xf32>, vector<14x32xf32> -> vector<14x32xf32>
    %671 = arith.addf %558, %670 : vector<14x32xf32>
    %c1_427 = arith.constant 1 : index
    %c0_428 = arith.constant 0 : index
    %c0_429 = arith.constant 0 : index
    %672 = vector.load %arg8[%c1_427, %c0_428, %c0_429] : memref<2x1x32xf32, #tpu.memory_space<vmem>>, vector<1x1x32xf32>
    %673 = vector.shape_cast %672 : vector<1x1x32xf32> to vector<1x32xf32>
    %674 = vector.broadcast %673 : vector<1x32xf32> to vector<14x32xf32>
    %675 = arith.addf %671, %674 : vector<14x32xf32>
    %c1_430 = arith.constant 1 : index
    %c0_431 = arith.constant 0 : index
    %c0_432 = arith.constant 0 : index
    %676 = vector.load %arg9[%c1_430, %c0_431, %c0_432] : memref<2x1x32xf32, #tpu.memory_space<vmem>>, vector<1x1x32xf32>
    %677 = vector.shape_cast %676 : vector<1x1x32xf32> to vector<1x32xf32>
    %c1_433 = arith.constant 1 : index
    %c0_434 = arith.constant 0 : index
    %c0_435 = arith.constant 0 : index
    %678 = vector.load %arg10[%c1_433, %c0_434, %c0_435] : memref<2x1x32xf32, #tpu.memory_space<vmem>>, vector<1x1x32xf32>
    %679 = vector.shape_cast %678 : vector<1x1x32xf32> to vector<1x32xf32>
    %cst_436 = arith.constant dense<0.000000e+00> : vector<14xf32>
    %680 = vector.multi_reduction <add>, %675, %cst_436 [1] : vector<14x32xf32> to vector<14xf32>
    %681 = vector.shape_cast %680 : vector<14xf32> to vector<14x1xf32>
    %cst_437 = arith.constant 3.200000e+01 : f32
    %682 = vector.broadcast %cst_437 : f32 to vector<14x1xf32>
    %683 = arith.divf %681, %682 : vector<14x1xf32>
    %684 = vector.broadcast %683 : vector<14x1xf32> to vector<14x32xf32>
    %685 = arith.subf %675, %684 : vector<14x32xf32>
    %686 = arith.mulf %685, %685 : vector<14x32xf32>
    %cst_438 = arith.constant dense<0.000000e+00> : vector<14xf32>
    %687 = vector.multi_reduction <add>, %686, %cst_438 [1] : vector<14x32xf32> to vector<14xf32>
    %688 = vector.shape_cast %687 : vector<14xf32> to vector<14x1xf32>
    %cst_439 = arith.constant 3.200000e+01 : f32
    %689 = vector.broadcast %cst_439 : f32 to vector<14x1xf32>
    %690 = arith.divf %688, %689 : vector<14x1xf32>
    %cst_440 = arith.constant 9.99999974E-6 : f32
    %691 = vector.broadcast %cst_440 : f32 to vector<14x1xf32>
    %692 = arith.addf %690, %691 : vector<14x1xf32>
    %693 = math.rsqrt %692 : vector<14x1xf32>
    %694 = vector.broadcast %693 : vector<14x1xf32> to vector<14x32xf32>
    %695 = arith.mulf %685, %694 : vector<14x32xf32>
    %696 = vector.broadcast %677 : vector<1x32xf32> to vector<14x32xf32>
    %697 = arith.mulf %695, %696 : vector<14x32xf32>
    %698 = vector.broadcast %679 : vector<1x32xf32> to vector<14x32xf32>
    %699 = arith.addf %697, %698 : vector<14x32xf32>
    %c1_441 = arith.constant 1 : index
    %c0_442 = arith.constant 0 : index
    %c0_443 = arith.constant 0 : index
    %700 = vector.load %arg11[%c1_441, %c0_442, %c0_443] : memref<2x32x128xf32, #tpu.memory_space<vmem>>, vector<1x32x128xf32>
    %701 = vector.shape_cast %700 : vector<1x32x128xf32> to vector<32x128xf32>
    %cst_444 = arith.constant dense<0.000000e+00> : vector<14x128xf32>
    %702 = tpu.matmul %699, %701, %cst_444 {dimension_numbers = #tpu.dot_dimension_numbers<[1], [0], [0], [1], [0, 0, 1, 1], [], []>} : vector<14x32xf32>, vector<32x128xf32>, vector<14x128xf32> -> vector<14x128xf32>
    %c1_445 = arith.constant 1 : index
    %c0_446 = arith.constant 0 : index
    %c0_447 = arith.constant 0 : index
    %703 = vector.load %arg12[%c1_445, %c0_446, %c0_447] : memref<2x1x128xf32, #tpu.memory_space<vmem>>, vector<1x1x128xf32>
    %704 = vector.shape_cast %703 : vector<1x1x128xf32> to vector<1x128xf32>
    %705 = vector.broadcast %704 : vector<1x128xf32> to vector<14x128xf32>
    %706 = arith.addf %702, %705 : vector<14x128xf32>
    %cst_448 = arith.constant 5.000000e-01 : f32
    %707 = vector.broadcast %cst_448 : f32 to vector<14x128xf32>
    %708 = arith.mulf %707, %706 : vector<14x128xf32>
    %cst_449 = arith.constant 4.471500e-02 : f32
    %709 = vector.broadcast %cst_449 : f32 to vector<14x128xf32>
    %710 = arith.mulf %709, %706 : vector<14x128xf32>
    %711 = arith.mulf %710, %706 : vector<14x128xf32>
    %712 = arith.mulf %711, %706 : vector<14x128xf32>
    %713 = arith.addf %706, %712 : vector<14x128xf32>
    %cst_450 = arith.constant 0.797884583 : f32
    %714 = vector.broadcast %cst_450 : f32 to vector<14x128xf32>
    %715 = arith.mulf %714, %713 : vector<14x128xf32>
    %716 = math.tanh %715 : vector<14x128xf32>
    %cst_451 = arith.constant 1.000000e+00 : f32
    %717 = vector.broadcast %cst_451 : f32 to vector<14x128xf32>
    %718 = arith.addf %717, %716 : vector<14x128xf32>
    %719 = arith.mulf %708, %718 : vector<14x128xf32>
    %c1_452 = arith.constant 1 : index
    %c0_453 = arith.constant 0 : index
    %c0_454 = arith.constant 0 : index
    %720 = vector.load %arg13[%c1_452, %c0_453, %c0_454] : memref<2x128x32xf32, #tpu.memory_space<vmem>>, vector<1x128x32xf32>
    %721 = vector.shape_cast %720 : vector<1x128x32xf32> to vector<128x32xf32>
    %cst_455 = arith.constant dense<0.000000e+00> : vector<14x32xf32>
    %722 = tpu.matmul %719, %721, %cst_455 {dimension_numbers = #tpu.dot_dimension_numbers<[1], [0], [0], [1], [0, 0, 1, 1], [], []>} : vector<14x128xf32>, vector<128x32xf32>, vector<14x32xf32> -> vector<14x32xf32>
    %723 = arith.addf %675, %722 : vector<14x32xf32>
    %c1_456 = arith.constant 1 : index
    %c0_457 = arith.constant 0 : index
    %c0_458 = arith.constant 0 : index
    %724 = vector.load %arg14[%c1_456, %c0_457, %c0_458] : memref<2x1x32xf32, #tpu.memory_space<vmem>>, vector<1x1x32xf32>
    %725 = vector.shape_cast %724 : vector<1x1x32xf32> to vector<1x32xf32>
    %726 = vector.broadcast %725 : vector<1x32xf32> to vector<14x32xf32>
    %727 = arith.addf %723, %726 : vector<14x32xf32>
    %c0_459 = arith.constant 0 : index
    %c0_460 = arith.constant 0 : index
    %728 = vector.load %arg15[%c0_459, %c0_460] : memref<1x32xf32, #tpu.memory_space<vmem>>, vector<1x32xf32>
    %c0_461 = arith.constant 0 : index
    %c0_462 = arith.constant 0 : index
    %729 = vector.load %arg16[%c0_461, %c0_462] : memref<1x32xf32, #tpu.memory_space<vmem>>, vector<1x32xf32>
    %cst_463 = arith.constant dense<0.000000e+00> : vector<14xf32>
    %730 = vector.multi_reduction <add>, %727, %cst_463 [1] : vector<14x32xf32> to vector<14xf32>
    %731 = vector.shape_cast %730 : vector<14xf32> to vector<14x1xf32>
    %cst_464 = arith.constant 3.200000e+01 : f32
    %732 = vector.broadcast %cst_464 : f32 to vector<14x1xf32>
    %733 = arith.divf %731, %732 : vector<14x1xf32>
    %734 = vector.broadcast %733 : vector<14x1xf32> to vector<14x32xf32>
    %735 = arith.subf %727, %734 : vector<14x32xf32>
    %736 = arith.mulf %735, %735 : vector<14x32xf32>
    %cst_465 = arith.constant dense<0.000000e+00> : vector<14xf32>
    %737 = vector.multi_reduction <add>, %736, %cst_465 [1] : vector<14x32xf32> to vector<14xf32>
    %738 = vector.shape_cast %737 : vector<14xf32> to vector<14x1xf32>
    %cst_466 = arith.constant 3.200000e+01 : f32
    %739 = vector.broadcast %cst_466 : f32 to vector<14x1xf32>
    %740 = arith.divf %738, %739 : vector<14x1xf32>
    %cst_467 = arith.constant 9.99999974E-6 : f32
    %741 = vector.broadcast %cst_467 : f32 to vector<14x1xf32>
    %742 = arith.addf %740, %741 : vector<14x1xf32>
    %743 = math.rsqrt %742 : vector<14x1xf32>
    %744 = vector.broadcast %743 : vector<14x1xf32> to vector<14x32xf32>
    %745 = arith.mulf %735, %744 : vector<14x32xf32>
    %746 = vector.broadcast %728 : vector<1x32xf32> to vector<14x32xf32>
    %747 = arith.mulf %745, %746 : vector<14x32xf32>
    %748 = vector.broadcast %729 : vector<1x32xf32> to vector<14x32xf32>
    %749 = arith.addf %747, %748 : vector<14x32xf32>
    %c0_468 = arith.constant 0 : index
    %c0_469 = arith.constant 0 : index
    %750 = vector.load %arg17[%c0_468, %c0_469] : memref<32x128xf32, #tpu.memory_space<vmem>>, vector<32x128xf32>
    %cst_470 = arith.constant dense<0.000000e+00> : vector<14x128xf32>
    %751 = tpu.matmul %749, %750, %cst_470 {dimension_numbers = #tpu.dot_dimension_numbers<[1], [0], [0], [1], [0, 0, 1, 1], [], []>} : vector<14x32xf32>, vector<32x128xf32>, vector<14x128xf32> -> vector<14x128xf32>
    %c1_471 = arith.constant 1 : index
    %c0_472 = arith.constant 0 : index
    %c0_473 = arith.constant 0 : index
    %752 = vector.load %arg18[%c1_471, %c0_472, %c0_473] : memref<2x14x128xf32, #tpu.memory_space<vmem>>, vector<1x14x128xf32>
    %753 = vector.shape_cast %752 : vector<1x14x128xf32> to vector<14x128xf32>
    %754 = vector.shape_cast %751 : vector<14x128xf32> to vector<1x14x128xf32>
    tpu.vector_store %arg18[%c1_471, %c0_472, %c0_473], %754 {strides = array<i32>} : memref<2x14x128xf32, #tpu.memory_space<vmem>>, vector<1x14x128xf32>,
    return
  }
  func.func @transform_0(%arg0: i32) -> (i32, i32, i32) {
    %c0_i32 = arith.constant 0 : i32
    %c0_i32_0 = arith.constant 0 : i32
    %c0_i32_1 = arith.constant 0 : i32
    return %arg0, %c0_i32, %c0_i32_0 : i32, i32, i32
  }
  func.func @transform_1(%arg0: i32) -> (i32, i32, i32) {
    %c0_i32 = arith.constant 0 : i32
    %c0_i32_0 = arith.constant 0 : i32
    %c0_i32_1 = arith.constant 0 : i32
    return %arg0, %c0_i32, %c0_i32_0 : i32, i32, i32
  }
  func.func @transform_2(%arg0: i32) -> (i32, i32, i32) {
    %c0_i32 = arith.constant 0 : i32
    %c0_i32_0 = arith.constant 0 : i32
    %c0_i32_1 = arith.constant 0 : i32
    %c0_i32_2 = arith.constant 0 : i32
    return %c0_i32, %c0_i32_0, %c0_i32_1 : i32, i32, i32
  }
  func.func @transform_3(%arg0: i32) -> (i32, i32, i32) {
    %c0_i32 = arith.constant 0 : i32
    %c0_i32_0 = arith.constant 0 : i32
    %c0_i32_1 = arith.constant 0 : i32
    %c0_i32_2 = arith.constant 0 : i32
    return %c0_i32, %c0_i32_0, %c0_i32_1 : i32, i32, i32
  }
  func.func @transform_4(%arg0: i32) -> (i32, i32, i32) {
    %c0_i32 = arith.constant 0 : i32
    %c0_i32_0 = arith.constant 0 : i32
    %c0_i32_1 = arith.constant 0 : i32
    %c0_i32_2 = arith.constant 0 : i32
    return %c0_i32, %c0_i32_0, %c0_i32_1 : i32, i32, i32
  }
  func.func @transform_5(%arg0: i32) -> (i32, i32, i32) {
    %c0_i32 = arith.constant 0 : i32
    %c0_i32_0 = arith.constant 0 : i32
    %c0_i32_1 = arith.constant 0 : i32
    %c0_i32_2 = arith.constant 0 : i32
    return %c0_i32, %c0_i32_0, %c0_i32_1 : i32, i32, i32
  }
  func.func @transform_6(%arg0: i32) -> (i32, i32, i32) {
    %c0_i32 = arith.constant 0 : i32
    %c0_i32_0 = arith.constant 0 : i32
    %c0_i32_1 = arith.constant 0 : i32
    %c0_i32_2 = arith.constant 0 : i32
    return %c0_i32, %c0_i32_0, %c0_i32_1 : i32, i32, i32
  }
  func.func @transform_7(%arg0: i32) -> (i32, i32, i32) {
    %c0_i32 = arith.constant 0 : i32
    %c0_i32_0 = arith.constant 0 : i32
    %c0_i32_1 = arith.constant 0 : i32
    %c0_i32_2 = arith.constant 0 : i32
    return %c0_i32, %c0_i32_0, %c0_i32_1 : i32, i32, i32
  }
  func.func @transform_8(%arg0: i32) -> (i32, i32, i32) {
    %c0_i32 = arith.constant 0 : i32
    %c0_i32_0 = arith.constant 0 : i32
    %c0_i32_1 = arith.constant 0 : i32
    %c0_i32_2 = arith.constant 0 : i32
    return %c0_i32, %c0_i32_0, %c0_i32_1 : i32, i32, i32
  }
  func.func @transform_9(%arg0: i32) -> (i32, i32, i32) {
    %c0_i32 = arith.constant 0 : i32
    %c0_i32_0 = arith.constant 0 : i32
    %c0_i32_1 = arith.constant 0 : i32
    %c0_i32_2 = arith.constant 0 : i32
    return %c0_i32, %c0_i32_0, %c0_i32_1 : i32, i32, i32
  }
  func.func @transform_10(%arg0: i32) -> (i32, i32, i32) {
    %c0_i32 = arith.constant 0 : i32
    %c0_i32_0 = arith.constant 0 : i32
    %c0_i32_1 = arith.constant 0 : i32
    %c0_i32_2 = arith.constant 0 : i32
    return %c0_i32, %c0_i32_0, %c0_i32_1 : i32, i32, i32
  }
  func.func @transform_11(%arg0: i32) -> (i32, i32, i32) {
    %c0_i32 = arith.constant 0 : i32
    %c0_i32_0 = arith.constant 0 : i32
    %c0_i32_1 = arith.constant 0 : i32
    %c0_i32_2 = arith.constant 0 : i32
    return %c0_i32, %c0_i32_0, %c0_i32_1 : i32, i32, i32
  }
  func.func @transform_12(%arg0: i32) -> (i32, i32, i32) {
    %c0_i32 = arith.constant 0 : i32
    %c0_i32_0 = arith.constant 0 : i32
    %c0_i32_1 = arith.constant 0 : i32
    %c0_i32_2 = arith.constant 0 : i32
    return %c0_i32, %c0_i32_0, %c0_i32_1 : i32, i32, i32
  }
  func.func @transform_13(%arg0: i32) -> (i32, i32, i32) {
    %c0_i32 = arith.constant 0 : i32
    %c0_i32_0 = arith.constant 0 : i32
    %c0_i32_1 = arith.constant 0 : i32
    %c0_i32_2 = arith.constant 0 : i32
    return %c0_i32, %c0_i32_0, %c0_i32_1 : i32, i32, i32
  }
  func.func @transform_14(%arg0: i32) -> (i32, i32) {
    %c0_i32 = arith.constant 0 : i32
    %c0_i32_0 = arith.constant 0 : i32
    %c0_i32_1 = arith.constant 0 : i32
    return %c0_i32, %c0_i32_0 : i32, i32
  }
  func.func @transform_15(%arg0: i32) -> (i32, i32) {
    %c0_i32 = arith.constant 0 : i32
    %c0_i32_0 = arith.constant 0 : i32
    %c0_i32_1 = arith.constant 0 : i32
    return %c0_i32, %c0_i32_0 : i32, i32
  }
  func.func @transform_16(%arg0: i32) -> (i32, i32) {
    %c0_i32 = arith.constant 0 : i32
    %c0_i32_0 = arith.constant 0 : i32
    %c0_i32_1 = arith.constant 0 : i32
    return %c0_i32, %c0_i32_0 : i32, i32
  }
  func.func @transform_17(%arg0: i32) -> (i32, i32, i32) {
    %c0_i32 = arith.constant 0 : i32
    %c0_i32_0 = arith.constant 0 : i32
    %c0_i32_1 = arith.constant 0 : i32
    return %arg0, %c0_i32, %c0_i32_0 : i32, i32, i32
  }
}

module attributes {stable_mosaic.version = 11 : i64} {
  func.func @_kl_kernel(%arg0: i32, %arg1: memref<8x128xf32, #tpu.memory_space<vmem>>, %arg2: memref<8x128xf32, #tpu.memory_space<vmem>>, %arg3: memref<8x1xf32, #tpu.memory_space<vmem>>, %arg4: memref<1x1xf32, #tpu.memory_space<vmem>>, %arg5: memref<1x1xf32, #tpu.memory_space<vmem>>, %arg6: memref<1x1xf32, #tpu.memory_space<vmem>>) attributes {dimension_semantics = [#tpu.dimension_semantics<arbitrary>], iteration_bounds = array<i64: 2>, scalar_prefetch = 0 : i64, scratch_operands = 2 : i64, tpu.core_type = #tpu.core_type<tc>, window_params = [{transform_indices = @transform_0, window_bounds = array<i64: 8, 128>}, {transform_indices = @transform_1, window_bounds = array<i64: 8, 128>}, {transform_indices = @transform_2, window_bounds = array<i64: 8, 1>}, {pipeline_mode = #tpu.pipeline_mode<synchronous>, transform_indices = @transform_3, window_bounds = array<i64: 1, 1>}]} {
    %c0_i32 = arith.constant 0 : i32
    %0 = arith.cmpi eq, %arg0, %c0_i32 : i32
    %1 = arith.extui %0 : i1 to i32
    %c0_i32_0 = arith.constant 0 : i32
    %2 = arith.cmpi ne, %1, %c0_i32_0 : i32
    scf.if %2 {
      %cst_19 = arith.constant 0.000000e+00 : f32
      %42 = vector.broadcast %cst_19 : f32 to vector<1x1xf32>
      %c0_20 = arith.constant 0 : index
      %c0_21 = arith.constant 0 : index
      %43 = vector.load %arg5[%c0_20, %c0_21] : memref<1x1xf32, #tpu.memory_space<vmem>>, vector<1x1xf32>
      tpu.vector_store %arg5[%c0_20, %c0_21], %42 {strides = array<i32>} : memref<1x1xf32, #tpu.memory_space<vmem>>, vector<1x1xf32>,
      %cst_22 = arith.constant 0.000000e+00 : f32
      %44 = vector.broadcast %cst_22 : f32 to vector<1x1xf32>
      %c0_23 = arith.constant 0 : index
      %c0_24 = arith.constant 0 : index
      %45 = vector.load %arg6[%c0_23, %c0_24] : memref<1x1xf32, #tpu.memory_space<vmem>>, vector<1x1xf32>
      tpu.vector_store %arg6[%c0_23, %c0_24], %44 {strides = array<i32>} : memref<1x1xf32, #tpu.memory_space<vmem>>, vector<1x1xf32>,
    } else {
    }
    %c0 = arith.constant 0 : index
    %c0_1 = arith.constant 0 : index
    %3 = vector.load %arg1[%c0, %c0_1] : memref<8x128xf32, #tpu.memory_space<vmem>>, vector<8x128xf32>
    %c0_2 = arith.constant 0 : index
    %c0_3 = arith.constant 0 : index
    %4 = vector.load %arg2[%c0_2, %c0_3] : memref<8x128xf32, #tpu.memory_space<vmem>>, vector<8x128xf32>
    %c0_4 = arith.constant 0 : index
    %c0_5 = arith.constant 0 : index
    %5 = vector.load %arg3[%c0_4, %c0_5] : memref<8x1xf32, #tpu.memory_space<vmem>>, vector<8x1xf32>
    %cst = arith.constant dense<0xFF800000> : vector<8xf32>
    %6 = vector.multi_reduction <maximumf>, %3, %cst [1] : vector<8x128xf32> to vector<8xf32>
    %7 = vector.shape_cast %6 : vector<8xf32> to vector<8x1xf32>
    %8 = vector.broadcast %7 : vector<8x1xf32> to vector<8x128xf32>
    %9 = arith.subf %3, %8 : vector<8x128xf32>
    %10 = math.exp %9 : vector<8x128xf32>
    %cst_6 = arith.constant dense<0.000000e+00> : vector<8xf32>
    %11 = vector.multi_reduction <add>, %10, %cst_6 [1] : vector<8x128xf32> to vector<8xf32>
    %12 = vector.shape_cast %11 : vector<8xf32> to vector<8x1xf32>
    %13 = math.log %12 : vector<8x1xf32>
    %14 = vector.broadcast %13 : vector<8x1xf32> to vector<8x128xf32>
    %15 = arith.subf %9, %14 : vector<8x128xf32>
    %cst_7 = arith.constant 9.99999971E-10 : f32
    %16 = vector.broadcast %cst_7 : f32 to vector<8x128xf32>
    %17 = arith.addf %4, %16 : vector<8x128xf32>
    %18 = math.log %17 : vector<8x128xf32>
    %19 = arith.subf %18, %15 : vector<8x128xf32>
    %20 = arith.mulf %4, %19 : vector<8x128xf32>
    %c0_8 = arith.constant 0 : index
    %c0_9 = arith.constant 0 : index
    %21 = vector.load %arg5[%c0_8, %c0_9] : memref<1x1xf32, #tpu.memory_space<vmem>>, vector<1x1xf32>
    %22 = vector.broadcast %5 : vector<8x1xf32> to vector<8x128xf32>
    %23 = arith.mulf %20, %22 : vector<8x128xf32>
    %24 = vector.shape_cast %23 : vector<8x128xf32> to vector<1x8x128xf32>
    %cst_10 = arith.constant dense<0.000000e+00> : vector<1xf32>
    %25 = vector.multi_reduction <add>, %24, %cst_10 [1, 2] : vector<1x8x128xf32> to vector<1xf32>
    %26 = vector.shape_cast %25 : vector<1xf32> to vector<1x1x1xf32>
    %27 = vector.extract %26[0, 0, 0] : f32 from vector<1x1x1xf32>
    %28 = vector.broadcast %27 : f32 to vector<1x1xf32>
    %29 = arith.addf %21, %28 : vector<1x1xf32>
    %c0_11 = arith.constant 0 : index
    %c0_12 = arith.constant 0 : index
    %30 = vector.load %arg5[%c0_11, %c0_12] : memref<1x1xf32, #tpu.memory_space<vmem>>, vector<1x1xf32>
    tpu.vector_store %arg5[%c0_11, %c0_12], %29 {strides = array<i32>} : memref<1x1xf32, #tpu.memory_space<vmem>>, vector<1x1xf32>,
    %c0_13 = arith.constant 0 : index
    %c0_14 = arith.constant 0 : index
    %31 = vector.load %arg6[%c0_13, %c0_14] : memref<1x1xf32, #tpu.memory_space<vmem>>, vector<1x1xf32>
    %32 = vector.shape_cast %5 : vector<8x1xf32> to vector<1x8x1xf32>
    %cst_15 = arith.constant dense<0.000000e+00> : vector<1xf32>
    %33 = vector.multi_reduction <add>, %32, %cst_15 [1, 2] : vector<1x8x1xf32> to vector<1xf32>
    %34 = vector.shape_cast %33 : vector<1xf32> to vector<1x1x1xf32>
    %35 = vector.extract %34[0, 0, 0] : f32 from vector<1x1x1xf32>
    %36 = vector.broadcast %35 : f32 to vector<1x1xf32>
    %37 = arith.addf %31, %36 : vector<1x1xf32>
    %c0_16 = arith.constant 0 : index
    %c0_17 = arith.constant 0 : index
    %38 = vector.load %arg6[%c0_16, %c0_17] : memref<1x1xf32, #tpu.memory_space<vmem>>, vector<1x1xf32>
    tpu.vector_store %arg6[%c0_16, %c0_17], %37 {strides = array<i32>} : memref<1x1xf32, #tpu.memory_space<vmem>>, vector<1x1xf32>,
    %c1_i32 = arith.constant 1 : i32
    %39 = arith.cmpi eq, %arg0, %c1_i32 : i32
    %40 = arith.extui %39 : i1 to i32
    %c0_i32_18 = arith.constant 0 : i32
    %41 = arith.cmpi ne, %40, %c0_i32_18 : i32
    scf.if %41 {
      %c0_19 = arith.constant 0 : index
      %c0_20 = arith.constant 0 : index
      %42 = vector.load %arg5[%c0_19, %c0_20] : memref<1x1xf32, #tpu.memory_space<vmem>>, vector<1x1xf32>
      %c0_21 = arith.constant 0 : index
      %c0_22 = arith.constant 0 : index
      %43 = vector.load %arg6[%c0_21, %c0_22] : memref<1x1xf32, #tpu.memory_space<vmem>>, vector<1x1xf32>
      %cst_23 = arith.constant 1.000000e+00 : f32
      %44 = vector.broadcast %cst_23 : f32 to vector<1x1xf32>
      %45 = arith.maximumf %43, %44 : vector<1x1xf32>
      %46 = arith.divf %42, %45 : vector<1x1xf32>
      %c0_24 = arith.constant 0 : index
      %c0_25 = arith.constant 0 : index
      %47 = vector.load %arg4[%c0_24, %c0_25] : memref<1x1xf32, #tpu.memory_space<vmem>>, vector<1x1xf32>
      tpu.vector_store %arg4[%c0_24, %c0_25], %46 {strides = array<i32>} : memref<1x1xf32, #tpu.memory_space<vmem>>, vector<1x1xf32>,
    } else {
    }
    return
  }
  func.func @transform_0(%arg0: i32) -> (i32, i32) {
    %c0_i32 = arith.constant 0 : i32
    %c0_i32_0 = arith.constant 0 : i32
    return %arg0, %c0_i32 : i32, i32
  }
  func.func @transform_1(%arg0: i32) -> (i32, i32) {
    %c0_i32 = arith.constant 0 : i32
    %c0_i32_0 = arith.constant 0 : i32
    return %arg0, %c0_i32 : i32, i32
  }
  func.func @transform_2(%arg0: i32) -> (i32, i32) {
    %c0_i32 = arith.constant 0 : i32
    %c0_i32_0 = arith.constant 0 : i32
    return %arg0, %c0_i32 : i32, i32
  }
  func.func @transform_3(%arg0: i32) -> (i32, i32) {
    %c0_i32 = arith.constant 0 : i32
    %c0_i32_0 = arith.constant 0 : i32
    %c0_i32_1 = arith.constant 0 : i32
    return %c0_i32, %c0_i32_0 : i32, i32
  }
}

</mosaic_0001>

<bundles_post_ra>
// kernel: custom-call.4
= control target key start
LH: loop header
LB: loop body
LE: loop exit
PB: predicated region body
PF: predicated region fallthrough
CT: control target
= control target key end

     0   :  { %s6_s0 = inlined_call_operand.vmem [shape: f32[16], index: 0, kind: output, shape index: {}]  }

// kernel: distill_tuning_forward.3
= control target key start
LH: loop header
LB: loop body
LE: loop exit
PB: predicated region body
PF: predicated region fallthrough
CT: control target
= control target key end

     0   :  { %v235_v0 = vmov 0.0   ;;  %vm236_vm0 = vmmov 0   ;;  %vm32_vm1 = vcmask 261120   ;;  %vm191_vm2 = vcmask 259072   ;;  %s305_s1 = inlined_call_operand.vmem [shape: f32[32,32], index: 1, kind: input, shape index: {}]   ;;  %s306_s3 = inlined_call_operand.vmem [shape: f32[32,32], index: 3, kind: input, shape index: {}]   ;;  %s307_s0 = inlined_call_operand.vmem [shape: f32[6,32], index: 0, kind: input, shape index: {}]   ;;  %s308_s2 = inlined_call_operand.vmem [shape: f32[1,32], index: 2, kind: input, shape index: {}]   ;;  %s309_s4 = inlined_call_operand.vmem [shape: f32[1,32], index: 4, kind: input, shape index: {}]   ;;  %s310_s5 = inlined_call_operand.vmem [shape: f32[6,32], index: 5, kind: output, shape index: {}]  }
   0x1   :  { %211 = vmatprep.subr.mxu0 %v235_v0  ;;  %v24_v1 = vld [vmem:[%s305_s1 + $0x18] sm:$0xff]  ;;  %v23_v2 = vld [vmem:[%s305_s1 + $0x10] sm:$0xff]  ;;  %219 = vmatprep.mubr.msk.f32.mxu0 %vm236_vm0, %v235_v0  ;;  %v22_v4 = vld [vmem:[%s305_s1 + $0x8] sm:$0xff] }
   0x2   :  { %212 = vmatpush3.msra.mxu0 %v24_v1  ;;  %222 = vmatprep.subr.mxu1 %v235_v0  ;;  %v110_v3 = vld [vmem:[%s306_s3 + $0x18] sm:$0xff]  ;;  %v21_v5 = vld [vmem:[%s305_s1] sm:$0xff]  ;;  %v109_v7 = vld [vmem:[%s306_s3 + $0x10] sm:$0xff] }
   0x3   :  { %213 = vmatprep.subr.mxu0 %v235_v0  ;;  %223 = vmatpush3.msra.mxu1 %v110_v3  ;;  %v20_v6 = vld [vmem:[%s307_s0] sm:$0x3f]  ;;  %v108_v8 = vld [vmem:[%s306_s3 + $0x8] sm:$0xff] }
   0x4   :  { %214 = vmatpush3.msra.mxu0 %v23_v2  ;;  %224 = vmatprep.subr.mxu1 %v235_v0  ;;  %v107_v9 = vld [vmem:[%s306_s3] sm:$0xff] }
   0x5   :  { %215 = vmatprep.subr.mxu0 %v235_v0  ;;  %230 = vmatprep.mubr.msk.f32.mxu1 %vm236_vm0, %v235_v0  ;;  %v197_v10 = vld [vmem:[%s308_s2] ss:$0 sm:$0xff] }
   0x6   :  { %216 = vmatpush3.msra.mxu0 %v22_v4  ;;  %225 = vmatpush3.msra.mxu1 %v109_v7  ;;  %v199_v15 = vld [vmem:[%s309_s4] ss:$0 sm:$0xff] }
   0x7   :  { %217 = vmatprep.subr.mxu0 %v235_v0  ;;  %226 = vmatprep.subr.mxu1 %v235_v0 }
   0x8   :  { %218 = vmatpush3.msra.mxu0 %v21_v5  ;;  %227 = vmatpush3.msra.mxu1 %v108_v8 }
   0x9   :  { %220 = vmatmul.mubr.msk.f32.vlgmr.msra.gmra.mxu0 %vm32_vm1, %v20_v6  ;;  %228 = vmatprep.subr.mxu1 %v235_v0 }
   0xa   :  { %229 = vmatpush3.msra.mxu1 %v107_v9 }
  0xc9   :  { %v102_v11 = vpop.f32.mrf.mxu0 }
  0xca   :  { %v103_v12 = vadd.f32 %v197_v10, %v102_v11 }
  0xcb   :  { %v221_v13 = vpop.f32.mrf.mxu0 }
  0xcc   :  { %v106_v14 = vmax.f32 %v103_v12, 0.0 }
  0xce   :  { %231 = vmatmul.mubr.msk.f32.vlgmr.msra.gmra.mxu1 %vm32_vm1, %v106_v14 }
 0x18e   :  { %v187_v16 = vpop.f32.mrf.mxu1 }
 0x18f   :  { %v188_v17 = vadd.f32 %v199_v15, %v187_v16 }
 0x190   :  { %v232_v18 = vpop.f32.mrf.mxu1 }
 0x191   :  { %192 = vst.msk [vmem:[%s310_s5] sm:$0x3f] %vm191_vm2, %v188_v17 }

// kernel: distill_tuning_forward.4
= control target key start
LH: loop header
LB: loop body
LE: loop exit
PB: predicated region body
PF: predicated region fallthrough
CT: control target
= control target key end

     0   :  { %s7788_s24 = smov 0   ;;  %s9026_s0 = inlined_call_operand.vmem [shape: f32[4,14,32], index: 0, kind: input, shape index: {}]   ;;  %s9027_s1 = inlined_call_operand.vmem [shape: f32[4,1,14], index: 1, kind: input, shape index: {}]   ;;  %s9028_s2 = inlined_call_operand.vmem [shape: f32[2,1,32], index: 2, kind: input, shape index: {}]   ;;  %s9029_s3 = inlined_call_operand.vmem [shape: f32[2,1,32], index: 3, kind: input, shape index: {}]   ;;  %s9030_s4 = inlined_call_operand.vmem [shape: f32[2,32,96], index: 4, kind: input, shape index: {}]   ;;  %s9031_s5 = inlined_call_operand.vmem [shape: f32[2,1,96], index: 5, kind: input, shape index: {}]   ;;  %s9032_s6 = inlined_call_operand.vmem [shape: f32[2,32,32], index: 6, kind: input, shape index: {}]   ;;  %s9033_s7 = inlined_call_operand.vmem [shape: f32[2,1,32], index: 7, kind: input, shape index: {}]   ;;  %s9034_s8 = inlined_call_operand.vmem [shape: f32[2,1,32], index: 8, kind: input, shape index: {}]   ;;  %s9035_s9 = inlined_call_operand.vmem [shape: f32[2,1,32], index: 9, kind: input, shape index: {}]   ;;  %s9036_s10 = inlined_call_operand.vmem [shape: f32[2,32,128], index: 10, kind: input, shape index: {}]   ;;  %s9037_s11 = inlined_call_operand.vmem [shape: f32[2,1,128], index: 11, kind: input, shape index: {}]   ;;  %s9038_s12 = inlined_call_operand.vmem [shape: f32[2,128,32], index: 12, kind: input, shape index: {}]   ;;  %s9039_s13 = inlined_call_operand.vmem [shape: f32[2,1,32], index: 13, kind: input, shape index: {}]   ;;  %s9040_s14 = inlined_call_operand.vmem [shape: f32[1,32], index: 14, kind: input, shape index: {}]   ;;  %s9041_s15 = inlined_call_operand.vmem [shape: f32[1,32], index: 15, kind: input, shape index: {}]   ;;  %s9042_s16 = inlined_call_operand.vmem [shape: f32[32,128], index: 16, kind: input, shape index: {}]   ;;  %s9043_s17 = inlined_call_operand.vmem [shape: f32[4,14,128], index: 17, kind: output, shape index: {}]  }
   0x1   :  { %9084 = sst [smem:[#allocation6_spill]] %s9026_s0 }
   0x2   :  { %9085 = sst [smem:[#allocation7_spill]] %s9027_s1 }
   0x3   :  { %9086 = sst [smem:[#allocation8_spill]] %s9033_s7 }
   0x4   :  { %9087 = sst [smem:[#allocation9_spill]] %s9040_s14 }
   0x5   :  { %9088 = sst [smem:[#allocation10_spill]] %s9041_s15 }
   0x6   :  { %9089 = sst [smem:[#allocation11_spill]] %s9042_s16 }
   0x7   :  { %9090 = sst [smem:[#allocation12_spill]] %s9043_s17 }
   0x8 LB: > { %9091 = sst [smem:[#allocation4_spill]] %s7680_s24  ;;  %s6395_s25 = sadd.s32 4294967295, %s7680_s24   ;;  %s7680_s24 = sphi %s7788_s24, %s27_s24  }
   0x9   : > { %p6399_p0 = scmp.ge.s32.totalorder %s7680_s24, 1  ;;  %p499_p1 = scmp.lt.s32.totalorder %s7680_s24, 3 }
   0xb   : > { %p500_p2 = pnand %p6399_p0, %p499_p1 }
   0xd   : > { %503 = sbr.rel (%p500_p2) target bundleno = 15397 (0x3c25), region = 88 }
  0x12   : > { %s6400_s26 = sshll.u32 %s6395_s25, 1  ;;  %v576_v0 = vlaneseq  ;;  %s9092_s0 = sld [smem:[#allocation7_spill]]  ;;  %vm599_vm0 = vcmask 261120   ;;  %vm603_vm2 = vcmask 259072   ;;  %v7682_v7 = vmov 0   ;;  %v647_v26 = vld [vmem:[%s9030_s4 + $0x18] sm:$0xff] }
  0x13   : > { %p558_p3 = scmp.lt.s32.totalorder %s6400_s26, 3  ;;  %s9093_s1 = sld [smem:[#allocation6_spill]]  ;;  %v7683_v13 = vmov -1e+09   ;;  %v646_v27 = vld [vmem:[%s9030_s4 + $0x10] sm:$0xff]  ;;  %6948 = vmatprep.subr.mxu1 %v647_v26  ;;  %v645_v28 = vld [vmem:[%s9030_s4 + $0x8] sm:$0xff] }
  0x14   : > { %v7798_v1 = vshrl.u32 %v576_v0, 7  ;;  %v7830_v11 = vand.u32 127, %v576_v0  ;;  %6949 = vmatpush3.msra.mxu1 %v647_v26  ;;  %v644_v29 = vld [vmem:[%s9030_s4] sm:$0xff]  ;;  %vm738_vm8 = vcmask 783360   ;;  %vm736_vm9 = vcmask 785408   ;;  %s9071_s28 = smov 96  }
  0x15   : > { %s9129_s26 = smov (!%p558_p3, %s6400_s26), 3  ;;  %6950 = vmatprep.subr.mxu1 %v646_v27  ;;  %v6407_v37 = vld [vmem:[%s9028_s2] ss:$0 sm:$0xff]  ;;  %vm748_vm10 = vcmask 64512   ;;  %vm840_vm15 = vcmask 111616   ;;  %s9067_s29 = smov 88  }
  0x16   : > { %s9044_s27 = sshll.u32 %s9129_s26, 4  ;;  %v588_v3 = vsub.s32 0, %v7798_v1  ;;  %v7828_v10 = vadd.s32 8, %v7798_v1  ;;  %vm581_vm4 = vcmp.le.s32.totalorder %v7830_v11, %v7798_v1  ;;  %6951 = vmatpush3.msra.mxu1 %v646_v27  ;;  %v6408_v39 = vld [vmem:[%s9029_s3] ss:$0 sm:$0xff]  ;;  %s9057_s18 = smov 56  }
  0x17   : > { %6952 = vmatprep.subr.mxu1 %v645_v28  ;;  %v6409_v46 = vld [vmem:[%s9031_s5] ss:$0 sm:$0xff]  ;;  %s9061_s19 = smov 80   ;;  %s9055_s21 = smov 48  }
  0x18   : > { %s7805_s30 = scalar_lea.vmem %s9092_s0, %s9129_s26  ;;  %vm582_vm5 = vcmp.le.s32.totalorder %v7830_v11, %v7828_v10  ;;  %6953 = vmatpush3.msra.mxu1 %v645_v28  ;;  %s9065_s0 = smov 120  }
  0x19   : > { %s7812_s20 = scalar_lea.vmem %s9093_s1, %s9044_s27  ;;  %v6531_v2 = vld [vmem:[%s7805_s30 + $0x1] sm:$0x1]  ;;  %6954 = vmatprep.subr.mxu1 %v644_v29  ;;  %v583_v55 = vld [vmem:[%s7805_s30] sm:$0x1]  ;;  %s9069_s30 = smov 64  }
  0x1a   : > { %v7817_v4 = vld [vmem:[%s7812_s20] sm:$0xff]  ;;  %vm3470_vm1 = vcmp.gt.f32.partialorder %v6531_v2, 0.5  ;;  %v7820_v5 = vld [vmem:[%s7812_s20 + $0x8] sm:$0x3f]  ;;  %6955 = vmatpush3.msra.mxu1 %v644_v29  ;;  %vm584_vm11 = vcmp.gt.f32.partialorder %v583_v55, 0.5  ;;  %s9059_s1 = smov 112  }
  0x1b   : > { %v600_v6 = vsel %vm599_vm0, %v7817_v4, 0.0  ;;  %v3471_v8 = vsel %vm3470_vm1, 1, %v7682_v7  ;;  %v604_v12 = vsel %vm603_vm2, %v7820_v5, 0.0  ;;  %v585_v56 = vsel %vm584_vm11, 1, %v7682_v7  ;;  %s9053_s22 = smov 72   ;;  %s9045_s23 = smov 104  }
  0x1c   : > { %v3475_v9 = vrot.slane %v3471_v8, %v588_v3  ;;  %601 = vadd.xlane.f32.xlu0 %v600_v6  ;;  %v589_v57 = vrot.slane %v585_v56, %v588_v3  ;;  %vm836_vm1 = vcmask 113664   ;;  %s9051_s25 = smov 40   ;;  %s9049_s27 = smov 8   ;;  %vm1390_vm11 = vcmask 195712  }
  0x1d   : > { %s9094_s7 = sld [smem:[#allocation8_spill]]  ;;  %s9116_s24 = smov 40  }
  0x1e   : > { %vm3476_vm3 = vcmp.eq.s32.totalorder %v3475_v9, 1  ;;  %vm590_vm12 = vcmp.eq.s32.totalorder %v589_v57, 1  ;;  %s9105_s16 = sld [smem:[#allocation11_spill]] }
  0x1f   : > { %vm3477_vm6 = vmand %vm581_vm4, %vm3476_vm3  ;;  %s9106_s14 = sld [smem:[#allocation9_spill]] }
  0x20   : > { %605 = vadd.xlane.f32.xlu0 %v604_v12  ;;  %vm3478_vm7 = vmand %vm582_vm5, %vm3476_vm3  ;;  %v7845_v14 = vsel %vm3477_vm6, 0.0, %v7683_v13  ;;  %vm871_vm3 = vcmask 1045504   ;;  %vm1171_vm6 = vcmask 128064   ;;  %s9107_s15 = sld [smem:[#allocation10_spill]] }
  0x21   : > { %v7848_v15 = vsel %vm3478_vm7, 0.0, %v7683_v13  ;;  %vm592_vm13 = vmand %vm582_vm5, %vm590_vm12  ;;  %vm1169_vm5 = vcmask 130112   ;;  %vm1392_vm7 = vcmask 193664   ;;  %s9109_s17 = sld [smem:[#allocation12_spill]] }
  0x22   : > { %vm591_vm14 = vmand %vm581_vm4, %vm590_vm12  ;;  %v7902_v58 = vsel %vm592_vm13, 0.0, %v7683_v13  ;;  %vm950_vm4 = vcmask 62464   ;;  %vm1613_vm12 = vcmask 259264   ;;  %vm1611_vm13 = vcmask 261312  }
  0x23   : > { %v7905_v61 = vsel %vm591_vm14, 0.0, %v7683_v13 }
  0xa5   : > { %v602_v16 = vpop.xlane.xlu0 %601 }
  0xa6   : > { %v608_v17 = vmul.f32 0.03125, %v602_v16 }
  0xa8   : > { %v610_v18 = vsub.f32 %v7817_v4, %v608_v17 }
  0xa9   : > { %v606_v19 = vpop.xlane.xlu0 %605 }
  0xaa   : > { %v609_v20 = vmul.f32 0.03125, %v606_v19  ;;  %v612_v21 = vmul.f32 %v610_v18, %v610_v18 }
  0xac   : > { %v611_v22 = vsub.f32 %v7820_v5, %v609_v20  ;;  %v614_v23 = vsel %vm599_vm0, %v612_v21, 0.0 }
  0xad   : > { %615 = vadd.xlane.f32.xlu1 %v614_v23 }
  0xae   : > { %v613_v24 = vmul.f32 %v611_v22, %v611_v22 }
  0xb0   : > { %v617_v25 = vsel %vm603_vm2, %v613_v24, 0.0 }
  0xb1   : > { %618 = vadd.xlane.f32.xlu1 %v617_v25 }
 0x136   : > { %v616_v30 = vpop.xlane.xlu1 %615 }
 0x137   : > { %v620_v31 = vmul.f32 0.03125, %v616_v30 }
 0x139   : > { %v622_v32 = vadd.f32 1e-05, %v620_v31 }
 0x13a   : > { %v619_v33 = vpop.xlane.xlu1 %618 }
 0x13b   : > { %7490 = vrsqrt.f32 %v622_v32  ;;  %v621_v34 = vmul.f32 0.03125, %v619_v33 }
 0x13d   : > { %v623_v35 = vadd.f32 1e-05, %v621_v34 }
 0x13f   : > { %7492 = vrsqrt.f32 %v623_v35 }
 0x148   : > { %v7491_v36 = vpop.eup %7490 }
 0x149   : > { %v626_v38 = vmul.f32 %v7491_v36, %v610_v18 }
 0x14b   : > { %v634_v40 = vmul.f32 %v6407_v37, %v626_v38 }
 0x14c   : > { %v7493_v41 = vpop.eup %7492 }
 0x14d   : > { %v627_v42 = vmul.f32 %v7493_v41, %v611_v22  ;;  %v642_v43 = vadd.f32 %v6408_v39, %v634_v40 }
 0x14f   : > { %v635_v44 = vmul.f32 %v6407_v37, %v627_v42  ;;  %6956 = vmatprep.mubr.msk.f32.mxu1 %vm599_vm0, %v642_v43 }
 0x151   : > { %v643_v45 = vadd.f32 %v6408_v39, %v635_v44 }
 0x153   : > { %6957 = vmatmul.mubr.msk.f32.vlgmr.msra.gmra.mxu1 %vm599_vm0, %v643_v45 }
 0x213   : > { %v6958_v47 = vpop.f32.mrf.mxu1 }
 0x214   : > { %v733_v48 = vadd.f32 %v6958_v47, %v6409_v46 }
 0x215   : > { %v727_v49 = vpop.f32.mrf.mxu1 }
 0x216   : > { %739 = vst.msk [vmem:[#allocation2 + $0x8] sm:$0x3f] %vm738_vm8, %v733_v48  ;;  %v728_v50 = vadd.f32 %v6409_v46, %v727_v49 }
 0x218   : > { %737 = vst.msk [vmem:[#allocation2] sm:$0xff] %vm736_vm9, %v728_v50 }
 0x21d   : > { %v741_v51 = vld [vmem:[#allocation2 + $0x8] sm:$0x3f] }
 0x21e   : > { %746 = vrot.lane.b32.xlu0 %v741_v51, %s9071_s28  ;;  %v7915_v18 = vld [vmem:[#allocation2 + $0x8] sm:$0x3f] }
 0x21f   : > { %v7880_v52 = vld [vmem:[#allocation2] sm:$0xff]  ;;  %v7944_v41 = vld [vmem:[#allocation2 + $0x8] sm:$0x3f] }
 0x220   : > { %744 = vrot.lane.b32.xlu1 %v7880_v52, %s9071_s28  ;;  %6963 = vmatprep.mubr.msk.f32.mxu1 %vm748_vm10, %v7880_v52 }
 0x290   : > { %v747_v53 = vpop.permute.xlu0 %746 }
 0x291   : > { %6959 = vmatprep.subr.msk.mxu1 %vm748_vm10, %v747_v53 }
 0x292   : > { %6960 = vmatpush3.xpose.msk.msra.mxu1 %vm748_vm10, %v747_v53  ;;  %v745_v54 = vpop.permute.xlu1 %744 }
 0x293   : > { %6961 = vmatprep.subr.msk.mxu1 %vm748_vm10, %v745_v54 }
 0x296   : > { %6962 = vmatpush3.xpose.msk.msra.mxu1 %vm748_vm10, %v745_v54 }
 0x299   : > { %6964 = vmatmul.mubr.msk.f32.vlgmr.msra.gmra.mxu1 %vm748_vm10, %v741_v51 }
 0x359   : > { %v6965_v59 = vpop.f32.mrf.mxu1 }
 0x35a   : > { %v833_v60 = vmul.f32 0.35355338, %v6965_v59 }
 0x35b   : > { %v823_v62 = vpop.f32.mrf.mxu1 }
 0x35c   : > { %v832_v63 = vmul.f32 0.35355338, %v823_v62  ;;  %v835_v0 = vadd.f32 %v833_v60, %v7902_v58 }
 0x35e   : > { %v841_v2 = vsel %vm840_vm15, %v835_v0, -inf  ;;  %v834_v3 = vadd.f32 %v832_v63, %v7905_v61 }
 0x35f   : > { %842 = vmax.xlane.f32.xlu0 %v841_v2 }
 0x360   : > { %v837_v1 = vsel %vm836_vm1, %v834_v3, -inf }
 0x361   : > { %838 = vmax.xlane.f32.xlu1 %v837_v1 }
 0x3e8   : > { %v843_v6 = vpop.xlane.xlu0 %842 }
 0x3e9   : > { %v845_v7 = vsub.f32 %v835_v0, %v843_v6 }
 0x3ea   : > { %v839_v8 = vpop.xlane.xlu1 %838 }
 0x3eb   : > { %v848_v9 = vmul.f32 1.442695, %v845_v7  ;;  %v844_v10 = vsub.f32 %v834_v3, %v839_v8 }
 0x3ed   : > { %7494 = vpow2.f32 %v848_v9  ;;  %v846_v11 = vmul.f32 1.442695, %v844_v10 }
 0x3ef   : > { %7496 = vpow2.f32 %v846_v11 }
 0x3fa   : > { %v7495_v12 = vpop.eup %7494 }
 0x3fb   : > { %v853_v13 = vsel %vm840_vm15, %v7495_v12, 0.0 }
 0x3fc   : > { %v7497_v16 = vpop.eup %7496  ;;  %854 = vadd.xlane.f32.xlu1 %v853_v13 }
 0x3fd   : > { %v850_v17 = vsel %vm836_vm1, %v7497_v16, 0.0 }
 0x3fe   : > { %851 = vadd.xlane.f32.xlu0 %v850_v17  ;;  %v7978_v17 = vld [vmem:[#allocation2 + $0x8] sm:$0x3f] }
 0x40d   : > { %860 = vrot.lane.b32.xlu1 %v7880_v52, %s9069_s30 }
 0x411   : > { %962 = vrot.lane.b32.xlu1 %v7915_v18, %s9067_s29 }
 0x414   : > { %862 = vrot.lane.b32.xlu0 %v741_v51, %s9069_s30 }
 0x415   : > { %960 = vrot.lane.b32.xlu1 %v7880_v52, %s9067_s29 }
 0x418   : > { %956 = vrot.lane.b32.xlu0 %v7880_v52, %s9065_s0 }
 0x419   : > { %958 = vrot.lane.b32.xlu1 %v7915_v18, %s9065_s0 }
 0x485   : > { %v855_v19 = vpop.xlane.xlu1 %854 }
 0x486   : > { %7498 = vrcp.f32 %v855_v19 }
 0x487   : > { %v852_v20 = vpop.xlane.xlu0 %851 }
 0x488   : > { %7500 = vrcp.f32 %v852_v20 }
 0x489   : > { %v861_v21 = vpop.permute.xlu1 %860 }
 0x48b   : > { %v863_v22 = vpop.permute.xlu0 %862 }
 0x48c   : > { %6966 = vmatprep.subr.msk.mxu1 %vm871_vm3, %v863_v22 }
 0x48d   : > { %6967 = vmatpush3.msk.msra.mxu1 %vm871_vm3, %v863_v22  ;;  %v963_v23 = vpop.permute.xlu1 %962 }
 0x48e   : > { %6968 = vmatprep.subr.mxu1 %v861_v21 }
 0x48f   : > { %6969 = vmatpush3.msra.mxu1 %v861_v21  ;;  %v957_v28 = vpop.permute.xlu0 %956 }
 0x490   : > { %6973 = vmatprep.subr.msk.mxu1 %vm748_vm10, %v963_v23 }
 0x491   : > { %v961_v29 = vpop.permute.xlu1 %960 }
 0x493   : > { %v7499_v24 = vpop.eup %7498 }
 0x494   : > { %v859_v27 = vmul.f32 %v7499_v24, %v7495_v12 }
 0x495   : > { %v7501_v25 = vpop.eup %7500  ;;  %v959_v30 = vpop.permute.xlu1 %958 }
 0x496   : > { %v858_v26 = vmul.f32 %v7501_v25, %v7497_v16 }
 0x498   : > { %6970 = vmatprep.mubr.msk.f32.mxu1 %vm836_vm1, %v858_v26 }
 0x499   : > { %6971 = vmatmul.mubr.msk.f32.vlgmr.msra.gmra.mxu1 %vm836_vm1, %v859_v27 }
 0x49a   : > { %6974 = vmatpush3.xpose.msk.msra.mxu1 %vm748_vm10, %v963_v23  ;;  %6977 = vmatprep.mubr.msk.f32.mxu1 %vm748_vm10, %v957_v28 }
 0x49b   : > { %6975 = vmatprep.subr.msk.mxu1 %vm748_vm10, %v961_v29 }
 0x49e   : > { %6976 = vmatpush3.xpose.msk.msra.mxu1 %vm748_vm10, %v961_v29 }
 0x4a1   : > { %6978 = vmatmul.mubr.msk.f32.vlgmr.msra.gmra.mxu1 %vm748_vm10, %v959_v30 }
 0x559   : > { %v6972_v31 = vpop.f32.mrf.mxu1 }
 0x55a   : > { %951 = vst.msk [vmem:[#allocation3 + $0x8] sm:$0x3f] %vm950_vm4, %v6972_v31 }
 0x55b   : > { %v940_v32 = vpop.f32.mrf.mxu1 }
 0x55c   : > { %949 = vst.msk [vmem:[#allocation3] sm:$0xff] %vm748_vm10, %v940_v32 }
 0x561   : > { %v6979_v33 = vpop.f32.mrf.mxu1 }
 0x562   : > { %v1048_v34 = vmul.f32 0.35355338, %v6979_v33 }
 0x563   : > { %v1038_v35 = vpop.f32.mrf.mxu1 }
 0x564   : > { %v1047_v36 = vmul.f32 0.35355338, %v1038_v35  ;;  %v1050_v37 = vadd.f32 %v1048_v34, %v7902_v58 }
 0x566   : > { %v1054_v38 = vsel %vm840_vm15, %v1050_v37, -inf  ;;  %v1049_v39 = vadd.f32 %v1047_v36, %v7905_v61 }
 0x567   : > { %1055 = vmax.xlane.f32.xlu1 %v1054_v38 }
 0x568   : > { %v1051_v40 = vsel %vm836_vm1, %v1049_v39, -inf }
 0x569   : > { %1052 = vmax.xlane.f32.xlu0 %v1051_v40 }
 0x578   : > { %1073 = vrot.lane.b32.xlu1 %v7880_v52, %s9057_s18 }
 0x57c   : > { %1183 = vrot.lane.b32.xlu1 %v7944_v41, %s9061_s19 }
 0x580   : > { %1181 = vrot.lane.b32.xlu1 %v7880_v52, %s9061_s19  ;;  %s9096_s19 = smov 112  }
 0x584   : > { %1179 = vrot.lane.b32.xlu1 %v7944_v41, %s9059_s1 }
 0x5f0   : > { %v1056_v42 = vpop.xlane.xlu1 %1055 }
 0x5f1   : > { %v1058_v43 = vsub.f32 %v1050_v37, %v1056_v42 }
 0x5f2   : > { %v1053_v44 = vpop.xlane.xlu0 %1052 }
 0x5f3   : > { %v1061_v45 = vmul.f32 1.442695, %v1058_v43  ;;  %v1057_v46 = vsub.f32 %v1049_v39, %v1053_v44 }
 0x5f4   : > { %v1074_v55 = vpop.permute.xlu1 %1073 }
 0x5f5   : > { %7502 = vpow2.f32 %v1061_v45  ;;  %v1059_v47 = vmul.f32 1.442695, %v1057_v46 }
 0x5f7   : > { %7504 = vpow2.f32 %v1059_v47 }
 0x5f8   : > { %v1184_v57 = vpop.permute.xlu1 %1183 }
 0x5fc   : > { %v1182_v2 = vpop.permute.xlu1 %1181 }
 0x600   : > { %v1180_v3 = vpop.permute.xlu1 %1179 }
 0x602   : > { %v7503_v48 = vpop.eup %7502 }
 0x603   : > { %v1066_v49 = vsel %vm840_vm15, %v7503_v48, 0.0 }
 0x604   : > { %v7505_v50 = vpop.eup %7504  ;;  %1067 = vadd.xlane.f32.xlu0 %v1066_v49 }
 0x605   : > { %v1063_v51 = vsel %vm836_vm1, %v7505_v50, 0.0 }
 0x608   : > { %1064 = vadd.xlane.f32.xlu0 %v1063_v51 }
 0x61e   : > { %1075 = vrot.lane.b32.xlu0 %v7915_v18, %s9057_s18  ;;  %s9095_s18 = smov 80  }
 0x622   : > { %1177 = vrot.lane.b32.xlu0 %v7880_v52, %s9059_s1  ;;  %s9097_s1 = smov 56  }
 0x68d   : > { %v1068_v53 = vpop.xlane.xlu0 %1067 }
 0x68e   : > { %7506 = vrcp.f32 %v1068_v53 }
 0x691   : > { %v1065_v54 = vpop.xlane.xlu0 %1064 }
 0x692   : > { %7508 = vrcp.f32 %v1065_v54 }
 0x695   : > { %v1076_v56 = vpop.permute.xlu0 %1075 }
 0x696   : > { %6980 = vmatprep.subr.msk.mxu0 %vm871_vm3, %v1076_v56 }
 0x697   : > { %6981 = vmatpush3.msk.msra.mxu0 %vm871_vm3, %v1076_v56 }
 0x698   : > { %6982 = vmatprep.subr.mxu0 %v1074_v55 }
 0x699   : > { %6983 = vmatpush3.msra.mxu0 %v1074_v55  ;;  %v1178_v0 = vpop.permute.xlu0 %1177 }
 0x69a   : > { %6987 = vmatprep.subr.msk.mxu0 %vm748_vm10, %v1184_v57 }
 0x69b   : > { %v7507_v59 = vpop.eup %7506 }
 0x69c   : > { %v1072_v63 = vmul.f32 %v7507_v59, %v7503_v48 }
 0x69f   : > { %v7509_v60 = vpop.eup %7508 }
 0x6a0   : > { %v1071_v62 = vmul.f32 %v7509_v60, %v7505_v50 }
 0x6a2   : > { %6984 = vmatprep.mubr.msk.f32.mxu0 %vm836_vm1, %v1071_v62 }
 0x6a3   : > { %6985 = vmatmul.mubr.msk.f32.vlgmr.msra.gmra.mxu0 %vm836_vm1, %v1072_v63 }
 0x6a4   : > { %6988 = vmatpush3.xpose.msk.msra.mxu0 %vm748_vm10, %v1184_v57  ;;  %6991 = vmatprep.mubr.msk.f32.mxu0 %vm748_vm10, %v1178_v0 }
 0x6a5   : > { %6989 = vmatprep.subr.msk.mxu0 %vm748_vm10, %v1182_v2 }
 0x6a8   : > { %6990 = vmatpush3.xpose.msk.msra.mxu0 %vm748_vm10, %v1182_v2 }
 0x6ab   : > { %6992 = vmatmul.mubr.msk.f32.vlgmr.msra.gmra.mxu0 %vm748_vm10, %v1180_v3 }
 0x763   : > { %v7968_v1 = vpop.f32.mrf.mxu0 }
 0x765   : > { %v7970_v6 = vpop.f32.mrf.mxu0 }
 0x76b   : > { %v6993_v7 = vpop.f32.mrf.mxu0 }
 0x76c   : > { %v1269_v8 = vmul.f32 0.35355338, %v6993_v7 }
 0x76d   : > { %v1259_v9 = vpop.f32.mrf.mxu0 }
 0x76e   : > { %v1268_v10 = vmul.f32 0.35355338, %v1259_v9  ;;  %v1271_v11 = vadd.f32 %v1269_v8, %v7902_v58 }
 0x770   : > { %v1275_v12 = vsel %vm840_vm15, %v1271_v11, -inf  ;;  %v1270_v13 = vadd.f32 %v1268_v10, %v7905_v61 }
 0x771   : > { %1276 = vmax.xlane.f32.xlu1 %v1275_v12  ;;  %v1620_v12 = vld [vmem:[%s9032_s6 + $0x18] sm:$0xff] }
 0x772   : > { %v1272_v16 = vsel %vm836_vm1, %v1270_v13, -inf }
 0x773   : > { %1273 = vmax.xlane.f32.xlu0 %v1272_v16  ;;  %v1618_v16 = vld [vmem:[%s9032_s6 + $0x8] sm:$0xff] }
 0x782   : > { %1294 = vrot.lane.b32.xlu1 %v7880_v52, %s9055_s21 }
 0x786   : > { %1404 = vrot.lane.b32.xlu1 %v7978_v17, %s9053_s22 }
 0x78a   : > { %1402 = vrot.lane.b32.xlu1 %v7880_v52, %s9053_s22  ;;  %s9099_s22 = smov 72  }
 0x78e   : > { %1400 = vrot.lane.b32.xlu1 %v7978_v17, %s9045_s23 }
 0x7fa   : > { %v1277_v18 = vpop.xlane.xlu1 %1276 }
 0x7fb   : > { %v1279_v19 = vsub.f32 %v1271_v11, %v1277_v18 }
 0x7fc   : > { %v1274_v20 = vpop.xlane.xlu0 %1273 }
 0x7fd   : > { %v1282_v21 = vmul.f32 1.442695, %v1279_v19  ;;  %v1278_v22 = vsub.f32 %v1270_v13, %v1274_v20  ;;  %v1619_v13 = vld [vmem:[%s9032_s6 + $0x10] sm:$0xff] }
 0x7fe   : > { %v1295_v30 = vpop.permute.xlu1 %1294 }
 0x7ff   : > { %7510 = vpow2.f32 %v1282_v21  ;;  %v1280_v23 = vmul.f32 1.442695, %v1278_v22 }
 0x801   : > { %7512 = vpow2.f32 %v1280_v23 }
 0x802   : > { %v1405_v32 = vpop.permute.xlu1 %1404 }
 0x806   : > { %v1403_v38 = vpop.permute.xlu1 %1402 }
 0x80a   : > { %v1401_v39 = vpop.permute.xlu1 %1400 }
 0x80c   : > { %v7511_v24 = vpop.eup %7510 }
 0x80d   : > { %v1287_v25 = vsel %vm840_vm15, %v7511_v24, 0.0 }
 0x80e   : > { %v7513_v26 = vpop.eup %7512  ;;  %1288 = vadd.xlane.f32.xlu0 %v1287_v25  ;;  %v6442_v25 = vld [vmem:[%s9094_s7] ss:$0 sm:$0xff] }
 0x80f   : > { %v1284_v27 = vsel %vm836_vm1, %v7513_v26, 0.0 }
 0x812   : > { %1285 = vadd.xlane.f32.xlu0 %v1284_v27 }
 0x828   : > { %1296 = vrot.lane.b32.xlu0 %v7944_v41, %s9055_s21  ;;  %s9098_s21 = smov 48  }
 0x82c   : > { %1398 = vrot.lane.b32.xlu0 %v7880_v52, %s9045_s23  ;;  %s9047_s23 = smov 16  }
 0x897   : > { %v1289_v28 = vpop.xlane.xlu0 %1288 }
 0x898   : > { %7514 = vrcp.f32 %v1289_v28 }
 0x89b   : > { %v1286_v29 = vpop.xlane.xlu0 %1285 }
 0x89c   : > { %7516 = vrcp.f32 %v1286_v29 }
 0x89f   : > { %v1297_v31 = vpop.permute.xlu0 %1296 }
 0x8a0   : > { %6994 = vmatprep.subr.msk.mxu1 %vm871_vm3, %v1297_v31 }
 0x8a1   : > { %6995 = vmatpush3.msk.msra.mxu1 %vm871_vm3, %v1297_v31 }
 0x8a2   : > { %6996 = vmatprep.subr.mxu1 %v1295_v30 }
 0x8a3   : > { %6997 = vmatpush3.msra.mxu1 %v1295_v30  ;;  %v1399_v37 = vpop.permute.xlu0 %1398 }
 0x8a4   : > { %7001 = vmatprep.subr.msk.mxu1 %vm748_vm10, %v1405_v32 }
 0x8a5   : > { %v7515_v33 = vpop.eup %7514 }
 0x8a6   : > { %v1293_v36 = vmul.f32 %v7515_v33, %v7511_v24 }
 0x8a9   : > { %v7517_v34 = vpop.eup %7516 }
 0x8aa   : > { %v1292_v35 = vmul.f32 %v7517_v34, %v7513_v26 }
 0x8ac   : > { %6998 = vmatprep.mubr.msk.f32.mxu1 %vm836_vm1, %v1292_v35 }
 0x8ad   : > { %6999 = vmatmul.mubr.msk.f32.vlgmr.msra.gmra.mxu1 %vm836_vm1, %v1293_v36 }
 0x8ae   : > { %7002 = vmatpush3.xpose.msk.msra.mxu1 %vm748_vm10, %v1405_v32  ;;  %7005 = vmatprep.mubr.msk.f32.mxu1 %vm748_vm10, %v1399_v37 }
 0x8af   : > { %7003 = vmatprep.subr.msk.mxu1 %vm748_vm10, %v1403_v38 }
 0x8b2   : > { %7004 = vmatpush3.xpose.msk.msra.mxu1 %vm748_vm10, %v1403_v38 }
 0x8b5   : > { %7006 = vmatmul.mubr.msk.f32.vlgmr.msra.gmra.mxu1 %vm748_vm10, %v1401_v39 }
 0x96d   : > { %v7000_v40 = vpop.f32.mrf.mxu1 }
 0x96f   : > { %v1373_v41 = vpop.f32.mrf.mxu1 }
 0x975   : > { %v7007_v42 = vpop.f32.mrf.mxu1 }
 0x976   : > { %v1490_v43 = vmul.f32 0.35355338, %v7007_v42  ;;  %v1759_v42 = vld [vmem:[%s9036_s10 + $0x10] sm:$0xff] }
 0x977   : > { %v1480_v44 = vpop.f32.mrf.mxu1 }
 0x978   : > { %v1489_v45 = vmul.f32 0.35355338, %v1480_v44  ;;  %v1492_v46 = vadd.f32 %v1490_v43, %v7902_v58  ;;  %v1758_v43 = vld [vmem:[%s9036_s10 + $0x8] sm:$0xff]  ;;  %v1757_v44 = vld [vmem:[%s9036_s10] sm:$0xff] }
 0x97a   : > { %v1496_v47 = vsel %vm840_vm15, %v1492_v46, -inf  ;;  %v1491_v48 = vadd.f32 %v1489_v45, %v7905_v61 }
 0x97b   : > { %1497 = vmax.xlane.f32.xlu1 %v1496_v47 }
 0x97c   : > { %v1493_v49 = vsel %vm836_vm1, %v1491_v48, -inf }
 0x97d   : > { %1494 = vmax.xlane.f32.xlu0 %v1493_v49 }
 0x98c   : > { %1515 = vrot.lane.b32.xlu1 %v7880_v52, %s9051_s25 }
 0x990   : > { %1163 = vrot.lane.b32.xlu1 %v7970_v6, %s9049_s27 }
 0x994   : > { %1165 = vrot.lane.b32.xlu1 %v7968_v1, %s9049_s27  ;;  %s9063_s27 = smov 24  }
 0x998   : > { %1386 = vrot.lane.b32.xlu1 %v7000_v40, %s9047_s23 }
 0xa04   : > { %v1498_v50 = vpop.xlane.xlu1 %1497 }
 0xa05   : > { %v1500_v51 = vsub.f32 %v1492_v46, %v1498_v50 }
 0xa06   : > { %v1495_v53 = vpop.xlane.xlu0 %1494 }
 0xa07   : > { %v1503_v54 = vmul.f32 1.442695, %v1500_v51  ;;  %v1499_v55 = vsub.f32 %v1491_v48, %v1495_v53  ;;  %v6443_v53 = vld [vmem:[%s9034_s8] ss:$0 sm:$0xff] }
 0xa08   : > { %v1516_v56 = vpop.permute.xlu1 %1515 }
 0xa09   : > { %7518 = vpow2.f32 %v1503_v54  ;;  %v1501_v57 = vmul.f32 1.442695, %v1499_v55  ;;  %v6444_v55 = vld [vmem:[%s9035_s9] ss:$0 sm:$0xff] }
 0xa0b   : > { %7520 = vpow2.f32 %v1501_v57 }
 0xa0c   : > { %v1164_v52 = vpop.permute.xlu1 %1163 }
 0xa0d   : > { %1170 = vst.msk [vmem:[#allocation3] sm:$0xff] %vm1169_vm5, %v1164_v52 }
 0xa10   : > { %v1166_v59 = vpop.permute.xlu1 %1165 }
 0xa11   : > { %1172 = vst.msk [vmem:[#allocation3 + $0x8] sm:$0x3f] %vm1171_vm6, %v1166_v59 }
 0xa14   : > { %v1387_v60 = vpop.permute.xlu1 %1386 }
 0xa15   : > { %1393 = vst.msk [vmem:[#allocation3 + $0x8] sm:$0x3f] %vm1392_vm7, %v1387_v60 }
 0xa16   : > { %v7519_v62 = vpop.eup %7518 }
 0xa17   : > { %v1508_v63 = vsel %vm840_vm15, %v7519_v62, 0.0 }
 0xa18   : > { %v7521_v0 = vpop.eup %7520  ;;  %1509 = vadd.xlane.f32.xlu0 %v1508_v63  ;;  %v1882_v63 = vld [vmem:[%s9038_s12 + $0x78] sm:$0xff] }
 0xa19   : > { %v1505_v2 = vsel %vm836_vm1, %v7521_v0, 0.0 }
 0xa1c   : > { %1506 = vadd.xlane.f32.xlu0 %v1505_v2  ;;  %v1880_v2 = vld [vmem:[%s9038_s12 + $0x68] sm:$0xff] }
 0xa32   : > { %1517 = vrot.lane.b32.xlu0 %v7978_v17, %s9051_s25  ;;  %v1617_v17 = vld [vmem:[%s9032_s6] sm:$0xff]  ;;  %s9102_s25 = smov 8  }
 0xa36   : > { %1384 = vrot.lane.b32.xlu0 %v1373_v41, %s9047_s23  ;;  %v1760_v41 = vld [vmem:[%s9036_s10 + $0x18] sm:$0xff]  ;;  %s9100_s23 = smov 104  }
 0xa37   : > { %7026 = vmatprep.subr.mxu1 %v1760_v41 }
 0xa38   : > { %7027 = vmatpush3.msra.mxu1 %v1760_v41 }
 0xa39   : > { %7028 = vmatprep.subr.mxu1 %v1759_v42 }
 0xa3a   : > { %7029 = vmatpush3.msra.mxu1 %v1759_v42 }
 0xa3b   : > { %7030 = vmatprep.subr.mxu1 %v1758_v43 }
 0xa3c   : > { %7031 = vmatpush3.msra.mxu1 %v1758_v43  ;;  %v6448_v43 = vld [vmem:[%s9039_s13] ss:$0 sm:$0xff] }
 0xa3d   : > { %7032 = vmatprep.subr.mxu1 %v1757_v44 }
 0xa3e   : > { %7033 = vmatpush3.msra.mxu1 %v1757_v44 }
 0xaa1   : > { %v1510_v3 = vpop.xlane.xlu0 %1509 }
 0xaa2   : > { %7522 = vrcp.f32 %v1510_v3  ;;  %v1879_v3 = vld [vmem:[%s9038_s12 + $0x60] sm:$0xff] }
 0xaa5   : > { %v1507_v1 = vpop.xlane.xlu0 %1506 }
 0xaa6   : > { %7524 = vrcp.f32 %v1507_v1  ;;  %v1878_v1 = vld [vmem:[%s9038_s12 + $0x58] sm:$0xff] }
 0xaa9   : > { %v1518_v6 = vpop.permute.xlu0 %1517 }
 0xaaa   : > { %7008 = vmatprep.subr.msk.mxu0 %vm871_vm3, %v1518_v6 }
 0xaab   : > { %7009 = vmatpush3.msk.msra.mxu0 %vm871_vm3, %v1518_v6  ;;  %v1877_v6 = vld [vmem:[%s9038_s12 + $0x50] sm:$0xff] }
 0xaac   : > { %7010 = vmatprep.subr.mxu0 %v1516_v56 }
 0xaad   : > { %7011 = vmatpush3.msra.mxu0 %v1516_v56  ;;  %v1385_v7 = vpop.permute.xlu0 %1384 }
 0xaae   : > { %1391 = vst.msk [vmem:[#allocation3] sm:$0xff] %vm1390_vm11, %v1385_v7  ;;  %7015 = vmatprep.subr.mxu0 %v1620_v12  ;;  %v1876_v7 = vld [vmem:[%s9038_s12 + $0x48] sm:$0xff] }
 0xaaf   : > { %v7523_v8 = vpop.eup %7522 }
 0xab0   : > { %v1514_v11 = vmul.f32 %v7523_v8, %v7519_v62  ;;  %v1875_v8 = vld [vmem:[%s9038_s12 + $0x40] sm:$0xff] }
 0xab3   : > { %v7525_v9 = vpop.eup %7524 }
 0xab4   : > { %v1513_v10 = vmul.f32 %v7525_v9, %v7521_v0  ;;  %v1881_v0 = vld [vmem:[%s9038_s12 + $0x70] sm:$0xff]  ;;  %v1874_v9 = vld [vmem:[%s9038_s12 + $0x38] sm:$0xff] }
 0xab6   : > { %7012 = vmatprep.mubr.msk.f32.mxu0 %vm836_vm1, %v1513_v10  ;;  %v1873_v10 = vld [vmem:[%s9038_s12 + $0x30] sm:$0xff] }
 0xab7   : > { %7013 = vmatmul.mubr.msk.f32.vlgmr.msra.gmra.mxu0 %vm836_vm1, %v1514_v11  ;;  %v1872_v11 = vld [vmem:[%s9038_s12 + $0x28] sm:$0xff] }
 0xab8   : > { %7016 = vmatpush3.msra.mxu0 %v1620_v12  ;;  %v1871_v12 = vld [vmem:[%s9038_s12 + $0x20] sm:$0xff] }
 0xab9   : > { %7017 = vmatprep.subr.mxu0 %v1619_v13 }
 0xaba   : > { %7018 = vmatpush3.msra.mxu0 %v1619_v13  ;;  %v1870_v13 = vld [vmem:[%s9038_s12 + $0x18] sm:$0xff] }
 0xabb   : > { %7019 = vmatprep.subr.mxu0 %v1618_v16 }
 0xabc   : > { %7020 = vmatpush3.msra.mxu0 %v1618_v16  ;;  %v1869_v16 = vld [vmem:[%s9038_s12 + $0x10] sm:$0xff] }
 0xabd   : > { %7021 = vmatprep.subr.mxu0 %v1617_v17 }
 0xabe   : > { %7022 = vmatpush3.msra.mxu0 %v1617_v17  ;;  %v1868_v17 = vld [vmem:[%s9038_s12 + $0x8] sm:$0xff] }
 0xabf   : > { %7037 = vmatprep.subr.mxu0 %v1882_v63 }
 0xb77   : > { %v7014_v18 = vpop.f32.mrf.mxu0 }
 0xb78   : > { %1607 = vrot.lane.b32.xlu1 %v7014_v18, %s9063_s27  ;;  %v1867_v18 = vld [vmem:[%s9038_s12] sm:$0xff] }
 0xb79   : > { %v1594_v19 = vpop.f32.mrf.mxu0 }
 0xb7a   : > { %1605 = vrot.lane.b32.xlu0 %v1594_v19, %s9063_s27  ;;  %v6445_v19 = vld [vmem:[%s9037_s11] ss:$0 sm:$0xff]  ;;  %s9101_s27 = smov 40  }
 0xbea   : > { %v1608_v20 = vpop.permute.xlu1 %1607 }
 0xbeb   : > { %1614 = vst.msk [vmem:[#allocation3 + $0x8] sm:$0x3f] %vm1613_vm12, %v1608_v20 }
 0xbec   : > { %v1606_v21 = vpop.permute.xlu0 %1605 }
 0xbed   : > { %1612 = vst.msk [vmem:[#allocation3] sm:$0xff] %vm1611_vm13, %v1606_v21 }
 0xbf2   : > { %v1616_v23 = vld [vmem:[#allocation3 + $0x8] sm:$0x3f] }
 0xbf4   : > { %v1615_v22 = vld [vmem:[#allocation3] sm:$0xff] }
 0xbf5   : > { %7023 = vmatprep.mubr.msk.f32.mxu0 %vm599_vm0, %v1615_v22 }
 0xbf6   : > { %7024 = vmatmul.mubr.msk.f32.vlgmr.msra.gmra.mxu0 %vm599_vm0, %v1616_v23 }
 0xbf7   : > { %7038 = vmatpush3.msra.mxu0 %v1882_v63  ;;  %v6454_v63 = vld [vmem:[%s9030_s4 + $0x28] sm:$0xff] }
 0xbf8   : > { %7039 = vmatprep.subr.mxu0 %v1881_v0 }
 0xbf9   : > { %7040 = vmatpush3.msra.mxu0 %v1881_v0  ;;  %v6453_v0 = vld [vmem:[%s9030_s4 + $0x20] sm:$0xff] }
 0xbfa   : > { %7041 = vmatprep.subr.mxu0 %v1880_v2 }
 0xbfb   : > { %7042 = vmatpush3.msra.mxu0 %v1880_v2 }
 0xbfc   : > { %7043 = vmatprep.subr.mxu0 %v1879_v3 }
 0xbfd   : > { %7044 = vmatpush3.msra.mxu0 %v1879_v3 }
 0xbfe   : > { %7045 = vmatprep.subr.mxu0 %v1878_v1 }
 0xbff   : > { %7046 = vmatpush3.msra.mxu0 %v1878_v1 }
 0xc00   : > { %7047 = vmatprep.subr.mxu0 %v1877_v6 }
 0xc01   : > { %7048 = vmatpush3.msra.mxu0 %v1877_v6 }
 0xc02   : > { %7049 = vmatprep.subr.mxu0 %v1876_v7 }
 0xc03   : > { %7050 = vmatpush3.msra.mxu0 %v1876_v7 }
 0xc04   : > { %7051 = vmatprep.subr.mxu0 %v1875_v8 }
 0xc05   : > { %7052 = vmatpush3.msra.mxu0 %v1875_v8 }
 0xc06   : > { %7053 = vmatprep.subr.mxu0 %v1874_v9 }
 0xc07   : > { %7054 = vmatpush3.msra.mxu0 %v1874_v9 }
 0xc08   : > { %7055 = vmatprep.subr.mxu0 %v1873_v10 }
 0xc09   : > { %7056 = vmatpush3.msra.mxu0 %v1873_v10  ;;  %v6451_v10 = vld [vmem:[%s9028_s2 + $0x1] ss:$0 sm:$0xff] }
 0xc0a   : > { %7057 = vmatprep.subr.mxu0 %v1872_v11 }
 0xc0b   : > { %7058 = vmatpush3.msra.mxu0 %v1872_v11 }
 0xc0c   : > { %7059 = vmatprep.subr.mxu0 %v1871_v12 }
 0xc0d   : > { %7060 = vmatpush3.msra.mxu0 %v1871_v12 }
 0xc0e   : > { %7061 = vmatprep.subr.mxu0 %v1870_v13 }
 0xc0f   : > { %7062 = vmatpush3.msra.mxu0 %v1870_v13 }
 0xc10   : > { %7063 = vmatprep.subr.mxu0 %v1869_v16 }
 0xc11   : > { %7064 = vmatpush3.msra.mxu0 %v1869_v16 }
 0xc12   : > { %7065 = vmatprep.subr.mxu0 %v1868_v17 }
 0xc13   : > { %7066 = vmatpush3.msra.mxu0 %v1868_v17  ;;  %v6452_v17 = vld [vmem:[%s9029_s3 + $0x1] ss:$0 sm:$0xff] }
 0xc14   : > { %7067 = vmatprep.subr.mxu0 %v1867_v18 }
 0xc15   : > { %7068 = vmatpush3.msra.mxu0 %v1867_v18 }
 0xcb6   : > { %v7025_v24 = vpop.f32.mrf.mxu0 }
 0xcb7   : > { %v1703_v26 = vadd.f32 %v7025_v24, %v7820_v5 }
 0xcb8   : > { %v1693_v27 = vpop.f32.mrf.mxu0 }
 0xcb9   : > { %v8048_v28 = vadd.f32 %v6442_v25, %v1703_v26  ;;  %v1702_v29 = vadd.f32 %v1693_v27, %v7817_v4 }
 0xcbb   : > { %v8051_v30 = vadd.f32 %v6442_v25, %v1702_v29  ;;  %v1718_v31 = vsel %vm603_vm2, %v8048_v28, 0.0 }
 0xcbc   : > { %1719 = vadd.xlane.f32.xlu1 %v1718_v31 }
 0xcbd   : > { %v1715_v32 = vsel %vm599_vm0, %v8051_v30, 0.0 }
 0xcbe   : > { %1716 = vadd.xlane.f32.xlu0 %v1715_v32 }
 0xd45   : > { %v1720_v33 = vpop.xlane.xlu1 %1719 }
 0xd46   : > { %v1722_v34 = vmul.f32 0.03125, %v1720_v33 }
 0xd47   : > { %v1717_v35 = vpop.xlane.xlu0 %1716 }
 0xd48   : > { %v1721_v36 = vmul.f32 0.03125, %v1717_v35  ;;  %v1724_v5 = vsub.f32 %v8048_v28, %v1722_v34 }
 0xd4a   : > { %v1723_v37 = vsub.f32 %v8051_v30, %v1721_v36  ;;  %v1726_v39 = vmul.f32 %v1724_v5, %v1724_v5 }
 0xd4c   : > { %v1725_v38 = vmul.f32 %v1723_v37, %v1723_v37  ;;  %v1730_v40 = vsel %vm603_vm2, %v1726_v39, 0.0 }
 0xd4e   : > { %v1727_v4 = vsel %vm599_vm0, %v1725_v38, 0.0 }
 0xd4f   : > { %1728 = vadd.xlane.f32.xlu0 %v1727_v4 }
 0xd53   : > { %1731 = vadd.xlane.f32.xlu0 %v1730_v40 }
 0xdd8   : > { %v1729_v45 = vpop.xlane.xlu0 %1728 }
 0xdd9   : > { %v1733_v46 = vmul.f32 0.03125, %v1729_v45 }
 0xddb   : > { %v1735_v47 = vadd.f32 1e-05, %v1733_v46 }
 0xddc   : > { %v1732_v48 = vpop.xlane.xlu0 %1731 }
 0xddd   : > { %7526 = vrsqrt.f32 %v1735_v47  ;;  %v1734_v49 = vmul.f32 0.03125, %v1732_v48 }
 0xddf   : > { %v1736_v50 = vadd.f32 1e-05, %v1734_v49 }
 0xde1   : > { %7528 = vrsqrt.f32 %v1736_v50 }
 0xdea   : > { %v7527_v51 = vpop.eup %7526 }
 0xdeb   : > { %v1739_v54 = vmul.f32 %v7527_v51, %v1723_v37 }
 0xded   : > { %v1747_v56 = vmul.f32 %v6443_v53, %v1739_v54 }
 0xdee   : > { %v7529_v57 = vpop.eup %7528 }
 0xdef   : > { %v1740_v52 = vmul.f32 %v7529_v57, %v1724_v5  ;;  %v1755_v59 = vadd.f32 %v6444_v55, %v1747_v56 }
 0xdf1   : > { %v1748_v60 = vmul.f32 %v6443_v53, %v1740_v52  ;;  %7034 = vmatprep.mubr.msk.f32.mxu1 %vm599_vm0, %v1755_v59 }
 0xdf3   : > { %v1756_v62 = vadd.f32 %v6444_v55, %v1748_v60  ;;  %v6456_v60 = vld [vmem:[%s9030_s4 + $0x38] sm:$0xff] }
 0xdf4   : > { %7072 = vmatprep.subr.mxu1 %v6456_v60 }
 0xdf5   : > { %7035 = vmatmul.mubr.msk.f32.vlgmr.msra.gmra.mxu1 %vm599_vm0, %v1756_v62  ;;  %v6455_v62 = vld [vmem:[%s9030_s4 + $0x30] sm:$0xff] }
 0xdf6   : > { %7073 = vmatpush3.msra.mxu1 %v6456_v60 }
 0xdf7   : > { %7074 = vmatprep.subr.mxu1 %v6455_v62 }
 0xdf8   : > { %7075 = vmatpush3.msra.mxu1 %v6455_v62 }
 0xdf9   : > { %7076 = vmatprep.subr.mxu1 %v6454_v63 }
 0xdfa   : > { %7077 = vmatpush3.msra.mxu1 %v6454_v63 }
 0xdfb   : > { %7078 = vmatprep.subr.mxu1 %v6453_v0 }
 0xdfc   : > { %7079 = vmatpush3.msra.mxu1 %v6453_v0 }
 0xeb5   : > { %v7036_v20 = vpop.f32.mrf.mxu1 }
 0xeb6   : > { %v1846_v21 = vadd.f32 %v7036_v20, %v6445_v19 }
 0xeb7   : > { %v1840_v22 = vpop.f32.mrf.mxu1 }
 0xeb8   : > { %v1852_v23 = vmul.f32 0.044715, %v1846_v21  ;;  %v1841_v24 = vadd.f32 %v6445_v19, %v1840_v22  ;;  %v1850_v39 = vmul.f32 0.5, %v1846_v21 }
 0xeba   : > { %v1854_v25 = vmul.f32 %v1852_v23, %v1846_v21  ;;  %v1851_v26 = vmul.f32 0.044715, %v1841_v24  ;;  %v1849_v38 = vmul.f32 0.5, %v1841_v24 }
 0xebc   : > { %v1856_v27 = vmul.f32 %v1854_v25, %v1846_v21  ;;  %v1853_v29 = vmul.f32 %v1851_v26, %v1841_v24 }
 0xebe   : > { %v1858_v31 = vadd.f32 %v1856_v27, %v1846_v21  ;;  %v1855_v32 = vmul.f32 %v1853_v29, %v1841_v24  ;;  %v6458_v21 = vld [vmem:[%s9031_s5 + $0x1] ss:$0 sm:$0xff] }
 0xec0   : > { %v1857_v33 = vadd.f32 %v1855_v32, %v1841_v24  ;;  %v1860_v34 = vmul.f32 0.7978846, %v1858_v31 }
 0xec2   : > { %v1859_v35 = vmul.f32 0.7978846, %v1857_v33  ;;  %7530 = vtanh.f32 %v1860_v34 }
 0xec4   : > { %7532 = vtanh.f32 %v1859_v35 }
 0xecf   : > { %v7531_v36 = vpop.eup %7530 }
 0xed0   : > { %v1864_v37 = vadd.f32 1.0, %v7531_v36 }
 0xed1   : > { %v7533_v5 = vpop.eup %7532 }
 0xed2   : > { %v1863_v4 = vadd.f32 1.0, %v7533_v5  ;;  %v1866_v41 = vmul.f32 %v1864_v37, %v1850_v39 }
 0xed4   : > { %v1865_v40 = vmul.f32 %v1863_v4, %v1849_v38 }
 0xed6   : > { %7069 = vmatprep.mubr.f32.mxu0 %v1865_v40 }
 0xed7   : > { %7070 = vmatmul.mubr.f32.vlgmr.msra.gmra.mxu0 %v1866_v41 }
 0xf97   : > { %v7071_v42 = vpop.f32.mrf.mxu0 }
 0xf98   : > { %v1959_v44 = vadd.f32 %v7071_v42, %v8048_v28 }
 0xf99   : > { %v1949_v45 = vpop.f32.mrf.mxu0 }
 0xf9a   : > { %v8136_v46 = vadd.f32 %v6448_v43, %v1959_v44  ;;  %v1958_v47 = vadd.f32 %v1949_v45, %v8051_v30 }
 0xf9c   : > { %v8139_v48 = vadd.f32 %v6448_v43, %v1958_v47  ;;  %v1976_v49 = vsel %vm603_vm2, %v8136_v46, 0.0 }
 0xf9d   : > { %1977 = vadd.xlane.f32.xlu1 %v1976_v49 }
 0xf9e   : > { %v1973_v50 = vsel %vm599_vm0, %v8139_v48, 0.0 }
 0xf9f   : > { %1974 = vadd.xlane.f32.xlu0 %v1973_v50 }
0x1026   : > { %v1978_v51 = vpop.xlane.xlu1 %1977 }
0x1027   : > { %v1980_v53 = vmul.f32 0.03125, %v1978_v51 }
0x1028   : > { %v1975_v54 = vpop.xlane.xlu0 %1974 }
0x1029   : > { %v1982_v28 = vsub.f32 %v8136_v46, %v1980_v53  ;;  %v1979_v55 = vmul.f32 0.03125, %v1975_v54 }
0x102b   : > { %v1981_v56 = vsub.f32 %v8139_v48, %v1979_v55  ;;  %v1984_v57 = vmul.f32 %v1982_v28, %v1982_v28 }
0x102d   : > { %v1988_v30 = vsel %vm603_vm2, %v1984_v57, 0.0  ;;  %v1983_v52 = vmul.f32 %v1981_v56, %v1981_v56 }
0x102e   : > { %1989 = vadd.xlane.f32.xlu1 %v1988_v30 }
0x102f   : > { %v1985_v59 = vsel %vm599_vm0, %v1983_v52, 0.0 }
0x1030   : > { %1986 = vadd.xlane.f32.xlu0 %v1985_v59 }
0x10b7   : > { %v1990_v2 = vpop.xlane.xlu1 %1989 }
0x10b8   : > { %v1992_v3 = vmul.f32 0.03125, %v1990_v2 }
0x10b9   : > { %v1987_v1 = vpop.xlane.xlu0 %1986 }
0x10ba   : > { %v1994_v6 = vadd.f32 1e-05, %v1992_v3  ;;  %v1991_v7 = vmul.f32 0.03125, %v1987_v1 }
0x10bc   : > { %7534 = vrsqrt.f32 %v1994_v6  ;;  %v1993_v8 = vadd.f32 1e-05, %v1991_v7 }
0x10be   : > { %7536 = vrsqrt.f32 %v1993_v8 }
0x10c9   : > { %v7535_v9 = vpop.eup %7534 }
0x10ca   : > { %v1998_v11 = vmul.f32 %v7535_v9, %v1982_v28 }
0x10cb   : > { %v7537_v12 = vpop.eup %7536 }
0x10cc   : > { %v1997_v13 = vmul.f32 %v7537_v12, %v1981_v56  ;;  %v2006_v16 = vmul.f32 %v6451_v10, %v1998_v11 }
0x10ce   : > { %v2005_v18 = vmul.f32 %v6451_v10, %v1997_v13  ;;  %v2014_v20 = vadd.f32 %v6452_v17, %v2006_v16 }
0x10d0   : > { %v2013_v19 = vadd.f32 %v6452_v17, %v2005_v18 }
0x10d2   : > { %7080 = vmatprep.mubr.msk.f32.mxu1 %vm599_vm0, %v2013_v19 }
0x10d3   : > { %7081 = vmatmul.mubr.msk.f32.vlgmr.msra.gmra.mxu1 %vm599_vm0, %v2014_v20 }
0x1193   : > { %v7082_v22 = vpop.f32.mrf.mxu1 }
0x1194   : > { %v2106_v23 = vadd.f32 %v7082_v22, %v6458_v21 }
0x1195   : > { %v2100_v24 = vpop.f32.mrf.mxu1 }
0x1196   : > { %2110 = vst.msk [vmem:[#allocation2 + $0x8] sm:$0x3f] %vm738_vm8, %v2106_v23  ;;  %v2101_v25 = vadd.f32 %v6458_v21, %v2100_v24 }
0x1198   : > { %2109 = vst.msk [vmem:[#allocation2] sm:$0xff] %vm736_vm9, %v2101_v25 }
0x119d   : > { %v2112_v26 = vld [vmem:[#allocation2 + $0x8] sm:$0x3f] }
0x119e   : > { %2117 = vrot.lane.b32.xlu0 %v2112_v26, %s9071_s28  ;;  %v8193_v4 = vld [vmem:[#allocation2 + $0x8] sm:$0x3f] }
0x119f   : > { %v8175_v27 = vld [vmem:[#allocation2] sm:$0xff]  ;;  %v8208_v28 = vld [vmem:[#allocation2 + $0x8] sm:$0x3f] }
0x11a0   : > { %2115 = vrot.lane.b32.xlu1 %v8175_v27, %s9071_s28  ;;  %7087 = vmatprep.mubr.msk.f32.mxu1 %vm748_vm10, %v8175_v27  ;;  %s9117_s28 = smov 8  }
0x1210   : > { %v2118_v29 = vpop.permute.xlu0 %2117 }
0x1211   : > { %7083 = vmatprep.subr.msk.mxu1 %vm748_vm10, %v2118_v29 }
0x1212   : > { %7084 = vmatpush3.xpose.msk.msra.mxu1 %vm748_vm10, %v2118_v29  ;;  %v2116_v31 = vpop.permute.xlu1 %2115 }
0x1213   : > { %7085 = vmatprep.subr.msk.mxu1 %vm748_vm10, %v2116_v31 }
0x1216   : > { %7086 = vmatpush3.xpose.msk.msra.mxu1 %vm748_vm10, %v2116_v31 }
0x1219   : > { %7088 = vmatmul.mubr.msk.f32.vlgmr.msra.gmra.mxu1 %vm748_vm10, %v2112_v26 }
0x12d9   : > { %v7089_v32 = vpop.f32.mrf.mxu1 }
0x12da   : > { %v2203_v33 = vmul.f32 0.35355338, %v7089_v32 }
0x12db   : > { %v2193_v34 = vpop.f32.mrf.mxu1 }
0x12dc   : > { %v2202_v35 = vmul.f32 0.35355338, %v2193_v34  ;;  %v2205_v36 = vadd.f32 %v2203_v33, %v7902_v58 }
0x12de   : > { %v2209_v5 = vsel %vm840_vm15, %v2205_v36, -inf  ;;  %v2204_v37 = vadd.f32 %v2202_v35, %v7905_v61 }
0x12df   : > { %2210 = vmax.xlane.f32.xlu0 %v2209_v5 }
0x12e0   : > { %v2206_v38 = vsel %vm836_vm1, %v2204_v37, -inf }
0x12e1   : > { %2207 = vmax.xlane.f32.xlu1 %v2206_v38 }
0x12f2   : > { %2228 = vrot.lane.b32.xlu1 %v8175_v27, %s9069_s30 }
0x12f5   : > { %2230 = vrot.lane.b32.xlu0 %v2112_v26, %s9069_s30  ;;  %s9104_s30 = smov 24  }
0x12f6   : > { %2328 = vrot.lane.b32.xlu1 %v8193_v4, %s9067_s29 }
0x12fa   : > { %2326 = vrot.lane.b32.xlu1 %v8175_v27, %s9067_s29  ;;  %s9118_s29 = smov 16  }
0x1368   : > { %v2211_v39 = vpop.xlane.xlu0 %2210 }
0x1369   : > { %v2213_v40 = vsub.f32 %v2205_v36, %v2211_v39 }
0x136a   : > { %v2208_v41 = vpop.xlane.xlu1 %2207 }
0x136b   : > { %v2216_v42 = vmul.f32 1.442695, %v2213_v40  ;;  %v2212_v43 = vsub.f32 %v2204_v37, %v2208_v41 }
0x136c   : > { %v2231_v44 = vpop.permute.xlu0 %2230 }
0x136d   : > { %7538 = vpow2.f32 %v2216_v42  ;;  %v2214_v45 = vmul.f32 1.442695, %v2212_v43  ;;  %7090 = vmatprep.subr.msk.mxu1 %vm871_vm3, %v2231_v44 }
0x136e   : > { %7091 = vmatpush3.msk.msra.mxu1 %vm871_vm3, %v2231_v44  ;;  %v2229_v47 = vpop.permute.xlu1 %2228 }
0x136f   : > { %7540 = vpow2.f32 %v2214_v45  ;;  %7092 = vmatprep.subr.mxu1 %v2229_v47 }
0x1370   : > { %7093 = vmatpush3.msra.mxu1 %v2229_v47 }
0x1372   : > { %v2329_v49 = vpop.permute.xlu1 %2328 }
0x1373   : > { %7097 = vmatprep.subr.msk.mxu1 %vm748_vm10, %v2329_v49 }
0x1376   : > { %v2327_v55 = vpop.permute.xlu1 %2326 }
0x137a   : > { %v7539_v50 = vpop.eup %7538 }
0x137b   : > { %v2221_v51 = vsel %vm840_vm15, %v7539_v50, 0.0 }
0x137c   : > { %v7541_v53 = vpop.eup %7540  ;;  %2222 = vadd.xlane.f32.xlu1 %v2221_v51 }
0x137d   : > { %v2218_v54 = vsel %vm836_vm1, %v7541_v53, 0.0 }
0x137e   : > { %2219 = vadd.xlane.f32.xlu0 %v2218_v54 }
0x138d   : > { %2322 = vrot.lane.b32.xlu1 %v8175_v27, %s9065_s0 }
0x1391   : > { %2545 = vrot.lane.b32.xlu1 %v8175_v27, %s9095_s18 }
0x1394   : > { %2547 = vrot.lane.b32.xlu0 %v8208_v28, %s9095_s18 }
0x1395   : > { %2543 = vrot.lane.b32.xlu1 %v8208_v28, %s9096_s19 }
0x1398   : > { %2324 = vrot.lane.b32.xlu0 %v8193_v4, %s9065_s0  ;;  %s9103_s0 = smov 16  }
0x139c   : > { %2541 = vrot.lane.b32.xlu0 %v8175_v27, %s9096_s19 }
0x1405   : > { %v2223_v56 = vpop.xlane.xlu1 %2222 }
0x1406   : > { %7542 = vrcp.f32 %v2223_v56 }
0x1407   : > { %v2220_v57 = vpop.xlane.xlu0 %2219 }
0x1408   : > { %7544 = vrcp.f32 %v2220_v57 }
0x1409   : > { %v2323_v30 = vpop.permute.xlu1 %2322 }
0x140b   : > { %v2548_v52 = vpop.permute.xlu0 %2547 }
0x140c   : > { %7111 = vmatprep.subr.msk.mxu0 %vm748_vm10, %v2548_v52 }
0x140d   : > { %7112 = vmatpush3.xpose.msk.msra.mxu0 %vm748_vm10, %v2548_v52  ;;  %v2546_v59 = vpop.permute.xlu1 %2545 }
0x140e   : > { %7113 = vmatprep.subr.msk.mxu0 %vm748_vm10, %v2546_v59 }
0x140f   : > { %v2325_v60 = vpop.permute.xlu0 %2324 }
0x1411   : > { %7114 = vmatpush3.xpose.msk.msra.mxu0 %vm748_vm10, %v2546_v59  ;;  %v2544_v0 = vpop.permute.xlu1 %2543 }
0x1413   : > { %v2542_v62 = vpop.permute.xlu0 %2541  ;;  %v7543_v63 = vpop.eup %7542 }
0x1414   : > { %7115 = vmatprep.mubr.msk.f32.mxu0 %vm748_vm10, %v2542_v62  ;;  %v2227_v1 = vmul.f32 %v7543_v63, %v7539_v50  ;;  %v8251_v50 = vld [vmem:[#allocation2 + $0x8] sm:$0x3f] }
0x1415   : > { %v7545_v2 = vpop.eup %7544  ;;  %7116 = vmatmul.mubr.msk.f32.vlgmr.msra.gmra.mxu0 %vm748_vm10, %v2544_v0 }
0x1416   : > { %v2226_v3 = vmul.f32 %v7545_v2, %v7541_v53 }
0x1418   : > { %7094 = vmatprep.mubr.msk.f32.mxu1 %vm836_vm1, %v2226_v3 }
0x1419   : > { %7095 = vmatmul.mubr.msk.f32.vlgmr.msra.gmra.mxu1 %vm836_vm1, %v2227_v1 }
0x141a   : > { %7098 = vmatpush3.xpose.msk.msra.mxu1 %vm748_vm10, %v2329_v49  ;;  %7101 = vmatprep.mubr.msk.f32.mxu1 %vm748_vm10, %v2323_v30 }
0x141b   : > { %7099 = vmatprep.subr.msk.mxu1 %vm748_vm10, %v2327_v55 }
0x141e   : > { %7100 = vmatpush3.xpose.msk.msra.mxu1 %vm748_vm10, %v2327_v55 }
0x1421   : > { %7102 = vmatmul.mubr.msk.f32.vlgmr.msra.gmra.mxu1 %vm748_vm10, %v2325_v60 }
0x14d5   : > { %v7117_v8 = vpop.f32.mrf.mxu0 }
0x14d6   : > { %v2633_v20 = vmul.f32 0.35355338, %v7117_v8 }
0x14d7   : > { %v2623_v9 = vpop.f32.mrf.mxu0 }
0x14d8   : > { %v2632_v13 = vmul.f32 0.35355338, %v2623_v9  ;;  %v2635_v24 = vadd.f32 %v2633_v20, %v7902_v58 }
0x14d9   : > { %v7096_v6 = vpop.f32.mrf.mxu1 }
0x14da   : > { %2317 = vst.msk [vmem:[#allocation3 + $0x8] sm:$0x3f] %vm950_vm4, %v7096_v6  ;;  %v2634_v22 = vadd.f32 %v2632_v13, %v7905_v61  ;;  %v2639_v25 = vsel %vm840_vm15, %v2635_v24, -inf }
0x14db   : > { %v2307_v7 = vpop.f32.mrf.mxu1 }
0x14dc   : > { %2316 = vst.msk [vmem:[#allocation3] sm:$0xff] %vm748_vm10, %v2307_v7  ;;  %v2636_v23 = vsel %vm836_vm1, %v2634_v22, -inf }
0x14e1   : > { %v7103_v10 = vpop.f32.mrf.mxu1 }
0x14e2   : > { %v2414_v11 = vmul.f32 0.35355338, %v7103_v10 }
0x14e3   : > { %v2404_v12 = vpop.f32.mrf.mxu1 }
0x14e4   : > { %v2413_v16 = vmul.f32 0.35355338, %v2404_v12  ;;  %v2416_v17 = vadd.f32 %v2414_v11, %v7902_v58 }
0x14e6   : > { %v2420_v18 = vsel %vm840_vm15, %v2416_v17, -inf  ;;  %v2415_v19 = vadd.f32 %v2413_v16, %v7905_v61 }
0x14e7   : > { %2421 = vmax.xlane.f32.xlu1 %v2420_v18 }
0x14e8   : > { %v2417_v21 = vsel %vm836_vm1, %v2415_v19, -inf }
0x14e9   : > { %2418 = vmax.xlane.f32.xlu0 %v2417_v21 }
0x14ed   : > { %2637 = vmax.xlane.f32.xlu0 %v2636_v23 }
0x14f1   : > { %2640 = vmax.xlane.f32.xlu0 %v2639_v25 }
0x1570   : > { %v2422_v31 = vpop.xlane.xlu1 %2421 }
0x1571   : > { %v2424_v34 = vsub.f32 %v2416_v17, %v2422_v31 }
0x1572   : > { %v2419_v26 = vpop.xlane.xlu0 %2418 }
0x1573   : > { %v2423_v29 = vsub.f32 %v2415_v19, %v2419_v26  ;;  %v2427_v38 = vmul.f32 1.442695, %v2424_v34 }
0x1575   : > { %v2425_v35 = vmul.f32 1.442695, %v2423_v29 }
0x1576   : > { %v2638_v32 = vpop.xlane.xlu0 %2637 }
0x1577   : > { %v2642_v33 = vsub.f32 %v2634_v22, %v2638_v32 }
0x1579   : > { %v2644_v36 = vmul.f32 1.442695, %v2642_v33 }
0x157a   : > { %v2641_v5 = vpop.xlane.xlu0 %2640 }
0x157b   : > { %7546 = vpow2.f32 %v2644_v36  ;;  %v2643_v37 = vsub.f32 %v2635_v24, %v2641_v5 }
0x157c   : > { %7548 = vpow2.f32 %v2425_v35 }
0x157d   : > { %v2646_v39 = vmul.f32 1.442695, %v2643_v37 }
0x157f   : > { %7550 = vpow2.f32 %v2646_v39 }
0x1580   : > { %7552 = vpow2.f32 %v2427_v38 }
0x1588   : > { %v7547_v40 = vpop.eup %7546 }
0x1589   : > { %v2648_v41 = vsel %vm836_vm1, %v7547_v40, 0.0  ;;  %v7549_v42 = vpop.eup %7548 }
0x158a   : > { %2649 = vadd.xlane.f32.xlu0 %v2648_v41  ;;  %v2429_v44 = vsel %vm836_vm1, %v7549_v42, 0.0 }
0x158c   : > { %v7551_v43 = vpop.eup %7550 }
0x158d   : > { %v2651_v45 = vsel %vm840_vm15, %v7551_v43, 0.0  ;;  %v7553_v47 = vpop.eup %7552 }
0x158e   : > { %2430 = vadd.xlane.f32.xlu0 %v2429_v44  ;;  %2652 = vadd.xlane.f32.xlu1 %v2651_v45  ;;  %v2432_v49 = vsel %vm840_vm15, %v7553_v47, 0.0  ;;  %v6491_v44 = vld [vmem:[%s9032_s6 + $0x30] sm:$0xff]  ;;  %v6490_v45 = vld [vmem:[%s9032_s6 + $0x28] sm:$0xff] }
0x1592   : > { %2433 = vadd.xlane.f32.xlu1 %v2432_v49 }
0x15a3   : > { %2439 = vrot.lane.b32.xlu1 %v8175_v27, %s9097_s1 }
0x15a4   : > { %2441 = vrot.lane.b32.xlu0 %v8193_v4, %s9097_s1 }
0x15a7   : > { %2660 = vrot.lane.b32.xlu1 %v8208_v28, %s9098_s21 }
0x15a8   : > { %2766 = vrot.lane.b32.xlu0 %v8251_v50, %s9099_s22 }
0x15ab   : > { %2658 = vrot.lane.b32.xlu1 %v8175_v27, %s9098_s21 }
0x15ac   : > { %2760 = vrot.lane.b32.xlu0 %v8175_v27, %s9100_s23 }
0x15af   : > { %2764 = vrot.lane.b32.xlu1 %v8175_v27, %s9099_s22 }
0x15b3   : > { %2762 = vrot.lane.b32.xlu1 %v8251_v50, %s9100_s23  ;;  %s9112_s23 = smov 64  }
0x1613   : > { %v2650_v4 = vpop.xlane.xlu0 %2649 }
0x1617   : > { %v2431_v51 = vpop.xlane.xlu0 %2430  ;;  %v2653_v53 = vpop.xlane.xlu1 %2652 }
0x1618   : > { %7554 = vrcp.f32 %v2431_v51 }
0x1619   : > { %7556 = vrcp.f32 %v2650_v4 }
0x161b   : > { %v2442_v54 = vpop.permute.xlu0 %2441  ;;  %v2434_v28 = vpop.xlane.xlu1 %2433 }
0x161c   : > { %7558 = vrcp.f32 %v2434_v28  ;;  %7104 = vmatprep.subr.msk.mxu1 %vm871_vm3, %v2442_v54 }
0x161d   : > { %7105 = vmatpush3.msk.msra.mxu1 %vm871_vm3, %v2442_v54  ;;  %7560 = vrcp.f32 %v2653_v53 }
0x161f   : > { %v2440_v55 = vpop.permute.xlu1 %2439  ;;  %v2767_v60 = vpop.permute.xlu0 %2766 }
0x1620   : > { %7106 = vmatprep.subr.mxu1 %v2440_v55 }
0x1621   : > { %7107 = vmatpush3.msra.mxu1 %v2440_v55  ;;  %v6496_v55 = vld [vmem:[%s9094_s7 + $0x1] ss:$0 sm:$0xff]  ;;  %s9114_s7 = smov 120  }
0x1623   : > { %v2661_v56 = vpop.permute.xlu1 %2660  ;;  %v2761_v1 = vpop.permute.xlu0 %2760 }
0x1624   : > { %7118 = vmatprep.subr.msk.mxu1 %vm871_vm3, %v2661_v56 }
0x1625   : > { %v7555_v57 = vpop.eup %7554 }
0x1626   : > { %v2437_v30 = vmul.f32 %v7555_v57, %v7549_v42  ;;  %v7557_v52 = vpop.eup %7556 }
0x1627   : > { %v2659_v0 = vpop.permute.xlu1 %2658  ;;  %v2656_v2 = vmul.f32 %v7557_v52, %v7547_v40 }
0x1628   : > { %7108 = vmatprep.mubr.msk.f32.mxu1 %vm836_vm1, %v2437_v30 }
0x1629   : > { %v7559_v59 = vpop.eup %7558 }
0x162a   : > { %v2438_v62 = vmul.f32 %v7559_v59, %v7553_v47  ;;  %v7561_v63 = vpop.eup %7560  ;;  %v6489_v47 = vld [vmem:[%s9032_s6 + $0x20] sm:$0xff] }
0x162b   : > { %v2657_v3 = vmul.f32 %v7561_v63, %v7551_v43  ;;  %v2765_v6 = vpop.permute.xlu1 %2764  ;;  %v6492_v43 = vld [vmem:[%s9032_s6 + $0x38] sm:$0xff] }
0x162c   : > { %7109 = vmatmul.mubr.msk.f32.vlgmr.msra.gmra.mxu1 %vm836_vm1, %v2438_v62 }
0x162d   : > { %7119 = vmatpush3.msk.msra.mxu1 %vm871_vm3, %v2661_v56  ;;  %7122 = vmatprep.mubr.msk.f32.mxu1 %vm836_vm1, %v2656_v2 }
0x162e   : > { %7120 = vmatprep.subr.mxu1 %v2659_v0 }
0x162f   : > { %7121 = vmatpush3.msra.mxu1 %v2659_v0  ;;  %v2763_v7 = vpop.permute.xlu1 %2762 }
0x1630   : > { %7125 = vmatprep.subr.msk.mxu1 %vm748_vm10, %v2767_v60  ;;  %7123 = vmatmul.mubr.msk.f32.vlgmr.msra.gmra.mxu1 %vm836_vm1, %v2657_v3 }
0x1631   : > { %7126 = vmatpush3.xpose.msk.msra.mxu1 %vm748_vm10, %v2767_v60  ;;  %7129 = vmatprep.mubr.msk.f32.mxu1 %vm748_vm10, %v2761_v1 }
0x1632   : > { %7127 = vmatprep.subr.msk.mxu1 %vm748_vm10, %v2765_v6 }
0x1635   : > { %7128 = vmatpush3.xpose.msk.msra.mxu1 %vm748_vm10, %v2765_v6 }
0x1638   : > { %7130 = vmatmul.mubr.msk.f32.vlgmr.msra.gmra.mxu1 %vm748_vm10, %v2763_v7 }
0x16ec   : > { %v7110_v8 = vpop.f32.mrf.mxu1 }
0x16ee   : > { %v2518_v9 = vpop.f32.mrf.mxu1 }
0x16f0   : > { %v7124_v10 = vpop.f32.mrf.mxu1 }
0x16f2   : > { %v2737_v11 = vpop.f32.mrf.mxu1 }
0x16f8   : > { %v7131_v12 = vpop.f32.mrf.mxu1 }
0x16f9   : > { %v2852_v13 = vmul.f32 0.35355338, %v7131_v12  ;;  %v6501_v12 = vld [vmem:[%s9036_s10 + $0x20] sm:$0xff] }
0x16fa   : > { %v2842_v16 = vpop.f32.mrf.mxu1 }
0x16fb   : > { %v2851_v17 = vmul.f32 0.35355338, %v2842_v16  ;;  %v2854_v18 = vadd.f32 %v2852_v13, %v7902_v58 }
0x16fd   : > { %v2858_v19 = vsel %vm840_vm15, %v2854_v18, -inf  ;;  %v2853_v20 = vadd.f32 %v2851_v17, %v7905_v61 }
0x16fe   : > { %2859 = vmax.xlane.f32.xlu1 %v2858_v19 }
0x16ff   : > { %v2855_v21 = vsel %vm836_vm1, %v2853_v20, -inf }
0x1700   : > { %2856 = vmax.xlane.f32.xlu0 %v2855_v21 }
0x170f   : > { %2877 = vrot.lane.b32.xlu1 %v8175_v27, %s9101_s27 }
0x1713   : > { %2529 = vrot.lane.b32.xlu1 %v2518_v9, %s9102_s25  ;;  %v6504_v9 = vld [vmem:[%s9036_s10 + $0x38] sm:$0xff] }
0x1714   : > { %7150 = vmatprep.subr.mxu1 %v6504_v9 }
0x1715   : > { %7151 = vmatpush3.msra.mxu1 %v6504_v9  ;;  %v6526_v9 = vld [vmem:[%s9039_s13 + $0x1] ss:$0 sm:$0xff] }
0x1717   : > { %2531 = vrot.lane.b32.xlu1 %v7110_v8, %s9102_s25  ;;  %s9108_s25 = sshll.u32 %s9129_s26, 4  ;;  %s9111_s26 = smov 96  }
0x171b   : > { %2750 = vrot.lane.b32.xlu1 %v7124_v10, %s9103_s0  ;;  %v6503_v10 = vld [vmem:[%s9036_s10 + $0x30] sm:$0xff] }
0x171c   : > { %7152 = vmatprep.subr.mxu1 %v6503_v10 }
0x171d   : > { %7153 = vmatpush3.msra.mxu1 %v6503_v10 }
0x1787   : > { %v2860_v22 = vpop.xlane.xlu1 %2859 }
0x1788   : > { %v2862_v23 = vsub.f32 %v2854_v18, %v2860_v22  ;;  %v6499_v22 = vld [vmem:[%s9034_s8 + $0x1] ss:$0 sm:$0xff] }
0x1789   : > { %v2857_v58 = vpop.xlane.xlu0 %2856 }
0x178a   : > { %v2865_v24 = vmul.f32 1.442695, %v2862_v23  ;;  %v2861_v25 = vsub.f32 %v2853_v20, %v2857_v58  ;;  %v6500_v58 = vld [vmem:[%s9035_s9 + $0x1] ss:$0 sm:$0xff] }
0x178b   : > { %v2878_v26 = vpop.permute.xlu1 %2877 }
0x178c   : > { %7562 = vpow2.f32 %v2865_v24  ;;  %v2863_v61 = vmul.f32 1.442695, %v2861_v25 }
0x178e   : > { %7564 = vpow2.f32 %v2863_v61 }
0x178f   : > { %v2530_v29 = vpop.permute.xlu1 %2529 }
0x1790   : > { %2535 = vst.msk [vmem:[#allocation3] sm:$0xff] %vm1169_vm5, %v2530_v29 }
0x1793   : > { %v2532_v31 = vpop.permute.xlu1 %2531 }
0x1794   : > { %2536 = vst.msk [vmem:[#allocation3 + $0x8] sm:$0x3f] %vm1171_vm6, %v2532_v31 }
0x1797   : > { %v2751_v27 = vpop.permute.xlu1 %2750 }
0x1798   : > { %2755 = vst.msk [vmem:[#allocation3 + $0x8] sm:$0x3f] %vm1392_vm7, %v2751_v27  ;;  %v6524_v27 = vld [vmem:[%s9038_s12 + $0xf8] sm:$0xff] }
0x1799   : > { %v7563_v32 = vpop.eup %7562 }
0x179a   : > { %v2870_v33 = vsel %vm840_vm15, %v7563_v32, 0.0 }
0x179b   : > { %v7565_v34 = vpop.eup %7564  ;;  %2871 = vadd.xlane.f32.xlu0 %v2870_v33  ;;  %v6522_v33 = vld [vmem:[%s9038_s12 + $0xe8] sm:$0xff] }
0x179c   : > { %v2867_v35 = vsel %vm836_vm1, %v7565_v34, 0.0 }
0x179f   : > { %2868 = vadd.xlane.f32.xlu0 %v2867_v35  ;;  %v6520_v35 = vld [vmem:[%s9038_s12 + $0xd8] sm:$0xff] }
0x17b5   : > { %2879 = vrot.lane.b32.xlu0 %v8251_v50, %s9101_s27  ;;  %s9113_s27 = smov 88  }
0x17b9   : > { %2748 = vrot.lane.b32.xlu0 %v2737_v11, %s9103_s0  ;;  %v6502_v11 = vld [vmem:[%s9036_s10 + $0x28] sm:$0xff] }
0x17ba   : > { %7154 = vmatprep.subr.mxu1 %v6502_v11 }
0x17bb   : > { %7155 = vmatpush3.msra.mxu1 %v6502_v11 }
0x17bc   : > { %7156 = vmatprep.subr.mxu1 %v6501_v12 }
0x17bd   : > { %7157 = vmatpush3.msra.mxu1 %v6501_v12 }
0x1824   : > { %v2872_v36 = vpop.xlane.xlu0 %2871 }
0x1825   : > { %7566 = vrcp.f32 %v2872_v36  ;;  %v6519_v36 = vld [vmem:[%s9038_s12 + $0xd0] sm:$0xff] }
0x1828   : > { %v2869_v5 = vpop.xlane.xlu0 %2868 }
0x1829   : > { %7568 = vrcp.f32 %v2869_v5  ;;  %v6518_v5 = vld [vmem:[%s9038_s12 + $0xc8] sm:$0xff] }
0x182c   : > { %v2880_v37 = vpop.permute.xlu0 %2879 }
0x182d   : > { %7132 = vmatprep.subr.msk.mxu0 %vm871_vm3, %v2880_v37 }
0x182e   : > { %7133 = vmatpush3.msk.msra.mxu0 %vm871_vm3, %v2880_v37  ;;  %v6517_v37 = vld [vmem:[%s9038_s12 + $0xc0] sm:$0xff] }
0x182f   : > { %7134 = vmatprep.subr.mxu0 %v2878_v26 }
0x1830   : > { %7135 = vmatpush3.msra.mxu0 %v2878_v26  ;;  %v2749_v38 = vpop.permute.xlu0 %2748 }
0x1831   : > { %2754 = vst.msk [vmem:[#allocation3] sm:$0xff] %vm1390_vm11, %v2749_v38  ;;  %7139 = vmatprep.subr.mxu0 %v6492_v43  ;;  %v6516_v38 = vld [vmem:[%s9038_s12 + $0xb8] sm:$0xff] }
0x1832   : > { %v7567_v39 = vpop.eup %7566 }
0x1833   : > { %v2876_v42 = vmul.f32 %v7567_v39, %v7563_v32  ;;  %v6523_v32 = vld [vmem:[%s9038_s12 + $0xf0] sm:$0xff] }
0x1834   : > { %v6515_v39 = vld [vmem:[%s9038_s12 + $0xb0] sm:$0xff] }
0x1836   : > { %v7569_v40 = vpop.eup %7568 }
0x1837   : > { %v2875_v41 = vmul.f32 %v7569_v40, %v7565_v34  ;;  %v6521_v34 = vld [vmem:[%s9038_s12 + $0xe0] sm:$0xff]  ;;  %v6514_v40 = vld [vmem:[%s9038_s12 + $0xa8] sm:$0xff] }
0x1839   : > { %7136 = vmatprep.mubr.msk.f32.mxu0 %vm836_vm1, %v2875_v41  ;;  %v6513_v41 = vld [vmem:[%s9038_s12 + $0xa0] sm:$0xff] }
0x183a   : > { %7137 = vmatmul.mubr.msk.f32.vlgmr.msra.gmra.mxu0 %vm836_vm1, %v2876_v42  ;;  %v6512_v42 = vld [vmem:[%s9038_s12 + $0x98] sm:$0xff] }
0x183b   : > { %7140 = vmatpush3.msra.mxu0 %v6492_v43  ;;  %v6511_v43 = vld [vmem:[%s9038_s12 + $0x90] sm:$0xff] }
0x183c   : > { %7141 = vmatprep.subr.mxu0 %v6491_v44 }
0x183d   : > { %7142 = vmatpush3.msra.mxu0 %v6491_v44  ;;  %v6510_v44 = vld [vmem:[%s9038_s12 + $0x88] sm:$0xff] }
0x183e   : > { %7143 = vmatprep.subr.mxu0 %v6490_v45 }
0x183f   : > { %7144 = vmatpush3.msra.mxu0 %v6490_v45  ;;  %v6509_v45 = vld [vmem:[%s9038_s12 + $0x80] sm:$0xff] }
0x1840   : > { %7145 = vmatprep.subr.mxu0 %v6489_v47 }
0x1841   : > { %7146 = vmatpush3.msra.mxu0 %v6489_v47  ;;  %v6506_v47 = vld [vmem:[%s9037_s11 + $0x1] ss:$0 sm:$0xff] }
0x1842   : > { %7161 = vmatprep.subr.mxu0 %v6524_v27 }
0x18fa   : > { %v7138_v49 = vpop.f32.mrf.mxu0 }
0x18fb   : > { %2969 = vrot.lane.b32.xlu1 %v7138_v49, %s9104_s30 }
0x18fc   : > { %v2956_v50 = vpop.f32.mrf.mxu0 }
0x18fd   : > { %2967 = vrot.lane.b32.xlu0 %v2956_v50, %s9104_s30 }
0x196d   : > { %v2970_v4 = vpop.permute.xlu1 %2969 }
0x196e   : > { %2974 = vst.msk [vmem:[#allocation3 + $0x8] sm:$0x3f] %vm1613_vm12, %v2970_v4 }
0x196f   : > { %v2968_v51 = vpop.permute.xlu0 %2967 }
0x1970   : > { %2973 = vst.msk [vmem:[#allocation3] sm:$0xff] %vm1611_vm13, %v2968_v51 }
0x1975   : > { %v2976_v54 = vld [vmem:[#allocation3 + $0x8] sm:$0x3f] }
0x1977   : > { %v2975_v53 = vld [vmem:[#allocation3] sm:$0xff] }
0x1978   : > { %7147 = vmatprep.mubr.msk.f32.mxu0 %vm599_vm0, %v2975_v53 }
0x1979   : > { %7148 = vmatmul.mubr.msk.f32.vlgmr.msra.gmra.mxu0 %vm599_vm0, %v2976_v54 }
0x197a   : > { %7162 = vmatpush3.msra.mxu0 %v6524_v27 }
0x197b   : > { %7163 = vmatprep.subr.mxu0 %v6523_v32 }
0x197c   : > { %7164 = vmatpush3.msra.mxu0 %v6523_v32 }
0x197d   : > { %7165 = vmatprep.subr.mxu0 %v6522_v33 }
0x197e   : > { %7166 = vmatpush3.msra.mxu0 %v6522_v33 }
0x197f   : > { %7167 = vmatprep.subr.mxu0 %v6521_v34 }
0x1980   : > { %7168 = vmatpush3.msra.mxu0 %v6521_v34 }
0x1981   : > { %7169 = vmatprep.subr.mxu0 %v6520_v35 }
0x1982   : > { %7170 = vmatpush3.msra.mxu0 %v6520_v35 }
0x1983   : > { %7171 = vmatprep.subr.mxu0 %v6519_v36 }
0x1984   : > { %7172 = vmatpush3.msra.mxu0 %v6519_v36 }
0x1985   : > { %7173 = vmatprep.subr.mxu0 %v6518_v5 }
0x1986   : > { %7174 = vmatpush3.msra.mxu0 %v6518_v5 }
0x1987   : > { %7175 = vmatprep.subr.mxu0 %v6517_v37 }
0x1988   : > { %7176 = vmatpush3.msra.mxu0 %v6517_v37 }
0x1989   : > { %7177 = vmatprep.subr.mxu0 %v6516_v38 }
0x198a   : > { %7178 = vmatpush3.msra.mxu0 %v6516_v38 }
0x198b   : > { %7179 = vmatprep.subr.mxu0 %v6515_v39 }
0x198c   : > { %7180 = vmatpush3.msra.mxu0 %v6515_v39 }
0x198d   : > { %7181 = vmatprep.subr.mxu0 %v6514_v40 }
0x198e   : > { %7182 = vmatpush3.msra.mxu0 %v6514_v40  ;;  %v3384_v40 = vld [vmem:[%s9105_s16 + $0x18] sm:$0xff] }
0x198f   : > { %7183 = vmatprep.subr.mxu0 %v6513_v41  ;;  %7196 = vmatprep.subr.mxu1 %v3384_v40 }
0x1990   : > { %7184 = vmatpush3.msra.mxu0 %v6513_v41  ;;  %v3383_v41 = vld [vmem:[%s9105_s16 + $0x10] sm:$0xff] }
0x1991   : > { %7185 = vmatprep.subr.mxu0 %v6512_v42 }
0x1992   : > { %7186 = vmatpush3.msra.mxu0 %v6512_v42  ;;  %v3382_v42 = vld [vmem:[%s9105_s16 + $0x8] sm:$0xff] }
0x1993   : > { %7187 = vmatprep.subr.mxu0 %v6511_v43 }
0x1994   : > { %7188 = vmatpush3.msra.mxu0 %v6511_v43  ;;  %v3381_v43 = vld [vmem:[%s9105_s16] sm:$0xff]  ;;  %s9119_s16 = sld [smem:[#allocation8_spill]] }
0x1995   : > { %7189 = vmatprep.subr.mxu0 %v6510_v44 }
0x1996   : > { %7190 = vmatpush3.msra.mxu0 %v6510_v44  ;;  %v3531_v44 = vld [vmem:[%s9030_s4 + $0x18] sm:$0xff] }
0x1997   : > { %7191 = vmatprep.subr.mxu0 %v6509_v45 }
0x1998   : > { %7192 = vmatpush3.msra.mxu0 %v6509_v45 }
0x1a39   : > { %v7149_v28 = vpop.f32.mrf.mxu0 }
0x1a3a   : > { %v3064_v56 = vadd.f32 %v7149_v28, %v8136_v46 }
0x1a3b   : > { %v3054_v57 = vpop.f32.mrf.mxu0 }
0x1a3c   : > { %v8321_v30 = vadd.f32 %v6496_v55, %v3064_v56  ;;  %v3063_v52 = vadd.f32 %v3054_v57, %v8139_v48 }
0x1a3e   : > { %v8324_v59 = vadd.f32 %v6496_v55, %v3063_v52  ;;  %v3082_v60 = vsel %vm603_vm2, %v8321_v30, 0.0 }
0x1a3f   : > { %3083 = vadd.xlane.f32.xlu1 %v3082_v60 }
0x1a40   : > { %v3079_v62 = vsel %vm599_vm0, %v8324_v59, 0.0 }
0x1a41   : > { %3080 = vadd.xlane.f32.xlu0 %v3079_v62 }
0x1ac8   : > { %v3084_v63 = vpop.xlane.xlu1 %3083 }
0x1ac9   : > { %v3086_v0 = vmul.f32 0.03125, %v3084_v63 }
0x1aca   : > { %v3081_v2 = vpop.xlane.xlu0 %3080 }
0x1acb   : > { %v3085_v3 = vmul.f32 0.03125, %v3081_v2  ;;  %v3088_v46 = vsub.f32 %v8321_v30, %v3086_v0 }
0x1acd   : > { %v3087_v1 = vsub.f32 %v8324_v59, %v3085_v3  ;;  %v3090_v7 = vmul.f32 %v3088_v46, %v3088_v46 }
0x1acf   : > { %v3089_v6 = vmul.f32 %v3087_v1, %v3087_v1  ;;  %v3094_v8 = vsel %vm603_vm2, %v3090_v7, 0.0 }
0x1ad1   : > { %v3091_v48 = vsel %vm599_vm0, %v3089_v6, 0.0 }
0x1ad2   : > { %3092 = vadd.xlane.f32.xlu0 %v3091_v48 }
0x1ad6   : > { %3095 = vadd.xlane.f32.xlu0 %v3094_v8 }
0x1b5b   : > { %v3093_v13 = vpop.xlane.xlu0 %3092 }
0x1b5c   : > { %v3097_v16 = vmul.f32 0.03125, %v3093_v13 }
0x1b5e   : > { %v3099_v17 = vadd.f32 1e-05, %v3097_v16  ;;  %v8411_v16 = vld [vmem:[%s7812_s20 + $0x18] sm:$0x3f] }
0x1b5f   : > { %v3096_v18 = vpop.xlane.xlu0 %3095 }
0x1b60   : > { %7570 = vrsqrt.f32 %v3099_v17  ;;  %v3098_v19 = vmul.f32 0.03125, %v3096_v18 }
0x1b62   : > { %v3100_v20 = vadd.f32 1e-05, %v3098_v19  ;;  %v8415_v19 = vld [vmem:[%s7812_s20 + $0x10] sm:$0xff]  ;;  %s8473_s20 = scalar_lea.vmem %s9109_s17, %s9108_s25  ;;  %s9115_s25 = smov 104  }
0x1b63   : > { %9110 = sst [smem:[#allocation5_spill]] %s8473_s20 }
0x1b64   : > { %7572 = vrsqrt.f32 %v3100_v20 }
0x1b6d   : > { %v7571_v21 = vpop.eup %7570 }
0x1b6e   : > { %v3103_v23 = vmul.f32 %v7571_v21, %v3087_v1  ;;  %v3489_v21 = vsel %vm603_vm2, %v8411_v16, 0.0 }
0x1b70   : > { %v3111_v24 = vmul.f32 %v6499_v22, %v3103_v23 }
0x1b71   : > { %v7573_v25 = vpop.eup %7572 }
0x1b72   : > { %v3104_v26 = vmul.f32 %v7573_v25, %v3088_v46  ;;  %v3119_v61 = vadd.f32 %v6500_v58, %v3111_v24 }
0x1b74   : > { %v3112_v29 = vmul.f32 %v6499_v22, %v3104_v26  ;;  %7158 = vmatprep.mubr.msk.f32.mxu1 %vm599_vm0, %v3119_v61 }
0x1b76   : > { %v3120_v31 = vadd.f32 %v6500_v58, %v3112_v29 }
0x1b78   : > { %7159 = vmatmul.mubr.msk.f32.vlgmr.msra.gmra.mxu1 %vm599_vm0, %v3120_v31 }
0x1b79   : > { %7197 = vmatpush3.msra.mxu1 %v3384_v40 }
0x1b7a   : > { %7198 = vmatprep.subr.mxu1 %v3383_v41 }
0x1b7b   : > { %7199 = vmatpush3.msra.mxu1 %v3383_v41 }
0x1b7c   : > { %7200 = vmatprep.subr.mxu1 %v3382_v42 }
0x1b7d   : > { %7201 = vmatpush3.msra.mxu1 %v3382_v42 }
0x1b7e   : > { %7202 = vmatprep.subr.mxu1 %v3381_v43 }
0x1b7f   : > { %7203 = vmatpush3.msra.mxu1 %v3381_v43 }
0x1b80   : > { %7207 = vmatprep.subr.mxu1 %v3531_v44 }
0x1c38   : > { %v7160_v49 = vpop.f32.mrf.mxu1 }
0x1c39   : > { %v3212_v50 = vadd.f32 %v7160_v49, %v6506_v47 }
0x1c3a   : > { %v3206_v4 = vpop.f32.mrf.mxu1 }
0x1c3b   : > { %v3218_v51 = vmul.f32 0.044715, %v3212_v50  ;;  %v3207_v53 = vadd.f32 %v6506_v47, %v3206_v4  ;;  %v3216_v6 = vmul.f32 0.5, %v3212_v50 }
0x1c3d   : > { %v3220_v54 = vmul.f32 %v3218_v51, %v3212_v50  ;;  %v3217_v28 = vmul.f32 0.044715, %v3207_v53  ;;  %v3215_v46 = vmul.f32 0.5, %v3207_v53 }
0x1c3f   : > { %v3222_v55 = vmul.f32 %v3220_v54, %v3212_v50  ;;  %v3219_v56 = vmul.f32 %v3217_v28, %v3207_v53 }
0x1c41   : > { %v3224_v57 = vadd.f32 %v3222_v55, %v3212_v50  ;;  %v3221_v52 = vmul.f32 %v3219_v56, %v3207_v53 }
0x1c43   : > { %v3223_v60 = vadd.f32 %v3221_v52, %v3207_v53  ;;  %v3226_v62 = vmul.f32 0.7978846, %v3224_v57 }
0x1c45   : > { %v3225_v63 = vmul.f32 0.7978846, %v3223_v60  ;;  %7574 = vtanh.f32 %v3226_v62  ;;  %v6527_v60 = vld [vmem:[%s9106_s14] ss:$0 sm:$0xff] }
0x1c47   : > { %7576 = vtanh.f32 %v3225_v63 }
0x1c52   : > { %v7575_v0 = vpop.eup %7574 }
0x1c53   : > { %v3230_v3 = vadd.f32 1.0, %v7575_v0 }
0x1c54   : > { %v7577_v2 = vpop.eup %7576 }
0x1c55   : > { %v3229_v1 = vadd.f32 1.0, %v7577_v2  ;;  %v3232_v7 = vmul.f32 %v3230_v3, %v3216_v6 }
0x1c57   : > { %v3231_v48 = vmul.f32 %v3229_v1, %v3215_v46  ;;  %v6528_v46 = vld [vmem:[%s9107_s15] ss:$0 sm:$0xff]  ;;  %s9122_s15 = sld [smem:[#allocation8_spill]] }
0x1c59   : > { %7193 = vmatprep.mubr.f32.mxu0 %v3231_v48 }
0x1c5a   : > { %7194 = vmatmul.mubr.f32.vlgmr.msra.gmra.mxu0 %v3232_v7 }
0x1d1a   : > { %v7195_v8 = vpop.f32.mrf.mxu0 }
0x1d1b   : > { %v3326_v10 = vadd.f32 %v7195_v8, %v8321_v30  ;;  %v3486_v30 = vsel %vm599_vm0, %v8415_v19, 0.0 }
0x1d1c   : > { %v3316_v11 = vpop.f32.mrf.mxu0 }
0x1d1d   : > { %v3336_v12 = vadd.f32 %v6526_v9, %v3326_v10  ;;  %v3325_v13 = vadd.f32 %v3316_v11, %v8324_v59  ;;  %v3530_v11 = vld [vmem:[%s9030_s4 + $0x10] sm:$0xff] }
0x1d1f   : > { %v3335_v17 = vadd.f32 %v6526_v9, %v3325_v13  ;;  %v3342_v18 = vsel %vm603_vm2, %v3336_v12, 0.0  ;;  %v6534_v9 = vld [vmem:[%s9028_s2] ss:$0 sm:$0xff] }
0x1d20   : > { %3343 = vadd.xlane.f32.xlu1 %v3342_v18  ;;  %v6535_v13 = vld [vmem:[%s9029_s3] ss:$0 sm:$0xff] }
0x1d21   : > { %v3339_v20 = vsel %vm599_vm0, %v3335_v17, 0.0 }
0x1d22   : > { %3340 = vadd.xlane.f32.xlu0 %v3339_v20 }
0x1d24   : > { %3490 = vadd.xlane.f32.xlu1 %v3489_v21  ;;  %v3528_v21 = vld [vmem:[%s9030_s4] sm:$0xff] }
0x1d26   : > { %3487 = vadd.xlane.f32.xlu0 %v3486_v30 }
0x1da9   : > { %v3344_v59 = vpop.xlane.xlu1 %3343 }
0x1daa   : > { %v3346_v22 = vmul.f32 0.03125, %v3344_v59 }
0x1dab   : > { %v3341_v23 = vpop.xlane.xlu0 %3340 }
0x1dac   : > { %v3348_v58 = vsub.f32 %v3336_v12, %v3346_v22  ;;  %v3345_v24 = vmul.f32 0.03125, %v3341_v23  ;;  %v6536_v23 = vld [vmem:[%s9031_s5] ss:$0 sm:$0xff] }
0x1dad   : > { %v3491_v25 = vpop.xlane.xlu1 %3490 }
0x1dae   : > { %v3347_v26 = vsub.f32 %v3335_v17, %v3345_v24  ;;  %v3493_v61 = vmul.f32 0.03125, %v3491_v25  ;;  %v3350_v29 = vmul.f32 %v3348_v58, %v3348_v58  ;;  %v3529_v17 = vld [vmem:[%s9030_s4 + $0x8] sm:$0xff] }
0x1daf   : > { %v3488_v31 = vpop.xlane.xlu0 %3487 }
0x1db0   : > { %v3495_v27 = vsub.f32 %v8411_v16, %v3493_v61  ;;  %v3492_v32 = vmul.f32 0.03125, %v3488_v31  ;;  %v3354_v33 = vsel %vm603_vm2, %v3350_v29, 0.0  ;;  %v3349_v34 = vmul.f32 %v3347_v26, %v3347_v26 }
0x1db1   : > { %3355 = vadd.xlane.f32.xlu1 %v3354_v33 }
0x1db2   : > { %v3494_v35 = vsub.f32 %v8415_v19, %v3492_v32  ;;  %v3351_v36 = vsel %vm599_vm0, %v3349_v34, 0.0  ;;  %v3497_v5 = vmul.f32 %v3495_v27, %v3495_v27 }
0x1db3   : > { %3352 = vadd.xlane.f32.xlu0 %v3351_v36 }
0x1db4   : > { %v3501_v37 = vsel %vm603_vm2, %v3497_v5, 0.0  ;;  %v3496_v38 = vmul.f32 %v3494_v35, %v3494_v35 }
0x1db5   : > { %3502 = vadd.xlane.f32.xlu1 %v3501_v37 }
0x1db6   : > { %v3498_v39 = vsel %vm599_vm0, %v3496_v38, 0.0 }
0x1db7   : > { %3499 = vadd.xlane.f32.xlu0 %v3498_v39 }
0x1e3a   : > { %v3356_v45 = vpop.xlane.xlu1 %3355 }
0x1e3b   : > { %v3358_v47 = vmul.f32 0.03125, %v3356_v45 }
0x1e3c   : > { %v3353_v49 = vpop.xlane.xlu0 %3352 }
0x1e3d   : > { %v3360_v50 = vadd.f32 1e-05, %v3358_v47  ;;  %v3357_v4 = vmul.f32 0.03125, %v3353_v49 }
0x1e3e   : > { %v3503_v51 = vpop.xlane.xlu1 %3502 }
0x1e3f   : > { %7578 = vrsqrt.f32 %v3360_v50  ;;  %v3359_v53 = vadd.f32 1e-05, %v3357_v4  ;;  %v3505_v54 = vmul.f32 0.03125, %v3503_v51 }
0x1e40   : > { %v3500_v28 = vpop.xlane.xlu0 %3499 }
0x1e41   : > { %7580 = vrsqrt.f32 %v3359_v53  ;;  %v3507_v55 = vadd.f32 1e-05, %v3505_v54  ;;  %v3504_v56 = vmul.f32 0.03125, %v3500_v28 }
0x1e43   : > { %v3506_v57 = vadd.f32 1e-05, %v3504_v56  ;;  %7582 = vrsqrt.f32 %v3507_v55 }
0x1e45   : > { %7584 = vrsqrt.f32 %v3506_v57 }
0x1e4c   : > { %v7579_v52 = vpop.eup %7578 }
0x1e4d   : > { %v3364_v62 = vmul.f32 %v7579_v52, %v3348_v58 }
0x1e4e   : > { %v7581_v63 = vpop.eup %7580 }
0x1e4f   : > { %v3363_v0 = vmul.f32 %v7581_v63, %v3347_v26  ;;  %v3372_v2 = vmul.f32 %v6527_v60, %v3364_v62 }
0x1e50   : > { %v7583_v3 = vpop.eup %7582 }
0x1e51   : > { %v3371_v1 = vmul.f32 %v6527_v60, %v3363_v0  ;;  %v3380_v8 = vadd.f32 %v6528_v46, %v3372_v2  ;;  %v3511_v10 = vmul.f32 %v7583_v3, %v3495_v27 }
0x1e52   : > { %v7585_v6 = vpop.eup %7584 }
0x1e53   : > { %v3379_v48 = vadd.f32 %v6528_v46, %v3371_v1  ;;  %v3510_v7 = vmul.f32 %v7585_v6, %v3494_v35  ;;  %v3519_v20 = vmul.f32 %v6534_v9, %v3511_v10 }
0x1e55   : > { %7204 = vmatprep.mubr.msk.f32.mxu1 %vm599_vm0, %v3379_v48  ;;  %v3518_v12 = vmul.f32 %v6534_v9, %v3510_v7  ;;  %v3527_v30 = vadd.f32 %v6535_v13, %v3519_v20 }
0x1e56   : > { %7205 = vmatmul.mubr.msk.f32.vlgmr.msra.gmra.mxu1 %vm599_vm0, %v3380_v8 }
0x1e57   : > { %7208 = vmatpush3.msra.mxu1 %v3531_v44  ;;  %v3526_v18 = vadd.f32 %v6535_v13, %v3518_v12 }
0x1e58   : > { %7209 = vmatprep.subr.mxu1 %v3530_v11 }
0x1e59   : > { %7210 = vmatpush3.msra.mxu1 %v3530_v11  ;;  %7215 = vmatprep.mubr.msk.f32.mxu1 %vm599_vm0, %v3526_v18 }
0x1e5a   : > { %7211 = vmatprep.subr.mxu1 %v3529_v17 }
0x1e5b   : > { %7212 = vmatpush3.msra.mxu1 %v3529_v17 }
0x1e5c   : > { %7213 = vmatprep.subr.mxu1 %v3528_v21 }
0x1e5d   : > { %7214 = vmatpush3.msra.mxu1 %v3528_v21 }
0x1e5e   : > { %7216 = vmatmul.mubr.msk.f32.vlgmr.msra.gmra.mxu1 %vm599_vm0, %v3527_v30 }
0x1f16   : > { %v7206_v59 = vpop.f32.mrf.mxu1 }
0x1f17   : > { %3467 = vst [vmem:[%s8473_s20 + $0x8] sm:$0x3f] %v7206_v59 }
0x1f18   : > { %v3457_v22 = vpop.f32.mrf.mxu1 }
0x1f19   : > { %3466 = vst [vmem:[%s8473_s20] sm:$0xff] %v3457_v22 }
0x1f1e   : > { %v7217_v58 = vpop.f32.mrf.mxu1 }
0x1f1f   : > { %v3617_v24 = vadd.f32 %v7217_v58, %v6536_v23 }
0x1f20   : > { %v3611_v25 = vpop.f32.mrf.mxu1 }
0x1f21   : > { %3621 = vst.msk [vmem:[#allocation2 + $0x8] sm:$0x3f] %vm738_vm8, %v3617_v24  ;;  %v3612_v26 = vadd.f32 %v6536_v23, %v3611_v25 }
0x1f23   : > { %3620 = vst.msk [vmem:[#allocation2] sm:$0xff] %vm736_vm9, %v3612_v26 }
0x1f28   : > { %v3623_v61 = vld [vmem:[#allocation2 + $0x8] sm:$0x3f] }
0x1f29   : > { %3628 = vrot.lane.b32.xlu0 %v3623_v61, %s9111_s26  ;;  %v8502_v4 = vld [vmem:[#allocation2 + $0x8] sm:$0x3f] }
0x1f2a   : > { %v8483_v29 = vld [vmem:[#allocation2] sm:$0xff]  ;;  %v8531_v11 = vld [vmem:[#allocation2 + $0x8] sm:$0x3f] }
0x1f2b   : > { %3626 = vrot.lane.b32.xlu1 %v8483_v29, %s9111_s26  ;;  %7222 = vmatprep.mubr.msk.f32.mxu1 %vm748_vm10, %v8483_v29 }
0x1f9b   : > { %v3629_v31 = vpop.permute.xlu0 %3628 }
0x1f9c   : > { %7218 = vmatprep.subr.msk.mxu1 %vm748_vm10, %v3629_v31 }
0x1f9d   : > { %7219 = vmatpush3.xpose.msk.msra.mxu1 %vm748_vm10, %v3629_v31  ;;  %v3627_v27 = vpop.permute.xlu1 %3626 }
0x1f9e   : > { %7220 = vmatprep.subr.msk.mxu1 %vm748_vm10, %v3627_v27 }
0x1fa1   : > { %7221 = vmatpush3.xpose.msk.msra.mxu1 %vm748_vm10, %v3627_v27 }
0x1fa4   : > { %7223 = vmatmul.mubr.msk.f32.vlgmr.msra.gmra.mxu1 %vm748_vm10, %v3623_v61 }
0x2064   : > { %v7224_v32 = vpop.f32.mrf.mxu1 }
0x2065   : > { %v3714_v33 = vmul.f32 0.35355338, %v7224_v32 }
0x2066   : > { %v3704_v34 = vpop.f32.mrf.mxu1 }
0x2067   : > { %v3716_v35 = vadd.f32 %v3714_v33, %v7848_v15  ;;  %v3713_v36 = vmul.f32 0.35355338, %v3704_v34 }
0x2069   : > { %v3715_v5 = vadd.f32 %v3713_v36, %v7845_v14  ;;  %v3720_v37 = vsel %vm840_vm15, %v3716_v35, -inf }
0x206a   : > { %3721 = vmax.xlane.f32.xlu0 %v3720_v37 }
0x206b   : > { %v3717_v38 = vsel %vm836_vm1, %v3715_v5, -inf }
0x206c   : > { %3718 = vmax.xlane.f32.xlu1 %v3717_v38 }
0x20f3   : > { %v3722_v39 = vpop.xlane.xlu0 %3721 }
0x20f4   : > { %v3724_v40 = vsub.f32 %v3716_v35, %v3722_v39 }
0x20f5   : > { %v3719_v41 = vpop.xlane.xlu1 %3718 }
0x20f6   : > { %v3727_v42 = vmul.f32 1.442695, %v3724_v40  ;;  %v3723_v43 = vsub.f32 %v3715_v5, %v3719_v41 }
0x20f8   : > { %7586 = vpow2.f32 %v3727_v42  ;;  %v3725_v44 = vmul.f32 1.442695, %v3723_v43 }
0x20fa   : > { %7588 = vpow2.f32 %v3725_v44 }
0x2105   : > { %v7587_v45 = vpop.eup %7586 }
0x2106   : > { %v3732_v47 = vsel %vm840_vm15, %v7587_v45, 0.0 }
0x2107   : > { %v7589_v49 = vpop.eup %7588  ;;  %3733 = vadd.xlane.f32.xlu1 %v3732_v47  ;;  %v8565_v47 = vld [vmem:[#allocation2 + $0x8] sm:$0x3f] }
0x2108   : > { %v3729_v50 = vsel %vm836_vm1, %v7589_v49, 0.0 }
0x2109   : > { %3730 = vadd.xlane.f32.xlu0 %v3729_v50 }
0x2118   : > { %3739 = vrot.lane.b32.xlu1 %v8483_v29, %s9112_s23 }
0x211c   : > { %3839 = vrot.lane.b32.xlu1 %v8502_v4, %s9113_s27 }
0x211f   : > { %3741 = vrot.lane.b32.xlu0 %v3623_v61, %s9112_s23 }
0x2120   : > { %3837 = vrot.lane.b32.xlu1 %v8483_v29, %s9113_s27 }
0x2123   : > { %3833 = vrot.lane.b32.xlu0 %v8483_v29, %s9114_s7 }
0x2124   : > { %3835 = vrot.lane.b32.xlu1 %v8502_v4, %s9114_s7 }
0x2190   : > { %v3734_v51 = vpop.xlane.xlu1 %3733 }
0x2191   : > { %7590 = vrcp.f32 %v3734_v51 }
0x2192   : > { %v3731_v53 = vpop.xlane.xlu0 %3730 }
0x2193   : > { %7592 = vrcp.f32 %v3731_v53 }
0x2194   : > { %v3740_v54 = vpop.permute.xlu1 %3739 }
0x2196   : > { %v3742_v28 = vpop.permute.xlu0 %3741 }
0x2197   : > { %7225 = vmatprep.subr.msk.mxu1 %vm871_vm3, %v3742_v28 }
0x2198   : > { %7226 = vmatpush3.msk.msra.mxu1 %vm871_vm3, %v3742_v28  ;;  %v3840_v55 = vpop.permute.xlu1 %3839 }
0x2199   : > { %7227 = vmatprep.subr.mxu1 %v3740_v54 }
0x219a   : > { %7228 = vmatpush3.msra.mxu1 %v3740_v54  ;;  %v3834_v62 = vpop.permute.xlu0 %3833 }
0x219b   : > { %7232 = vmatprep.subr.msk.mxu1 %vm748_vm10, %v3840_v55 }
0x219c   : > { %v3838_v63 = vpop.permute.xlu1 %3837 }
0x219e   : > { %v7591_v56 = vpop.eup %7590 }
0x219f   : > { %v3738_v60 = vmul.f32 %v7591_v56, %v7587_v45 }
0x21a0   : > { %v7593_v57 = vpop.eup %7592  ;;  %v3836_v0 = vpop.permute.xlu1 %3835 }
0x21a1   : > { %v3737_v52 = vmul.f32 %v7593_v57, %v7589_v49 }
0x21a3   : > { %7229 = vmatprep.mubr.msk.f32.mxu1 %vm836_vm1, %v3737_v52 }
0x21a4   : > { %7230 = vmatmul.mubr.msk.f32.vlgmr.msra.gmra.mxu1 %vm836_vm1, %v3738_v60 }
0x21a5   : > { %7233 = vmatpush3.xpose.msk.msra.mxu1 %vm748_vm10, %v3840_v55  ;;  %7236 = vmatprep.mubr.msk.f32.mxu1 %vm748_vm10, %v3834_v62 }
0x21a6   : > { %7234 = vmatprep.subr.msk.mxu1 %vm748_vm10, %v3838_v63 }
0x21a9   : > { %7235 = vmatpush3.xpose.msk.msra.mxu1 %vm748_vm10, %v3838_v63 }
0x21ac   : > { %7237 = vmatmul.mubr.msk.f32.vlgmr.msra.gmra.mxu1 %vm748_vm10, %v3836_v0 }
0x2264   : > { %v7231_v2 = vpop.f32.mrf.mxu1 }
0x2265   : > { %3828 = vst.msk [vmem:[#allocation3 + $0x8] sm:$0x3f] %vm950_vm4, %v7231_v2 }
0x2266   : > { %v3818_v3 = vpop.f32.mrf.mxu1 }
0x2267   : > { %3827 = vst.msk [vmem:[#allocation3] sm:$0xff] %vm748_vm10, %v3818_v3 }
0x226c   : > { %v7238_v46 = vpop.f32.mrf.mxu1 }
0x226d   : > { %v3925_v1 = vmul.f32 0.35355338, %v7238_v46 }
0x226e   : > { %v3915_v6 = vpop.f32.mrf.mxu1 }
0x226f   : > { %v3927_v48 = vadd.f32 %v3925_v1, %v7848_v15  ;;  %v3924_v7 = vmul.f32 0.35355338, %v3915_v6 }
0x2271   : > { %v3926_v8 = vadd.f32 %v3924_v7, %v7845_v14  ;;  %v3931_v9 = vsel %vm840_vm15, %v3927_v48, -inf }
0x2272   : > { %3932 = vmax.xlane.f32.xlu1 %v3931_v9 }
0x2273   : > { %v3928_v10 = vsel %vm836_vm1, %v3926_v8, -inf }
0x2274   : > { %3929 = vmax.xlane.f32.xlu0 %v3928_v10 }
0x2283   : > { %3950 = vrot.lane.b32.xlu1 %v8483_v29, %s9097_s1 }
0x2287   : > { %4058 = vrot.lane.b32.xlu1 %v8531_v11, %s9095_s18 }
0x228b   : > { %4056 = vrot.lane.b32.xlu1 %v8483_v29, %s9095_s18 }
0x228f   : > { %4054 = vrot.lane.b32.xlu1 %v8531_v11, %s9096_s19 }
0x22fb   : > { %v3933_v12 = vpop.xlane.xlu1 %3932 }
0x22fc   : > { %v3935_v13 = vsub.f32 %v3927_v48, %v3933_v12 }
0x22fd   : > { %v3930_v17 = vpop.xlane.xlu0 %3929 }
0x22fe   : > { %v3938_v18 = vmul.f32 1.442695, %v3935_v13  ;;  %v3934_v20 = vsub.f32 %v3926_v8, %v3930_v17 }
0x22ff   : > { %v3951_v25 = vpop.permute.xlu1 %3950 }
0x2300   : > { %7594 = vpow2.f32 %v3938_v18  ;;  %v3936_v21 = vmul.f32 1.442695, %v3934_v20 }
0x2302   : > { %7596 = vpow2.f32 %v3936_v21 }
0x2303   : > { %v4059_v61 = vpop.permute.xlu1 %4058 }
0x2307   : > { %v4057_v35 = vpop.permute.xlu1 %4056 }
0x230b   : > { %v4055_v36 = vpop.permute.xlu1 %4054 }
0x230d   : > { %v7595_v30 = vpop.eup %7594 }
0x230e   : > { %v3943_v59 = vsel %vm840_vm15, %v7595_v30, 0.0 }
0x230f   : > { %v7597_v22 = vpop.eup %7596  ;;  %3944 = vadd.xlane.f32.xlu0 %v3943_v59 }
0x2310   : > { %v3940_v23 = vsel %vm836_vm1, %v7597_v22, 0.0 }
0x2313   : > { %3941 = vadd.xlane.f32.xlu0 %v3940_v23 }
0x2329   : > { %3952 = vrot.lane.b32.xlu0 %v8502_v4, %s9097_s1 }
0x232d   : > { %4052 = vrot.lane.b32.xlu0 %v8483_v29, %s9096_s19 }
0x2398   : > { %v3945_v58 = vpop.xlane.xlu0 %3944 }
0x2399   : > { %7598 = vrcp.f32 %v3945_v58 }
0x239c   : > { %v3942_v24 = vpop.xlane.xlu0 %3941 }
0x239d   : > { %7600 = vrcp.f32 %v3942_v24 }
0x23a0   : > { %v3953_v26 = vpop.permute.xlu0 %3952 }
0x23a1   : > { %7239 = vmatprep.subr.msk.mxu0 %vm871_vm3, %v3953_v26 }
0x23a2   : > { %7240 = vmatpush3.msk.msra.mxu0 %vm871_vm3, %v3953_v26 }
0x23a3   : > { %7241 = vmatprep.subr.mxu0 %v3951_v25 }
0x23a4   : > { %7242 = vmatpush3.msra.mxu0 %v3951_v25  ;;  %v4053_v34 = vpop.permute.xlu0 %4052 }
0x23a5   : > { %7246 = vmatprep.subr.msk.mxu0 %vm748_vm10, %v4059_v61 }
0x23a6   : > { %v7599_v31 = vpop.eup %7598 }
0x23a7   : > { %v3949_v33 = vmul.f32 %v7599_v31, %v7595_v30 }
0x23aa   : > { %v7601_v27 = vpop.eup %7600 }
0x23ab   : > { %v3948_v32 = vmul.f32 %v7601_v27, %v7597_v22 }
0x23ad   : > { %7243 = vmatprep.mubr.msk.f32.mxu0 %vm836_vm1, %v3948_v32 }
0x23ae   : > { %7244 = vmatmul.mubr.msk.f32.vlgmr.msra.gmra.mxu0 %vm836_vm1, %v3949_v33 }
0x23af   : > { %7247 = vmatpush3.xpose.msk.msra.mxu0 %vm748_vm10, %v4059_v61  ;;  %7250 = vmatprep.mubr.msk.f32.mxu0 %vm748_vm10, %v4053_v34 }
0x23b0   : > { %7248 = vmatprep.subr.msk.mxu0 %vm748_vm10, %v4057_v35 }
0x23b3   : > { %7249 = vmatpush3.xpose.msk.msra.mxu0 %vm748_vm10, %v4057_v35 }
0x23b6   : > { %7251 = vmatmul.mubr.msk.f32.vlgmr.msra.gmra.mxu0 %vm748_vm10, %v4055_v36 }
0x246e   : > { %v8555_v5 = vpop.f32.mrf.mxu0 }
0x2470   : > { %v8557_v37 = vpop.f32.mrf.mxu0 }
0x2476   : > { %v7252_v38 = vpop.f32.mrf.mxu0 }
0x2477   : > { %v4144_v39 = vmul.f32 0.35355338, %v7252_v38 }
0x2478   : > { %v4134_v40 = vpop.f32.mrf.mxu0 }
0x2479   : > { %v4146_v41 = vadd.f32 %v4144_v39, %v7848_v15  ;;  %v4143_v42 = vmul.f32 0.35355338, %v4134_v40 }
0x247b   : > { %v4145_v43 = vadd.f32 %v4143_v42, %v7845_v14  ;;  %v4150_v44 = vsel %vm840_vm15, %v4146_v41, -inf  ;;  %v4490_v42 = vld [vmem:[%s9032_s6 + $0x10] sm:$0xff] }
0x247c   : > { %4151 = vmax.xlane.f32.xlu1 %v4150_v44  ;;  %v4488_v44 = vld [vmem:[%s9032_s6] sm:$0xff] }
0x247d   : > { %v4147_v45 = vsel %vm836_vm1, %v4145_v43, -inf }
0x247e   : > { %4148 = vmax.xlane.f32.xlu0 %v4147_v45 }
0x248d   : > { %4169 = vrot.lane.b32.xlu1 %v8483_v29, %s9098_s21 }
0x2491   : > { %4277 = vrot.lane.b32.xlu1 %v8565_v47, %s9099_s22 }
0x2495   : > { %4275 = vrot.lane.b32.xlu1 %v8483_v29, %s9099_s22 }
0x2499   : > { %4273 = vrot.lane.b32.xlu1 %v8565_v47, %s9115_s25 }
0x2505   : > { %v4152_v49 = vpop.xlane.xlu1 %4151 }
0x2506   : > { %v4154_v50 = vsub.f32 %v4146_v41, %v4152_v49  ;;  %v4491_v41 = vld [vmem:[%s9032_s6 + $0x18] sm:$0xff] }
0x2507   : > { %v4149_v4 = vpop.xlane.xlu0 %4148 }
0x2508   : > { %v4157_v51 = vmul.f32 1.442695, %v4154_v50  ;;  %v4153_v53 = vsub.f32 %v4145_v43, %v4149_v4  ;;  %v4489_v43 = vld [vmem:[%s9032_s6 + $0x8] sm:$0xff] }
0x2509   : > { %v4170_v62 = vpop.permute.xlu1 %4169 }
0x250a   : > { %7602 = vpow2.f32 %v4157_v51  ;;  %v4155_v54 = vmul.f32 1.442695, %v4153_v53 }
0x250c   : > { %7604 = vpow2.f32 %v4155_v54  ;;  %v6569_v54 = vld [vmem:[%s9119_s16] ss:$0 sm:$0xff] }
0x250d   : > { %v4278_v0 = vpop.permute.xlu1 %4277 }
0x2511   : > { %v4276_v48 = vpop.permute.xlu1 %4275 }
0x2515   : > { %v4274_v7 = vpop.permute.xlu1 %4273 }
0x2517   : > { %v7603_v28 = vpop.eup %7602 }
0x2518   : > { %v4162_v55 = vsel %vm840_vm15, %v7603_v28, 0.0 }
0x2519   : > { %v7605_v56 = vpop.eup %7604  ;;  %4163 = vadd.xlane.f32.xlu0 %v4162_v55 }
0x251a   : > { %v4159_v57 = vsel %vm836_vm1, %v7605_v56, 0.0 }
0x251d   : > { %4160 = vadd.xlane.f32.xlu0 %v4159_v57 }
0x2533   : > { %4171 = vrot.lane.b32.xlu0 %v8531_v11, %s9098_s21 }
0x2537   : > { %4271 = vrot.lane.b32.xlu0 %v8483_v29, %s9115_s25 }
0x25a2   : > { %v4164_v52 = vpop.xlane.xlu0 %4163 }
0x25a3   : > { %7606 = vrcp.f32 %v4164_v52 }
0x25a6   : > { %v4161_v60 = vpop.xlane.xlu0 %4160 }
0x25a7   : > { %7608 = vrcp.f32 %v4161_v60 }
0x25aa   : > { %v4172_v63 = vpop.permute.xlu0 %4171 }
0x25ab   : > { %7253 = vmatprep.subr.msk.mxu1 %vm871_vm3, %v4172_v63 }
0x25ac   : > { %7254 = vmatpush3.msk.msra.mxu1 %vm871_vm3, %v4172_v63 }
0x25ad   : > { %7255 = vmatprep.subr.mxu1 %v4170_v62 }
0x25ae   : > { %7256 = vmatpush3.msra.mxu1 %v4170_v62  ;;  %v4272_v6 = vpop.permute.xlu0 %4271 }
0x25af   : > { %7260 = vmatprep.subr.msk.mxu1 %vm748_vm10, %v4278_v0 }
0x25b0   : > { %v7607_v2 = vpop.eup %7606 }
0x25b1   : > { %v4168_v1 = vmul.f32 %v7607_v2, %v7603_v28 }
0x25b4   : > { %v7609_v3 = vpop.eup %7608 }
0x25b5   : > { %v4167_v46 = vmul.f32 %v7609_v3, %v7605_v56 }
0x25b7   : > { %7257 = vmatprep.mubr.msk.f32.mxu1 %vm836_vm1, %v4167_v46 }
0x25b8   : > { %7258 = vmatmul.mubr.msk.f32.vlgmr.msra.gmra.mxu1 %vm836_vm1, %v4168_v1 }
0x25b9   : > { %7261 = vmatpush3.xpose.msk.msra.mxu1 %vm748_vm10, %v4278_v0  ;;  %7264 = vmatprep.mubr.msk.f32.mxu1 %vm748_vm10, %v4272_v6 }
0x25ba   : > { %7262 = vmatprep.subr.msk.mxu1 %vm748_vm10, %v4276_v48 }
0x25bd   : > { %7263 = vmatpush3.xpose.msk.msra.mxu1 %vm748_vm10, %v4276_v48 }
0x25c0   : > { %7265 = vmatmul.mubr.msk.f32.vlgmr.msra.gmra.mxu1 %vm748_vm10, %v4274_v7  ;;  %v4631_v7 = vld [vmem:[%s9036_s10 + $0x18] sm:$0xff] }
0x25c1   : > { %7285 = vmatprep.subr.mxu1 %v4631_v7 }
0x25c2   : > { %7286 = vmatpush3.msra.mxu1 %v4631_v7  ;;  %v6575_v7 = vld [vmem:[%s9039_s13] ss:$0 sm:$0xff] }
0x2678   : > { %v7259_v8 = vpop.f32.mrf.mxu1 }
0x267a   : > { %v4248_v9 = vpop.f32.mrf.mxu1 }
0x2680   : > { %v7266_v10 = vpop.f32.mrf.mxu1 }
0x2681   : > { %v4363_v11 = vmul.f32 0.35355338, %v7266_v10  ;;  %v4628_v10 = vld [vmem:[%s9036_s10] sm:$0xff] }
0x2682   : > { %v4353_v12 = vpop.f32.mrf.mxu1 }
0x2683   : > { %v4365_v13 = vadd.f32 %v4363_v11, %v7848_v15  ;;  %v4362_v17 = vmul.f32 0.35355338, %v4353_v12 }
0x2685   : > { %v4364_v18 = vadd.f32 %v4362_v17, %v7845_v14  ;;  %v4369_v20 = vsel %vm840_vm15, %v4365_v13, -inf }
0x2686   : > { %4370 = vmax.xlane.f32.xlu1 %v4369_v20 }
0x2687   : > { %v4366_v21 = vsel %vm836_vm1, %v4364_v18, -inf }
0x2688   : > { %4367 = vmax.xlane.f32.xlu0 %v4366_v21 }
0x2697   : > { %4388 = vrot.lane.b32.xlu1 %v8483_v29, %s9116_s24 }
0x269b   : > { %4040 = vrot.lane.b32.xlu1 %v8557_v37, %s9117_s28 }
0x269f   : > { %4042 = vrot.lane.b32.xlu1 %v8555_v5, %s9117_s28  ;;  %s9126_s28 = sld [smem:[#allocation10_spill]] }
0x26a3   : > { %4261 = vrot.lane.b32.xlu1 %v7259_v8, %s9118_s29  ;;  %v4630_v8 = vld [vmem:[%s9036_s10 + $0x10] sm:$0xff] }
0x26a4   : > { %7287 = vmatprep.subr.mxu1 %v4630_v8 }
0x26a5   : > { %7288 = vmatpush3.msra.mxu1 %v4630_v8 }
0x270f   : > { %v4371_v30 = vpop.xlane.xlu1 %4370 }
0x2710   : > { %v4373_v59 = vsub.f32 %v4365_v13, %v4371_v30  ;;  %v6570_v30 = vld [vmem:[%s9034_s8] ss:$0 sm:$0xff] }
0x2711   : > { %v4368_v22 = vpop.xlane.xlu0 %4367 }
0x2712   : > { %v4376_v23 = vmul.f32 1.442695, %v4373_v59  ;;  %v4372_v58 = vsub.f32 %v4364_v18, %v4368_v22  ;;  %v6571_v22 = vld [vmem:[%s9035_s9] ss:$0 sm:$0xff] }
0x2713   : > { %v4389_v24 = vpop.permute.xlu1 %4388 }
0x2714   : > { %7610 = vpow2.f32 %v4376_v23  ;;  %v4374_v25 = vmul.f32 1.442695, %v4372_v58 }
0x2716   : > { %7612 = vpow2.f32 %v4374_v25 }
0x2717   : > { %v4041_v26 = vpop.permute.xlu1 %4040 }
0x2718   : > { %4046 = vst.msk [vmem:[#allocation3] sm:$0xff] %vm1169_vm5, %v4041_v26 }
0x271b   : > { %v4043_v29 = vpop.permute.xlu1 %4042 }
0x271c   : > { %4047 = vst.msk [vmem:[#allocation3 + $0x8] sm:$0x3f] %vm1171_vm6, %v4043_v29 }
0x271f   : > { %v4262_v61 = vpop.permute.xlu1 %4261 }
0x2720   : > { %4266 = vst.msk [vmem:[#allocation3 + $0x8] sm:$0x3f] %vm1392_vm7, %v4262_v61  ;;  %v4753_v61 = vld [vmem:[%s9038_s12 + $0x78] sm:$0xff] }
0x2721   : > { %v7611_v31 = vpop.eup %7610 }
0x2722   : > { %v4381_v27 = vsel %vm840_vm15, %v7611_v31, 0.0 }
0x2723   : > { %v7613_v32 = vpop.eup %7612  ;;  %4382 = vadd.xlane.f32.xlu0 %v4381_v27  ;;  %v4751_v27 = vld [vmem:[%s9038_s12 + $0x68] sm:$0xff] }
0x2724   : > { %v4378_v33 = vsel %vm836_vm1, %v7613_v32, 0.0 }
0x2727   : > { %4379 = vadd.xlane.f32.xlu0 %v4378_v33  ;;  %v4749_v33 = vld [vmem:[%s9038_s12 + $0x58] sm:$0xff] }
0x273d   : > { %4390 = vrot.lane.b32.xlu0 %v8565_v47, %s9116_s24 }
0x2741   : > { %4259 = vrot.lane.b32.xlu0 %v4248_v9, %s9118_s29  ;;  %v4629_v9 = vld [vmem:[%s9036_s10 + $0x8] sm:$0xff] }
0x2742   : > { %7289 = vmatprep.subr.mxu1 %v4629_v9 }
0x2743   : > { %7290 = vmatpush3.msra.mxu1 %v4629_v9 }
0x2744   : > { %7291 = vmatprep.subr.mxu1 %v4628_v10 }
0x2745   : > { %7292 = vmatpush3.msra.mxu1 %v4628_v10 }
0x27ac   : > { %v4383_v34 = vpop.xlane.xlu0 %4382 }
0x27ad   : > { %7614 = vrcp.f32 %v4383_v34  ;;  %v4748_v34 = vld [vmem:[%s9038_s12 + $0x50] sm:$0xff] }
0x27b0   : > { %v4380_v35 = vpop.xlane.xlu0 %4379 }
0x27b1   : > { %7616 = vrcp.f32 %v4380_v35  ;;  %v4747_v35 = vld [vmem:[%s9038_s12 + $0x48] sm:$0xff] }
0x27b4   : > { %v4391_v36 = vpop.permute.xlu0 %4390 }
0x27b5   : > { %7267 = vmatprep.subr.msk.mxu0 %vm871_vm3, %v4391_v36 }
0x27b6   : > { %7268 = vmatpush3.msk.msra.mxu0 %vm871_vm3, %v4391_v36  ;;  %v4746_v36 = vld [vmem:[%s9038_s12 + $0x40] sm:$0xff] }
0x27b7   : > { %7269 = vmatprep.subr.mxu0 %v4389_v24 }
0x27b8   : > { %7270 = vmatpush3.msra.mxu0 %v4389_v24  ;;  %v4260_v5 = vpop.permute.xlu0 %4259 }
0x27b9   : > { %4265 = vst.msk [vmem:[#allocation3] sm:$0xff] %vm1390_vm11, %v4260_v5  ;;  %7274 = vmatprep.subr.mxu0 %v4491_v41  ;;  %v4745_v5 = vld [vmem:[%s9038_s12 + $0x38] sm:$0xff] }
0x27ba   : > { %v7615_v37 = vpop.eup %7614 }
0x27bb   : > { %v4387_v40 = vmul.f32 %v7615_v37, %v7611_v31  ;;  %v4752_v31 = vld [vmem:[%s9038_s12 + $0x70] sm:$0xff] }
0x27bc   : > { %v4744_v37 = vld [vmem:[%s9038_s12 + $0x30] sm:$0xff] }
0x27be   : > { %v7617_v38 = vpop.eup %7616 }
0x27bf   : > { %v4386_v39 = vmul.f32 %v7617_v38, %v7613_v32  ;;  %v4750_v32 = vld [vmem:[%s9038_s12 + $0x60] sm:$0xff]  ;;  %v4743_v38 = vld [vmem:[%s9038_s12 + $0x28] sm:$0xff] }
0x27c1   : > { %7271 = vmatprep.mubr.msk.f32.mxu0 %vm836_vm1, %v4386_v39  ;;  %v4742_v39 = vld [vmem:[%s9038_s12 + $0x20] sm:$0xff] }
0x27c2   : > { %7272 = vmatmul.mubr.msk.f32.vlgmr.msra.gmra.mxu0 %vm836_vm1, %v4387_v40  ;;  %v4741_v40 = vld [vmem:[%s9038_s12 + $0x18] sm:$0xff] }
0x27c3   : > { %7275 = vmatpush3.msra.mxu0 %v4491_v41  ;;  %v4740_v41 = vld [vmem:[%s9038_s12 + $0x10] sm:$0xff] }
0x27c4   : > { %7276 = vmatprep.subr.mxu0 %v4490_v42 }
0x27c5   : > { %7277 = vmatpush3.msra.mxu0 %v4490_v42  ;;  %v4739_v42 = vld [vmem:[%s9038_s12 + $0x8] sm:$0xff] }
0x27c6   : > { %7278 = vmatprep.subr.mxu0 %v4489_v43 }
0x27c7   : > { %7279 = vmatpush3.msra.mxu0 %v4489_v43  ;;  %v4738_v43 = vld [vmem:[%s9038_s12] sm:$0xff] }
0x27c8   : > { %7280 = vmatprep.subr.mxu0 %v4488_v44 }
0x27c9   : > { %7281 = vmatpush3.msra.mxu0 %v4488_v44  ;;  %v6572_v44 = vld [vmem:[%s9037_s11] ss:$0 sm:$0xff] }
0x27ca   : > { %7296 = vmatprep.subr.mxu0 %v4753_v61 }
0x2882   : > { %v7273_v45 = vpop.f32.mrf.mxu0 }
0x2883   : > { %4480 = vrot.lane.b32.xlu1 %v7273_v45, %s9104_s30 }
0x2884   : > { %v4467_v47 = vpop.f32.mrf.mxu0 }
0x2885   : > { %4478 = vrot.lane.b32.xlu0 %v4467_v47, %s9104_s30 }
0x28f5   : > { %v4481_v49 = vpop.permute.xlu1 %4480 }
0x28f6   : > { %4485 = vst.msk [vmem:[#allocation3 + $0x8] sm:$0x3f] %vm1613_vm12, %v4481_v49 }
0x28f7   : > { %v4479_v50 = vpop.permute.xlu0 %4478 }
0x28f8   : > { %4484 = vst.msk [vmem:[#allocation3] sm:$0xff] %vm1611_vm13, %v4479_v50 }
0x28fd   : > { %v4487_v51 = vld [vmem:[#allocation3 + $0x8] sm:$0x3f] }
0x28ff   : > { %v4486_v4 = vld [vmem:[#allocation3] sm:$0xff] }
0x2900   : > { %7282 = vmatprep.mubr.msk.f32.mxu0 %vm599_vm0, %v4486_v4 }
0x2901   : > { %7283 = vmatmul.mubr.msk.f32.vlgmr.msra.gmra.mxu0 %vm599_vm0, %v4487_v51 }
0x2902   : > { %7297 = vmatpush3.msra.mxu0 %v4753_v61 }
0x2903   : > { %7298 = vmatprep.subr.mxu0 %v4752_v31 }
0x2904   : > { %7299 = vmatpush3.msra.mxu0 %v4752_v31 }
0x2905   : > { %7300 = vmatprep.subr.mxu0 %v4751_v27 }
0x2906   : > { %7301 = vmatpush3.msra.mxu0 %v4751_v27 }
0x2907   : > { %7302 = vmatprep.subr.mxu0 %v4750_v32 }
0x2908   : > { %7303 = vmatpush3.msra.mxu0 %v4750_v32 }
0x2909   : > { %7304 = vmatprep.subr.mxu0 %v4749_v33 }
0x290a   : > { %7305 = vmatpush3.msra.mxu0 %v4749_v33 }
0x290b   : > { %7306 = vmatprep.subr.mxu0 %v4748_v34 }
0x290c   : > { %7307 = vmatpush3.msra.mxu0 %v4748_v34 }
0x290d   : > { %7308 = vmatprep.subr.mxu0 %v4747_v35 }
0x290e   : > { %7309 = vmatpush3.msra.mxu0 %v4747_v35 }
0x290f   : > { %7310 = vmatprep.subr.mxu0 %v4746_v36 }
0x2910   : > { %7311 = vmatpush3.msra.mxu0 %v4746_v36  ;;  %v6578_v36 = vld [vmem:[%s9028_s2 + $0x1] ss:$0 sm:$0xff] }
0x2911   : > { %7312 = vmatprep.subr.mxu0 %v4745_v5 }
0x2912   : > { %7313 = vmatpush3.msra.mxu0 %v4745_v5 }
0x2913   : > { %7314 = vmatprep.subr.mxu0 %v4744_v37 }
0x2914   : > { %7315 = vmatpush3.msra.mxu0 %v4744_v37 }
0x2915   : > { %7316 = vmatprep.subr.mxu0 %v4743_v38 }
0x2916   : > { %7317 = vmatpush3.msra.mxu0 %v4743_v38 }
0x2917   : > { %7318 = vmatprep.subr.mxu0 %v4742_v39 }
0x2918   : > { %7319 = vmatpush3.msra.mxu0 %v4742_v39 }
0x2919   : > { %7320 = vmatprep.subr.mxu0 %v4741_v40 }
0x291a   : > { %7321 = vmatpush3.msra.mxu0 %v4741_v40  ;;  %v6579_v40 = vld [vmem:[%s9029_s3 + $0x1] ss:$0 sm:$0xff] }
0x291b   : > { %7322 = vmatprep.subr.mxu0 %v4740_v41 }
0x291c   : > { %7323 = vmatpush3.msra.mxu0 %v4740_v41 }
0x291d   : > { %7324 = vmatprep.subr.mxu0 %v4739_v42 }
0x291e   : > { %7325 = vmatpush3.msra.mxu0 %v4739_v42 }
0x291f   : > { %7326 = vmatprep.subr.mxu0 %v4738_v43 }
0x2920   : > { %7327 = vmatpush3.msra.mxu0 %v4738_v43 }
0x29c1   : > { %v7284_v53 = vpop.f32.mrf.mxu0 }
0x29c2   : > { %v4574_v28 = vadd.f32 %v7284_v53, %v8411_v16 }
0x29c3   : > { %v4564_v55 = vpop.f32.mrf.mxu0 }
0x29c4   : > { %v8635_v56 = vadd.f32 %v6569_v54, %v4574_v28  ;;  %v4573_v57 = vadd.f32 %v8415_v19, %v4564_v55 }
0x29c6   : > { %v8638_v52 = vadd.f32 %v6569_v54, %v4573_v57  ;;  %v4589_v60 = vsel %vm603_vm2, %v8635_v56, 0.0 }
0x29c7   : > { %4590 = vadd.xlane.f32.xlu1 %v4589_v60 }
0x29c8   : > { %v4586_v62 = vsel %vm599_vm0, %v8638_v52, 0.0 }
0x29c9   : > { %4587 = vadd.xlane.f32.xlu0 %v4586_v62 }
0x2a50   : > { %v4591_v63 = vpop.xlane.xlu1 %4590 }
0x2a51   : > { %v4593_v0 = vmul.f32 0.03125, %v4591_v63 }
0x2a52   : > { %v4588_v2 = vpop.xlane.xlu0 %4587 }
0x2a53   : > { %v4592_v3 = vmul.f32 0.03125, %v4588_v2  ;;  %v4595_v16 = vsub.f32 %v8635_v56, %v4593_v0 }
0x2a55   : > { %v4594_v46 = vsub.f32 %v8638_v52, %v4592_v3  ;;  %v4597_v6 = vmul.f32 %v4595_v16, %v4595_v16 }
0x2a57   : > { %v4596_v1 = vmul.f32 %v4594_v46, %v4594_v46  ;;  %v4601_v48 = vsel %vm603_vm2, %v4597_v6, 0.0 }
0x2a59   : > { %v4598_v19 = vsel %vm599_vm0, %v4596_v1, 0.0 }
0x2a5a   : > { %4599 = vadd.xlane.f32.xlu0 %v4598_v19 }
0x2a5e   : > { %4602 = vadd.xlane.f32.xlu0 %v4601_v48 }
0x2ae3   : > { %v4600_v11 = vpop.xlane.xlu0 %4599 }
0x2ae4   : > { %v4604_v12 = vmul.f32 0.03125, %v4600_v11 }
0x2ae6   : > { %v4606_v13 = vadd.f32 1e-05, %v4604_v12 }
0x2ae7   : > { %v4603_v17 = vpop.xlane.xlu0 %4602 }
0x2ae8   : > { %7618 = vrsqrt.f32 %v4606_v13  ;;  %v4605_v18 = vmul.f32 0.03125, %v4603_v17 }
0x2aea   : > { %v4607_v20 = vadd.f32 1e-05, %v4605_v18 }
0x2aec   : > { %7620 = vrsqrt.f32 %v4607_v20 }
0x2af5   : > { %v7619_v21 = vpop.eup %7618 }
0x2af6   : > { %v4610_v59 = vmul.f32 %v7619_v21, %v4594_v46 }
0x2af8   : > { %v4618_v23 = vmul.f32 %v6570_v30, %v4610_v59 }
0x2af9   : > { %v7621_v58 = vpop.eup %7620 }
0x2afa   : > { %v4611_v24 = vmul.f32 %v7621_v58, %v4595_v16  ;;  %v4626_v25 = vadd.f32 %v6571_v22, %v4618_v23 }
0x2afc   : > { %v4619_v26 = vmul.f32 %v6570_v30, %v4611_v24  ;;  %7293 = vmatprep.mubr.msk.f32.mxu1 %vm599_vm0, %v4626_v25  ;;  %v6583_v24 = vld [vmem:[%s9030_s4 + $0x38] sm:$0xff]  ;;  %v6582_v25 = vld [vmem:[%s9030_s4 + $0x30] sm:$0xff] }
0x2afd   : > { %7331 = vmatprep.subr.mxu1 %v6583_v24 }
0x2afe   : > { %v4627_v29 = vadd.f32 %v6571_v22, %v4619_v26  ;;  %v6581_v26 = vld [vmem:[%s9030_s4 + $0x28] sm:$0xff] }
0x2b00   : > { %7294 = vmatmul.mubr.msk.f32.vlgmr.msra.gmra.mxu1 %vm599_vm0, %v4627_v29  ;;  %v6580_v29 = vld [vmem:[%s9030_s4 + $0x20] sm:$0xff] }
0x2b01   : > { %7332 = vmatpush3.msra.mxu1 %v6583_v24 }
0x2b02   : > { %7333 = vmatprep.subr.mxu1 %v6582_v25 }
0x2b03   : > { %7334 = vmatpush3.msra.mxu1 %v6582_v25 }
0x2b04   : > { %7335 = vmatprep.subr.mxu1 %v6581_v26 }
0x2b05   : > { %7336 = vmatpush3.msra.mxu1 %v6581_v26 }
0x2b06   : > { %7337 = vmatprep.subr.mxu1 %v6580_v29 }
0x2b07   : > { %7338 = vmatpush3.msra.mxu1 %v6580_v29 }
0x2bc0   : > { %v7295_v45 = vpop.f32.mrf.mxu1 }
0x2bc1   : > { %v4717_v47 = vadd.f32 %v7295_v45, %v6572_v44 }
0x2bc2   : > { %v4711_v49 = vpop.f32.mrf.mxu1 }
0x2bc3   : > { %v4723_v50 = vmul.f32 0.044715, %v4717_v47  ;;  %v4712_v4 = vadd.f32 %v6572_v44, %v4711_v49  ;;  %v4721_v1 = vmul.f32 0.5, %v4717_v47  ;;  %v6585_v44 = vld [vmem:[%s9031_s5 + $0x1] ss:$0 sm:$0xff] }
0x2bc5   : > { %v4725_v51 = vmul.f32 %v4723_v50, %v4717_v47  ;;  %v4722_v53 = vmul.f32 0.044715, %v4712_v4  ;;  %v4720_v16 = vmul.f32 0.5, %v4712_v4 }
0x2bc7   : > { %v4727_v54 = vmul.f32 %v4725_v51, %v4717_v47  ;;  %v4724_v28 = vmul.f32 %v4722_v53, %v4712_v4 }
0x2bc9   : > { %v4729_v55 = vadd.f32 %v4727_v54, %v4717_v47  ;;  %v4726_v57 = vmul.f32 %v4724_v28, %v4712_v4 }
0x2bcb   : > { %v4728_v60 = vadd.f32 %v4726_v57, %v4712_v4  ;;  %v4731_v62 = vmul.f32 0.7978846, %v4729_v55 }
0x2bcd   : > { %v4730_v63 = vmul.f32 0.7978846, %v4728_v60  ;;  %7622 = vtanh.f32 %v4731_v62 }
0x2bcf   : > { %7624 = vtanh.f32 %v4730_v63 }
0x2bda   : > { %v7623_v0 = vpop.eup %7622 }
0x2bdb   : > { %v4735_v3 = vadd.f32 1.0, %v7623_v0 }
0x2bdc   : > { %v7625_v2 = vpop.eup %7624 }
0x2bdd   : > { %v4734_v46 = vadd.f32 1.0, %v7625_v2  ;;  %v4737_v6 = vmul.f32 %v4735_v3, %v4721_v1 }
0x2bdf   : > { %v4736_v19 = vmul.f32 %v4734_v46, %v4720_v16 }
0x2be1   : > { %7328 = vmatprep.mubr.f32.mxu0 %v4736_v19 }
0x2be2   : > { %7329 = vmatmul.mubr.f32.vlgmr.msra.gmra.mxu0 %v4737_v6 }
0x2ca2   : > { %v7330_v48 = vpop.f32.mrf.mxu0 }
0x2ca3   : > { %v4830_v8 = vadd.f32 %v7330_v48, %v8635_v56 }
0x2ca4   : > { %v4820_v9 = vpop.f32.mrf.mxu0 }
0x2ca5   : > { %v8723_v10 = vadd.f32 %v6575_v7, %v4830_v8  ;;  %v4829_v11 = vadd.f32 %v4820_v9, %v8638_v52 }
0x2ca7   : > { %v8726_v12 = vadd.f32 %v6575_v7, %v4829_v11  ;;  %v4845_v13 = vsel %vm603_vm2, %v8723_v10, 0.0 }
0x2ca8   : > { %4846 = vadd.xlane.f32.xlu1 %v4845_v13 }
0x2ca9   : > { %v4842_v17 = vsel %vm599_vm0, %v8726_v12, 0.0 }
0x2caa   : > { %4843 = vadd.xlane.f32.xlu0 %v4842_v17 }
0x2d31   : > { %v4847_v18 = vpop.xlane.xlu1 %4846 }
0x2d32   : > { %v4849_v20 = vmul.f32 0.03125, %v4847_v18 }
0x2d33   : > { %v4844_v21 = vpop.xlane.xlu0 %4843 }
0x2d34   : > { %v4851_v56 = vsub.f32 %v8723_v10, %v4849_v20  ;;  %v4848_v30 = vmul.f32 0.03125, %v4844_v21 }
0x2d36   : > { %v4850_v59 = vsub.f32 %v8726_v12, %v4848_v30  ;;  %v4853_v22 = vmul.f32 %v4851_v56, %v4851_v56 }
0x2d38   : > { %v4857_v52 = vsel %vm603_vm2, %v4853_v22, 0.0  ;;  %v4852_v23 = vmul.f32 %v4850_v59, %v4850_v59 }
0x2d39   : > { %4858 = vadd.xlane.f32.xlu1 %v4857_v52 }
0x2d3a   : > { %v4854_v58 = vsel %vm599_vm0, %v4852_v23, 0.0 }
0x2d3b   : > { %4855 = vadd.xlane.f32.xlu0 %v4854_v58 }
0x2dc2   : > { %v4859_v61 = vpop.xlane.xlu1 %4858 }
0x2dc3   : > { %v4861_v31 = vmul.f32 0.03125, %v4859_v61 }
0x2dc4   : > { %v4856_v27 = vpop.xlane.xlu0 %4855 }
0x2dc5   : > { %v4863_v32 = vadd.f32 1e-05, %v4861_v31  ;;  %v4860_v33 = vmul.f32 0.03125, %v4856_v27 }
0x2dc7   : > { %7626 = vrsqrt.f32 %v4863_v32  ;;  %v4862_v34 = vadd.f32 1e-05, %v4860_v33 }
0x2dc9   : > { %7628 = vrsqrt.f32 %v4862_v34 }
0x2dd4   : > { %v7627_v35 = vpop.eup %7626 }
0x2dd5   : > { %v4867_v5 = vmul.f32 %v7627_v35, %v4851_v56 }
0x2dd6   : > { %v7629_v37 = vpop.eup %7628 }
0x2dd7   : > { %v4866_v38 = vmul.f32 %v7629_v37, %v4850_v59  ;;  %v4875_v39 = vmul.f32 %v6578_v36, %v4867_v5 }
0x2dd9   : > { %v4874_v41 = vmul.f32 %v6578_v36, %v4866_v38  ;;  %v4883_v43 = vadd.f32 %v6579_v40, %v4875_v39 }
0x2ddb   : > { %v4882_v42 = vadd.f32 %v6579_v40, %v4874_v41 }
0x2ddd   : > { %7339 = vmatprep.mubr.msk.f32.mxu1 %vm599_vm0, %v4882_v42 }
0x2dde   : > { %7340 = vmatmul.mubr.msk.f32.vlgmr.msra.gmra.mxu1 %vm599_vm0, %v4883_v43 }
0x2e9e   : > { %v7341_v45 = vpop.f32.mrf.mxu1 }
0x2e9f   : > { %v4973_v47 = vadd.f32 %v7341_v45, %v6585_v44 }
0x2ea0   : > { %v4967_v49 = vpop.f32.mrf.mxu1 }
0x2ea1   : > { %4977 = vst.msk [vmem:[#allocation2 + $0x8] sm:$0x3f] %vm738_vm8, %v4973_v47  ;;  %v4968_v50 = vadd.f32 %v6585_v44, %v4967_v49 }
0x2ea3   : > { %4976 = vst.msk [vmem:[#allocation2] sm:$0xff] %vm736_vm9, %v4968_v50 }
0x2ea8   : > { %v4979_v4 = vld [vmem:[#allocation2 + $0x8] sm:$0x3f] }
0x2ea9   : > { %4984 = vrot.lane.b32.xlu0 %v4979_v4, %s9111_s26  ;;  %v8780_v3 = vld [vmem:[#allocation2 + $0x8] sm:$0x3f] }
0x2eaa   : > { %v8762_v51 = vld [vmem:[#allocation2] sm:$0xff]  ;;  %v8795_v20 = vld [vmem:[#allocation2 + $0x8] sm:$0x3f] }
0x2eab   : > { %4982 = vrot.lane.b32.xlu1 %v8762_v51, %s9111_s26  ;;  %7346 = vmatprep.mubr.msk.f32.mxu1 %vm748_vm10, %v8762_v51 }
0x2f1b   : > { %v4985_v53 = vpop.permute.xlu0 %4984 }
0x2f1c   : > { %7342 = vmatprep.subr.msk.mxu1 %vm748_vm10, %v4985_v53 }
0x2f1d   : > { %7343 = vmatpush3.xpose.msk.msra.mxu1 %vm748_vm10, %v4985_v53  ;;  %v4983_v54 = vpop.permute.xlu1 %4982 }
0x2f1e   : > { %7344 = vmatprep.subr.msk.mxu1 %vm748_vm10, %v4983_v54 }
0x2f21   : > { %7345 = vmatpush3.xpose.msk.msra.mxu1 %vm748_vm10, %v4983_v54 }
0x2f24   : > { %7347 = vmatmul.mubr.msk.f32.vlgmr.msra.gmra.mxu1 %vm748_vm10, %v4979_v4 }
0x2fe4   : > { %v7348_v28 = vpop.f32.mrf.mxu1 }
0x2fe5   : > { %v5070_v55 = vmul.f32 0.35355338, %v7348_v28 }
0x2fe6   : > { %v5060_v57 = vpop.f32.mrf.mxu1 }
0x2fe7   : > { %v5072_v60 = vadd.f32 %v5070_v55, %v7848_v15  ;;  %v5069_v62 = vmul.f32 0.35355338, %v5060_v57 }
0x2fe9   : > { %v5071_v63 = vadd.f32 %v5069_v62, %v7845_v14  ;;  %v5076_v0 = vsel %vm840_vm15, %v5072_v60, -inf }
0x2fea   : > { %5077 = vmax.xlane.f32.xlu0 %v5076_v0 }
0x2feb   : > { %v5073_v2 = vsel %vm836_vm1, %v5071_v63, -inf }
0x2fec   : > { %5074 = vmax.xlane.f32.xlu1 %v5073_v2 }
0x2ffd   : > { %5095 = vrot.lane.b32.xlu1 %v8762_v51, %s9112_s23 }
0x3000   : > { %5097 = vrot.lane.b32.xlu0 %v4979_v4, %s9112_s23 }
0x3001   : > { %5195 = vrot.lane.b32.xlu1 %v8780_v3, %s9113_s27 }
0x3005   : > { %5193 = vrot.lane.b32.xlu1 %v8762_v51, %s9113_s27 }
0x3073   : > { %v5078_v16 = vpop.xlane.xlu0 %5077 }
0x3074   : > { %v5080_v46 = vsub.f32 %v5072_v60, %v5078_v16 }
0x3075   : > { %v5075_v1 = vpop.xlane.xlu1 %5074 }
0x3076   : > { %v5083_v19 = vmul.f32 1.442695, %v5080_v46  ;;  %v5079_v6 = vsub.f32 %v5071_v63, %v5075_v1 }
0x3077   : > { %v5098_v48 = vpop.permute.xlu0 %5097 }
0x3078   : > { %7630 = vpow2.f32 %v5083_v19  ;;  %v5081_v7 = vmul.f32 1.442695, %v5079_v6  ;;  %7349 = vmatprep.subr.msk.mxu1 %vm871_vm3, %v5098_v48 }
0x3079   : > { %7350 = vmatpush3.msk.msra.mxu1 %vm871_vm3, %v5098_v48  ;;  %v5096_v8 = vpop.permute.xlu1 %5095 }
0x307a   : > { %7632 = vpow2.f32 %v5081_v7  ;;  %7351 = vmatprep.subr.mxu1 %v5096_v8 }
0x307b   : > { %7352 = vmatpush3.msra.mxu1 %v5096_v8  ;;  %v8838_v8 = vld [vmem:[#allocation2 + $0x8] sm:$0x3f] }
0x307d   : > { %v5196_v9 = vpop.permute.xlu1 %5195 }
0x307e   : > { %7356 = vmatprep.subr.msk.mxu1 %vm748_vm10, %v5196_v9 }
0x3081   : > { %v5194_v21 = vpop.permute.xlu1 %5193 }
0x3085   : > { %v7631_v11 = vpop.eup %7630 }
0x3086   : > { %v5088_v13 = vsel %vm840_vm15, %v7631_v11, 0.0 }
0x3087   : > { %v7633_v17 = vpop.eup %7632  ;;  %5089 = vadd.xlane.f32.xlu1 %v5088_v13 }
0x3088   : > { %v5085_v18 = vsel %vm836_vm1, %v7633_v17, 0.0 }
0x3089   : > { %5086 = vadd.xlane.f32.xlu0 %v5085_v18 }
0x3098   : > { %5189 = vrot.lane.b32.xlu1 %v8762_v51, %s9114_s7 }
0x309c   : > { %5412 = vrot.lane.b32.xlu1 %v8762_v51, %s9095_s18 }
0x309f   : > { %5414 = vrot.lane.b32.xlu0 %v8795_v20, %s9095_s18  ;;  %s9120_s18 = smov 8  }
0x30a0   : > { %5410 = vrot.lane.b32.xlu1 %v8795_v20, %s9096_s19 }
0x30a3   : > { %5191 = vrot.lane.b32.xlu0 %v8780_v3, %s9114_s7 }
0x30a7   : > { %5408 = vrot.lane.b32.xlu0 %v8762_v51, %s9096_s19  ;;  %s9121_s19 = smov 16  }
0x3110   : > { %v5090_v56 = vpop.xlane.xlu1 %5089 }
0x3111   : > { %7634 = vrcp.f32 %v5090_v56 }
0x3112   : > { %v5087_v30 = vpop.xlane.xlu0 %5086 }
0x3113   : > { %7636 = vrcp.f32 %v5087_v30 }
0x3114   : > { %v5190_v59 = vpop.permute.xlu1 %5189 }
0x3116   : > { %v5415_v22 = vpop.permute.xlu0 %5414 }
0x3117   : > { %7370 = vmatprep.subr.msk.mxu0 %vm748_vm10, %v5415_v22 }
0x3118   : > { %7371 = vmatpush3.xpose.msk.msra.mxu0 %vm748_vm10, %v5415_v22  ;;  %v5413_v52 = vpop.permute.xlu1 %5412 }
0x3119   : > { %7372 = vmatprep.subr.msk.mxu0 %vm748_vm10, %v5413_v52 }
0x311a   : > { %v5192_v23 = vpop.permute.xlu0 %5191 }
0x311c   : > { %7373 = vmatpush3.xpose.msk.msra.mxu0 %vm748_vm10, %v5413_v52  ;;  %v5411_v25 = vpop.permute.xlu1 %5410 }
0x311e   : > { %v5409_v58 = vpop.permute.xlu0 %5408  ;;  %v7635_v24 = vpop.eup %7634 }
0x311f   : > { %7374 = vmatprep.mubr.msk.f32.mxu0 %vm748_vm10, %v5409_v58  ;;  %v5094_v61 = vmul.f32 %v7635_v24, %v7631_v11 }
0x3120   : > { %v7637_v26 = vpop.eup %7636  ;;  %7375 = vmatmul.mubr.msk.f32.vlgmr.msra.gmra.mxu0 %vm748_vm10, %v5411_v25 }
0x3121   : > { %v5093_v29 = vmul.f32 %v7637_v26, %v7633_v17 }
0x3123   : > { %7353 = vmatprep.mubr.msk.f32.mxu1 %vm836_vm1, %v5093_v29 }
0x3124   : > { %7354 = vmatmul.mubr.msk.f32.vlgmr.msra.gmra.mxu1 %vm836_vm1, %v5094_v61 }
0x3125   : > { %7357 = vmatpush3.xpose.msk.msra.mxu1 %vm748_vm10, %v5196_v9  ;;  %7360 = vmatprep.mubr.msk.f32.mxu1 %vm748_vm10, %v5190_v59 }
0x3126   : > { %7358 = vmatprep.subr.msk.mxu1 %vm748_vm10, %v5194_v21 }
0x3129   : > { %7359 = vmatpush3.xpose.msk.msra.mxu1 %vm748_vm10, %v5194_v21 }
0x312c   : > { %7361 = vmatmul.mubr.msk.f32.vlgmr.msra.gmra.mxu1 %vm748_vm10, %v5192_v23 }
0x31e0   : > { %v7376_v32 = vpop.f32.mrf.mxu0 }
0x31e1   : > { %v5500_v41 = vmul.f32 0.35355338, %v7376_v32 }
0x31e2   : > { %v5490_v33 = vpop.f32.mrf.mxu0 }
0x31e3   : > { %v5499_v5 = vmul.f32 0.35355338, %v5490_v33  ;;  %v5502_v44 = vadd.f32 %v5500_v41, %v7848_v15 }
0x31e4   : > { %v7355_v31 = vpop.f32.mrf.mxu1 }
0x31e5   : > { %5184 = vst.msk [vmem:[#allocation3 + $0x8] sm:$0x3f] %vm950_vm4, %v7355_v31  ;;  %v5501_v42 = vadd.f32 %v5499_v5, %v7845_v14  ;;  %v5506_v47 = vsel %vm840_vm15, %v5502_v44, -inf }
0x31e6   : > { %v5174_v27 = vpop.f32.mrf.mxu1 }
0x31e7   : > { %5183 = vst.msk [vmem:[#allocation3] sm:$0xff] %vm748_vm10, %v5174_v27  ;;  %v5503_v45 = vsel %vm836_vm1, %v5501_v42, -inf }
0x31ec   : > { %v7362_v34 = vpop.f32.mrf.mxu1 }
0x31ed   : > { %v5281_v35 = vmul.f32 0.35355338, %v7362_v34 }
0x31ee   : > { %v5271_v36 = vpop.f32.mrf.mxu1 }
0x31ef   : > { %v5283_v37 = vadd.f32 %v5281_v35, %v7848_v15  ;;  %v5280_v38 = vmul.f32 0.35355338, %v5271_v36 }
0x31f1   : > { %v5282_v39 = vadd.f32 %v5280_v38, %v7845_v14  ;;  %v5287_v40 = vsel %vm840_vm15, %v5283_v37, -inf }
0x31f2   : > { %5288 = vmax.xlane.f32.xlu1 %v5287_v40 }
0x31f3   : > { %v5284_v43 = vsel %vm836_vm1, %v5282_v39, -inf }
0x31f4   : > { %5285 = vmax.xlane.f32.xlu0 %v5284_v43 }
0x31f8   : > { %5504 = vmax.xlane.f32.xlu0 %v5503_v45 }
0x31fc   : > { %5507 = vmax.xlane.f32.xlu0 %v5506_v47 }
0x327b   : > { %v5289_v4 = vpop.xlane.xlu1 %5288 }
0x327c   : > { %v5291_v28 = vsub.f32 %v5283_v37, %v5289_v4 }
0x327d   : > { %v5286_v49 = vpop.xlane.xlu0 %5285 }
0x327e   : > { %v5290_v50 = vsub.f32 %v5282_v39, %v5286_v49  ;;  %v5294_v63 = vmul.f32 1.442695, %v5291_v28 }
0x3280   : > { %v5292_v55 = vmul.f32 1.442695, %v5290_v50 }
0x3281   : > { %v5505_v53 = vpop.xlane.xlu0 %5504 }
0x3282   : > { %v5509_v54 = vsub.f32 %v5501_v42, %v5505_v53 }
0x3284   : > { %v5511_v57 = vmul.f32 1.442695, %v5509_v54 }
0x3285   : > { %v5508_v60 = vpop.xlane.xlu0 %5507 }
0x3286   : > { %7638 = vpow2.f32 %v5511_v57  ;;  %v5510_v62 = vsub.f32 %v5502_v44, %v5508_v60 }
0x3287   : > { %7640 = vpow2.f32 %v5292_v55 }
0x3288   : > { %v5513_v0 = vmul.f32 1.442695, %v5510_v62 }
0x328a   : > { %7642 = vpow2.f32 %v5513_v0 }
0x328b   : > { %7644 = vpow2.f32 %v5294_v63 }
0x3293   : > { %v7639_v2 = vpop.eup %7638 }
0x3294   : > { %v5515_v16 = vsel %vm836_vm1, %v7639_v2, 0.0  ;;  %v7641_v46 = vpop.eup %7640 }
0x3295   : > { %5516 = vadd.xlane.f32.xlu0 %v5515_v16  ;;  %v5296_v19 = vsel %vm836_vm1, %v7641_v46, 0.0  ;;  %v6619_v16 = vld [vmem:[%s9032_s6 + $0x38] sm:$0xff] }
0x3297   : > { %v7643_v1 = vpop.eup %7642 }
0x3298   : > { %v5518_v6 = vsel %vm840_vm15, %v7643_v1, 0.0  ;;  %v7645_v48 = vpop.eup %7644 }
0x3299   : > { %5297 = vadd.xlane.f32.xlu0 %v5296_v19  ;;  %5519 = vadd.xlane.f32.xlu1 %v5518_v6  ;;  %v5299_v7 = vsel %vm840_vm15, %v7645_v48, 0.0  ;;  %v6616_v19 = vld [vmem:[%s9032_s6 + $0x20] sm:$0xff] }
0x329d   : > { %5300 = vadd.xlane.f32.xlu1 %v5299_v7 }
0x32ae   : > { %5306 = vrot.lane.b32.xlu1 %v8762_v51, %s9097_s1 }
0x32af   : > { %5308 = vrot.lane.b32.xlu0 %v8780_v3, %s9097_s1 }
0x32b2   : > { %5527 = vrot.lane.b32.xlu1 %v8795_v20, %s9098_s21 }
0x32b3   : > { %5633 = vrot.lane.b32.xlu0 %v8838_v8, %s9099_s22 }
0x32b6   : > { %5525 = vrot.lane.b32.xlu1 %v8762_v51, %s9098_s21  ;;  %s9123_s21 = sld [smem:[#allocation11_spill]] }
0x32b7   : > { %5627 = vrot.lane.b32.xlu0 %v8762_v51, %s9115_s25 }
0x32ba   : > { %5631 = vrot.lane.b32.xlu1 %v8762_v51, %s9099_s22 }
0x32be   : > { %5629 = vrot.lane.b32.xlu1 %v8838_v8, %s9115_s25 }
0x331e   : > { %v5517_v3 = vpop.xlane.xlu0 %5516 }
0x3322   : > { %v5298_v9 = vpop.xlane.xlu0 %5297  ;;  %v5520_v11 = vpop.xlane.xlu1 %5519 }
0x3323   : > { %7646 = vrcp.f32 %v5298_v9 }
0x3324   : > { %7648 = vrcp.f32 %v5517_v3 }
0x3326   : > { %v5309_v13 = vpop.permute.xlu0 %5308  ;;  %v5301_v17 = vpop.xlane.xlu1 %5300 }
0x3327   : > { %7650 = vrcp.f32 %v5301_v17  ;;  %7363 = vmatprep.subr.msk.mxu1 %vm871_vm3, %v5309_v13 }
0x3328   : > { %7364 = vmatpush3.msk.msra.mxu1 %vm871_vm3, %v5309_v13  ;;  %7652 = vrcp.f32 %v5520_v11  ;;  %v6623_v13 = vld [vmem:[%s9122_s15 + $0x1] ss:$0 sm:$0xff] }
0x332a   : > { %v5307_v18 = vpop.permute.xlu1 %5306  ;;  %v5634_v22 = vpop.permute.xlu0 %5633 }
0x332b   : > { %7365 = vmatprep.subr.mxu1 %v5307_v18 }
0x332c   : > { %7366 = vmatpush3.msra.mxu1 %v5307_v18 }
0x332e   : > { %v5528_v20 = vpop.permute.xlu1 %5527  ;;  %v5628_v26 = vpop.permute.xlu0 %5627 }
0x332f   : > { %7377 = vmatprep.subr.msk.mxu1 %vm871_vm3, %v5528_v20 }
0x3330   : > { %v7647_v21 = vpop.eup %7646 }
0x3331   : > { %v5304_v56 = vmul.f32 %v7647_v21, %v7641_v46  ;;  %v7649_v30 = vpop.eup %7648  ;;  %v6618_v46 = vld [vmem:[%s9032_s6 + $0x30] sm:$0xff] }
0x3332   : > { %v5526_v58 = vpop.permute.xlu1 %5525  ;;  %v5523_v24 = vmul.f32 %v7649_v30, %v7639_v2 }
0x3333   : > { %7367 = vmatprep.mubr.msk.f32.mxu1 %vm836_vm1, %v5304_v56 }
0x3334   : > { %v7651_v59 = vpop.eup %7650 }
0x3335   : > { %v5305_v52 = vmul.f32 %v7651_v59, %v7645_v48  ;;  %v7653_v23 = vpop.eup %7652 }
0x3336   : > { %v5524_v25 = vmul.f32 %v7653_v23, %v7643_v1  ;;  %v5632_v29 = vpop.permute.xlu1 %5631  ;;  %v6617_v1 = vld [vmem:[%s9032_s6 + $0x28] sm:$0xff] }
0x3337   : > { %7368 = vmatmul.mubr.msk.f32.vlgmr.msra.gmra.mxu1 %vm836_vm1, %v5305_v52 }
0x3338   : > { %7378 = vmatpush3.msk.msra.mxu1 %vm871_vm3, %v5528_v20  ;;  %7381 = vmatprep.mubr.msk.f32.mxu1 %vm836_vm1, %v5523_v24 }
0x3339   : > { %7379 = vmatprep.subr.mxu1 %v5526_v58 }
0x333a   : > { %7380 = vmatpush3.msra.mxu1 %v5526_v58  ;;  %v5630_v61 = vpop.permute.xlu1 %5629 }
0x333b   : > { %7384 = vmatprep.subr.msk.mxu1 %vm748_vm10, %v5634_v22  ;;  %7382 = vmatmul.mubr.msk.f32.vlgmr.msra.gmra.mxu1 %vm836_vm1, %v5524_v25 }
0x333c   : > { %7385 = vmatpush3.xpose.msk.msra.mxu1 %vm748_vm10, %v5634_v22  ;;  %7388 = vmatprep.mubr.msk.f32.mxu1 %vm748_vm10, %v5628_v26 }
0x333d   : > { %7386 = vmatprep.subr.msk.mxu1 %vm748_vm10, %v5632_v29 }
0x3340   : > { %7387 = vmatpush3.xpose.msk.msra.mxu1 %vm748_vm10, %v5632_v29 }
0x3343   : > { %7389 = vmatmul.mubr.msk.f32.vlgmr.msra.gmra.mxu1 %vm748_vm10, %v5630_v61  ;;  %v6631_v61 = vld [vmem:[%s9036_s10 + $0x38] sm:$0xff] }
0x3344   : > { %7409 = vmatprep.subr.mxu1 %v6631_v61 }
0x3345   : > { %7410 = vmatpush3.msra.mxu1 %v6631_v61 }
0x33f7   : > { %v7369_v31 = vpop.f32.mrf.mxu1 }
0x33f9   : > { %v5385_v27 = vpop.f32.mrf.mxu1 }
0x33fb   : > { %v7383_v32 = vpop.f32.mrf.mxu1 }
0x33fd   : > { %v5604_v33 = vpop.f32.mrf.mxu1 }
0x3403   : > { %v7390_v34 = vpop.f32.mrf.mxu1 }
0x3404   : > { %v5719_v35 = vmul.f32 0.35355338, %v7390_v34 }
0x3405   : > { %v5709_v36 = vpop.f32.mrf.mxu1 }
0x3406   : > { %v5721_v5 = vadd.f32 %v5719_v35, %v7848_v15  ;;  %v5718_v37 = vmul.f32 0.35355338, %v5709_v36 }
0x3408   : > { %v5720_v38 = vadd.f32 %v5718_v37, %v7845_v14  ;;  %v5725_v39 = vsel %vm840_vm15, %v5721_v5, -inf }
0x3409   : > { %5726 = vmax.xlane.f32.xlu1 %v5725_v39  ;;  %v6626_v39 = vld [vmem:[%s9034_s8 + $0x1] ss:$0 sm:$0xff] }
0x340a   : > { %v5722_v40 = vsel %vm836_vm1, %v5720_v38, -inf }
0x340b   : > { %5723 = vmax.xlane.f32.xlu0 %v5722_v40 }
0x341a   : > { %5744 = vrot.lane.b32.xlu1 %v8762_v51, %s9116_s24 }
0x341e   : > { %5396 = vrot.lane.b32.xlu1 %v5385_v27, %s9120_s18  ;;  %v6629_v27 = vld [vmem:[%s9036_s10 + $0x28] sm:$0xff] }
0x3422   : > { %5398 = vrot.lane.b32.xlu1 %v7369_v31, %s9120_s18  ;;  %v6630_v31 = vld [vmem:[%s9036_s10 + $0x30] sm:$0xff] }
0x3423   : > { %7411 = vmatprep.subr.mxu1 %v6630_v31 }
0x3424   : > { %7412 = vmatpush3.msra.mxu1 %v6630_v31 }
0x3425   : > { %7413 = vmatprep.subr.mxu1 %v6629_v27 }
0x3426   : > { %5617 = vrot.lane.b32.xlu1 %v7383_v32, %s9121_s19  ;;  %7414 = vmatpush3.msra.mxu1 %v6629_v27  ;;  %v6628_v32 = vld [vmem:[%s9036_s10 + $0x20] sm:$0xff] }
0x3427   : > { %7415 = vmatprep.subr.mxu1 %v6628_v32 }
0x3428   : > { %7416 = vmatpush3.msra.mxu1 %v6628_v32 }
0x3492   : > { %v5727_v41 = vpop.xlane.xlu1 %5726 }
0x3493   : > { %v5729_v15 = vsub.f32 %v5721_v5, %v5727_v41  ;;  %v6627_v41 = vld [vmem:[%s9035_s9 + $0x1] ss:$0 sm:$0xff] }
0x3494   : > { %v5724_v42 = vpop.xlane.xlu0 %5723 }
0x3495   : > { %v5732_v43 = vmul.f32 1.442695, %v5729_v15  ;;  %v5728_v14 = vsub.f32 %v5720_v38, %v5724_v42 }
0x3496   : > { %v5745_v44 = vpop.permute.xlu1 %5744 }
0x3497   : > { %7654 = vpow2.f32 %v5732_v43  ;;  %v5730_v45 = vmul.f32 1.442695, %v5728_v14 }
0x3499   : > { %7656 = vpow2.f32 %v5730_v45 }
0x349a   : > { %v5397_v47 = vpop.permute.xlu1 %5396 }
0x349b   : > { %5402 = vst.msk [vmem:[#allocation3] sm:$0xff] %vm1169_vm5, %v5397_v47  ;;  %v6651_v47 = vld [vmem:[%s9038_s12 + $0xf8] sm:$0xff] }
0x349e   : > { %v5399_v49 = vpop.permute.xlu1 %5398 }
0x349f   : > { %5403 = vst.msk [vmem:[#allocation3 + $0x8] sm:$0x3f] %vm1171_vm6, %v5399_v49  ;;  %v6650_v49 = vld [vmem:[%s9038_s12 + $0xf0] sm:$0xff] }
0x34a2   : > { %v5618_v51 = vpop.permute.xlu1 %5617 }
0x34a3   : > { %5622 = vst.msk [vmem:[#allocation3 + $0x8] sm:$0x3f] %vm1392_vm7, %v5618_v51  ;;  %v6649_v51 = vld [vmem:[%s9038_s12 + $0xe8] sm:$0xff] }
0x34a4   : > { %v7655_v50 = vpop.eup %7654 }
0x34a5   : > { %v5737_v4 = vsel %vm840_vm15, %v7655_v50, 0.0 }
0x34a6   : > { %v7657_v53 = vpop.eup %7656  ;;  %5738 = vadd.xlane.f32.xlu0 %v5737_v4  ;;  %v6647_v4 = vld [vmem:[%s9038_s12 + $0xd8] sm:$0xff] }
0x34a7   : > { %v5734_v54 = vsel %vm836_vm1, %v7657_v53, 0.0 }
0x34aa   : > { %5735 = vadd.xlane.f32.xlu0 %v5734_v54  ;;  %v6645_v54 = vld [vmem:[%s9038_s12 + $0xc8] sm:$0xff] }
0x34c0   : > { %5746 = vrot.lane.b32.xlu0 %v8838_v8, %s9116_s24  ;;  %s9124_s24 = sld [smem:[#allocation5_spill]] }
0x34c4   : > { %5615 = vrot.lane.b32.xlu0 %v5604_v33, %s9121_s19 }
0x352f   : > { %v5739_v28 = vpop.xlane.xlu0 %5738 }
0x3530   : > { %7658 = vrcp.f32 %v5739_v28  ;;  %v6644_v28 = vld [vmem:[%s9038_s12 + $0xc0] sm:$0xff] }
0x3533   : > { %v5736_v55 = vpop.xlane.xlu0 %5735 }
0x3534   : > { %7660 = vrcp.f32 %v5736_v55  ;;  %v6643_v55 = vld [vmem:[%s9038_s12 + $0xb8] sm:$0xff] }
0x3537   : > { %v5747_v57 = vpop.permute.xlu0 %5746 }
0x3538   : > { %7391 = vmatprep.subr.msk.mxu0 %vm871_vm3, %v5747_v57 }
0x3539   : > { %7392 = vmatpush3.msk.msra.mxu0 %vm871_vm3, %v5747_v57  ;;  %v6642_v57 = vld [vmem:[%s9038_s12 + $0xb0] sm:$0xff] }
0x353a   : > { %7393 = vmatprep.subr.mxu0 %v5745_v44 }
0x353b   : > { %7394 = vmatpush3.msra.mxu0 %v5745_v44  ;;  %v5616_v60 = vpop.permute.xlu0 %5615 }
0x353c   : > { %5621 = vst.msk [vmem:[#allocation3] sm:$0xff] %vm1390_vm11, %v5616_v60  ;;  %7398 = vmatprep.subr.mxu0 %v6619_v16  ;;  %v6641_v60 = vld [vmem:[%s9038_s12 + $0xa8] sm:$0xff] }
0x353d   : > { %v7659_v62 = vpop.eup %7658 }
0x353e   : > { %v5743_v2 = vmul.f32 %v7659_v62, %v7655_v50  ;;  %v6648_v50 = vld [vmem:[%s9038_s12 + $0xe0] sm:$0xff] }
0x353f   : > { %v6640_v62 = vld [vmem:[%s9038_s12 + $0xa0] sm:$0xff] }
0x3541   : > { %v7661_v63 = vpop.eup %7660 }
0x3542   : > { %v5742_v0 = vmul.f32 %v7661_v63, %v7657_v53  ;;  %v6646_v53 = vld [vmem:[%s9038_s12 + $0xd0] sm:$0xff]  ;;  %v6639_v63 = vld [vmem:[%s9038_s12 + $0x98] sm:$0xff] }
0x3544   : > { %7395 = vmatprep.mubr.msk.f32.mxu0 %vm836_vm1, %v5742_v0  ;;  %v6638_v0 = vld [vmem:[%s9038_s12 + $0x90] sm:$0xff] }
0x3545   : > { %7396 = vmatmul.mubr.msk.f32.vlgmr.msra.gmra.mxu0 %vm836_vm1, %v5743_v2  ;;  %v6637_v2 = vld [vmem:[%s9038_s12 + $0x88] sm:$0xff] }
0x3546   : > { %7399 = vmatpush3.msra.mxu0 %v6619_v16  ;;  %v6636_v16 = vld [vmem:[%s9038_s12 + $0x80] sm:$0xff] }
0x3547   : > { %7400 = vmatprep.subr.mxu0 %v6618_v46 }
0x3548   : > { %7401 = vmatpush3.msra.mxu0 %v6618_v46  ;;  %v6633_v46 = vld [vmem:[%s9037_s11 + $0x1] ss:$0 sm:$0xff] }
0x3549   : > { %7402 = vmatprep.subr.mxu0 %v6617_v1 }
0x354a   : > { %7403 = vmatpush3.msra.mxu0 %v6617_v1 }
0x354b   : > { %7404 = vmatprep.subr.mxu0 %v6616_v19 }
0x354c   : > { %7405 = vmatpush3.msra.mxu0 %v6616_v19 }
0x354d   : > { %7420 = vmatprep.subr.mxu0 %v6651_v47 }
0x3605   : > { %v7397_v6 = vpop.f32.mrf.mxu0 }
0x3606   : > { %5836 = vrot.lane.b32.xlu1 %v7397_v6, %s9104_s30 }
0x3607   : > { %v5823_v48 = vpop.f32.mrf.mxu0 }
0x3608   : > { %5834 = vrot.lane.b32.xlu0 %v5823_v48, %s9104_s30  ;;  %s9125_s30 = sld [smem:[#allocation9_spill]] }
0x3678   : > { %v5837_v7 = vpop.permute.xlu1 %5836 }
0x3679   : > { %5841 = vst.msk [vmem:[#allocation3 + $0x8] sm:$0x3f] %vm1613_vm12, %v5837_v7 }
0x367a   : > { %v5835_v8 = vpop.permute.xlu0 %5834 }
0x367b   : > { %5840 = vst.msk [vmem:[#allocation3] sm:$0xff] %vm1611_vm13, %v5835_v8 }
0x3680   : > { %v5843_v9 = vld [vmem:[#allocation3 + $0x8] sm:$0x3f] }
0x3682   : > { %v5842_v3 = vld [vmem:[#allocation3] sm:$0xff] }
0x3683   : > { %7406 = vmatprep.mubr.msk.f32.mxu0 %vm599_vm0, %v5842_v3 }
0x3684   : > { %7407 = vmatmul.mubr.msk.f32.vlgmr.msra.gmra.mxu0 %vm599_vm0, %v5843_v9 }
0x3685   : > { %7421 = vmatpush3.msra.mxu0 %v6651_v47 }
0x3686   : > { %7422 = vmatprep.subr.mxu0 %v6650_v49 }
0x3687   : > { %7423 = vmatpush3.msra.mxu0 %v6650_v49 }
0x3688   : > { %7424 = vmatprep.subr.mxu0 %v6649_v51 }
0x3689   : > { %7425 = vmatpush3.msra.mxu0 %v6649_v51 }
0x368a   : > { %7426 = vmatprep.subr.mxu0 %v6648_v50 }
0x368b   : > { %7427 = vmatpush3.msra.mxu0 %v6648_v50 }
0x368c   : > { %7428 = vmatprep.subr.mxu0 %v6647_v4 }
0x368d   : > { %7429 = vmatpush3.msra.mxu0 %v6647_v4 }
0x368e   : > { %7430 = vmatprep.subr.mxu0 %v6646_v53 }
0x368f   : > { %7431 = vmatpush3.msra.mxu0 %v6646_v53  ;;  %v6654_v53 = vld [vmem:[%s9125_s30] ss:$0 sm:$0xff] }
0x3690   : > { %7432 = vmatprep.subr.mxu0 %v6645_v54 }
0x3691   : > { %7433 = vmatpush3.msra.mxu0 %v6645_v54 }
0x3692   : > { %7434 = vmatprep.subr.mxu0 %v6644_v28 }
0x3693   : > { %7435 = vmatpush3.msra.mxu0 %v6644_v28 }
0x3694   : > { %7436 = vmatprep.subr.mxu0 %v6643_v55 }
0x3695   : > { %7437 = vmatpush3.msra.mxu0 %v6643_v55 }
0x3696   : > { %7438 = vmatprep.subr.mxu0 %v6642_v57 }
0x3697   : > { %7439 = vmatpush3.msra.mxu0 %v6642_v57 }
0x3698   : > { %7440 = vmatprep.subr.mxu0 %v6641_v60 }
0x3699   : > { %7441 = vmatpush3.msra.mxu0 %v6641_v60  ;;  %v6655_v60 = vld [vmem:[%s9126_s28] ss:$0 sm:$0xff] }
0x369a   : > { %7442 = vmatprep.subr.mxu0 %v6640_v62 }
0x369b   : > { %7443 = vmatpush3.msra.mxu0 %v6640_v62 }
0x369c   : > { %7444 = vmatprep.subr.mxu0 %v6639_v63 }
0x369d   : > { %7445 = vmatpush3.msra.mxu0 %v6639_v63 }
0x369e   : > { %7446 = vmatprep.subr.mxu0 %v6638_v0 }
0x369f   : > { %7447 = vmatpush3.msra.mxu0 %v6638_v0 }
0x36a0   : > { %7448 = vmatprep.subr.mxu0 %v6637_v2 }
0x36a1   : > { %7449 = vmatpush3.msra.mxu0 %v6637_v2 }
0x36a2   : > { %7450 = vmatprep.subr.mxu0 %v6636_v16 }
0x36a3   : > { %7451 = vmatpush3.msra.mxu0 %v6636_v16 }
0x3744   : > { %v7408_v11 = vpop.f32.mrf.mxu0 }
0x3745   : > { %v5930_v17 = vadd.f32 %v7408_v11, %v8723_v10 }
0x3746   : > { %v5920_v18 = vpop.f32.mrf.mxu0 }
0x3747   : > { %v8908_v20 = vadd.f32 %v6623_v13, %v5930_v17  ;;  %v5929_v21 = vadd.f32 %v5920_v18, %v8726_v12 }
0x3749   : > { %v8911_v56 = vadd.f32 %v6623_v13, %v5929_v21  ;;  %v5945_v30 = vsel %vm603_vm2, %v8908_v20, 0.0 }
0x374a   : > { %5946 = vadd.xlane.f32.xlu1 %v5945_v30 }
0x374b   : > { %v5942_v59 = vsel %vm599_vm0, %v8911_v56, 0.0 }
0x374c   : > { %5943 = vadd.xlane.f32.xlu0 %v5942_v59 }
0x37d3   : > { %v5947_v22 = vpop.xlane.xlu1 %5946 }
0x37d4   : > { %v5949_v52 = vmul.f32 0.03125, %v5947_v22 }
0x37d5   : > { %v5944_v23 = vpop.xlane.xlu0 %5943 }
0x37d6   : > { %v5948_v58 = vmul.f32 0.03125, %v5944_v23  ;;  %v5951_v10 = vsub.f32 %v8908_v20, %v5949_v52 }
0x37d8   : > { %v5950_v24 = vsub.f32 %v8911_v56, %v5948_v58  ;;  %v5953_v26 = vmul.f32 %v5951_v10, %v5951_v10 }
0x37da   : > { %v5952_v25 = vmul.f32 %v5950_v24, %v5950_v24  ;;  %v5957_v29 = vsel %vm603_vm2, %v5953_v26, 0.0  ;;  %v6653_v26 = vld [vmem:[%s9039_s13 + $0x1] ss:$0 sm:$0xff] }
0x37dc   : > { %v5954_v12 = vsel %vm599_vm0, %v5952_v25, 0.0 }
0x37dd   : > { %5955 = vadd.xlane.f32.xlu0 %v5954_v12 }
0x37e1   : > { %5958 = vadd.xlane.f32.xlu0 %v5957_v29 }
0x3866   : > { %v5956_v33 = vpop.xlane.xlu0 %5955 }
0x3867   : > { %v5960_v34 = vmul.f32 0.03125, %v5956_v33 }
0x3869   : > { %v5962_v35 = vadd.f32 1e-05, %v5960_v34 }
0x386a   : > { %v5959_v36 = vpop.xlane.xlu0 %5958 }
0x386b   : > { %7662 = vrsqrt.f32 %v5962_v35  ;;  %v5961_v5 = vmul.f32 0.03125, %v5959_v36 }
0x386d   : > { %v5963_v37 = vadd.f32 1e-05, %v5961_v5 }
0x386f   : > { %7664 = vrsqrt.f32 %v5963_v37 }
0x3878   : > { %v7663_v38 = vpop.eup %7662 }
0x3879   : > { %v5966_v40 = vmul.f32 %v7663_v38, %v5950_v24 }
0x387b   : > { %v5974_v15 = vmul.f32 %v6626_v39, %v5966_v40 }
0x387c   : > { %v7665_v42 = vpop.eup %7664 }
0x387d   : > { %v5967_v43 = vmul.f32 %v7665_v42, %v5951_v10  ;;  %v5982_v14 = vadd.f32 %v6627_v41, %v5974_v15  ;;  %v6243_v15 = vld [vmem:[%s9123_s21 + $0x18] sm:$0xff]  ;;  %v6242_v42 = vld [vmem:[%s9123_s21 + $0x10] sm:$0xff] }
0x387e   : > { %7455 = vmatprep.subr.mxu1 %v6243_v15 }
0x387f   : > { %v5975_v44 = vmul.f32 %v6626_v39, %v5967_v43  ;;  %7417 = vmatprep.mubr.msk.f32.mxu1 %vm599_vm0, %v5982_v14  ;;  %v6241_v43 = vld [vmem:[%s9123_s21 + $0x8] sm:$0xff]  ;;  %v6240_v14 = vld [vmem:[%s9123_s21] sm:$0xff] }
0x3881   : > { %v5983_v45 = vadd.f32 %v6627_v41, %v5975_v44 }
0x3883   : > { %7418 = vmatmul.mubr.msk.f32.vlgmr.msra.gmra.mxu1 %vm599_vm0, %v5983_v45 }
0x3884   : > { %7456 = vmatpush3.msra.mxu1 %v6243_v15 }
0x3885   : > { %7457 = vmatprep.subr.mxu1 %v6242_v42 }
0x3886   : > { %7458 = vmatpush3.msra.mxu1 %v6242_v42 }
0x3887   : > { %7459 = vmatprep.subr.mxu1 %v6241_v43 }
0x3888   : > { %7460 = vmatpush3.msra.mxu1 %v6241_v43 }
0x3889   : > { %7461 = vmatprep.subr.mxu1 %v6240_v14 }
0x388a   : > { %7462 = vmatpush3.msra.mxu1 %v6240_v14 }
0x3943   : > { %v7419_v1 = vpop.f32.mrf.mxu1 }
0x3944   : > { %v6073_v19 = vadd.f32 %v7419_v1, %v6633_v46 }
0x3945   : > { %v6067_v6 = vpop.f32.mrf.mxu1 }
0x3946   : > { %v6079_v48 = vmul.f32 0.044715, %v6073_v19  ;;  %v6068_v7 = vadd.f32 %v6633_v46, %v6067_v6  ;;  %v6077_v10 = vmul.f32 0.5, %v6073_v19 }
0x3948   : > { %v6081_v8 = vmul.f32 %v6079_v48, %v6073_v19  ;;  %v6078_v3 = vmul.f32 0.044715, %v6068_v7  ;;  %v6076_v23 = vmul.f32 0.5, %v6068_v7 }
0x394a   : > { %v6083_v9 = vmul.f32 %v6081_v8, %v6073_v19  ;;  %v6080_v11 = vmul.f32 %v6078_v3, %v6068_v7 }
0x394c   : > { %v6085_v13 = vadd.f32 %v6083_v9, %v6073_v19  ;;  %v6082_v17 = vmul.f32 %v6080_v11, %v6068_v7 }
0x394e   : > { %v6084_v18 = vadd.f32 %v6082_v17, %v6068_v7  ;;  %v6087_v21 = vmul.f32 0.7978846, %v6085_v13 }
0x3950   : > { %v6086_v30 = vmul.f32 0.7978846, %v6084_v18  ;;  %7666 = vtanh.f32 %v6087_v21 }
0x3952   : > { %7668 = vtanh.f32 %v6086_v30 }
0x395d   : > { %v7667_v59 = vpop.eup %7666 }
0x395e   : > { %v6091_v52 = vadd.f32 1.0, %v7667_v59 }
0x395f   : > { %v7669_v22 = vpop.eup %7668 }
0x3960   : > { %v6090_v58 = vadd.f32 1.0, %v7669_v22  ;;  %v6093_v25 = vmul.f32 %v6091_v52, %v6077_v10 }
0x3962   : > { %v6092_v24 = vmul.f32 %v6090_v58, %v6076_v23 }
0x3964   : > { %7452 = vmatprep.mubr.f32.mxu0 %v6092_v24 }
0x3965   : > { %7453 = vmatmul.mubr.f32.vlgmr.msra.gmra.mxu0 %v6093_v25 }
0x3a25   : > { %v7454_v12 = vpop.f32.mrf.mxu0 }
0x3a26   : > { %v6186_v29 = vadd.f32 %v7454_v12, %v8908_v20 }
0x3a27   : > { %v6176_v61 = vpop.f32.mrf.mxu0 }
0x3a28   : > { %v6195_v31 = vadd.f32 %v6653_v26, %v6186_v29  ;;  %v6185_v27 = vadd.f32 %v6176_v61, %v8911_v56 }
0x3a2a   : > { %v6194_v32 = vadd.f32 %v6653_v26, %v6185_v27  ;;  %v6201_v33 = vsel %vm603_vm2, %v6195_v31, 0.0 }
0x3a2b   : > { %6202 = vadd.xlane.f32.xlu1 %v6201_v33 }
0x3a2c   : > { %v6198_v34 = vsel %vm599_vm0, %v6194_v32, 0.0 }
0x3a2d   : > { %6199 = vadd.xlane.f32.xlu0 %v6198_v34 }
0x3ab4   : > { %v6203_v35 = vpop.xlane.xlu1 %6202 }
0x3ab5   : > { %v6205_v36 = vmul.f32 0.03125, %v6203_v35 }
0x3ab6   : > { %v6200_v5 = vpop.xlane.xlu0 %6199 }
0x3ab7   : > { %v6207_v37 = vsub.f32 %v6195_v31, %v6205_v36  ;;  %v6204_v38 = vmul.f32 0.03125, %v6200_v5 }
0x3ab9   : > { %v6206_v39 = vsub.f32 %v6194_v32, %v6204_v38  ;;  %v6209_v40 = vmul.f32 %v6207_v37, %v6207_v37 }
0x3abb   : > { %v6213_v20 = vsel %vm603_vm2, %v6209_v40, 0.0  ;;  %v6208_v41 = vmul.f32 %v6206_v39, %v6206_v39 }
0x3abc   : > { %6214 = vadd.xlane.f32.xlu1 %v6213_v20 }
0x3abd   : > { %v6210_v56 = vsel %vm599_vm0, %v6208_v41, 0.0 }
0x3abe   : > { %6211 = vadd.xlane.f32.xlu0 %v6210_v56 }
0x3b45   : > { %v6215_v44 = vpop.xlane.xlu1 %6214 }
0x3b46   : > { %v6217_v45 = vmul.f32 0.03125, %v6215_v44 }
0x3b47   : > { %v6212_v47 = vpop.xlane.xlu0 %6211 }
0x3b48   : > { %v6219_v49 = vadd.f32 1e-05, %v6217_v45  ;;  %v6216_v51 = vmul.f32 0.03125, %v6212_v47 }
0x3b4a   : > { %7670 = vrsqrt.f32 %v6219_v49  ;;  %v6218_v50 = vadd.f32 1e-05, %v6216_v51 }
0x3b4c   : > { %7672 = vrsqrt.f32 %v6218_v50 }
0x3b57   : > { %v7671_v4 = vpop.eup %7670 }
0x3b58   : > { %v6223_v54 = vmul.f32 %v7671_v4, %v6207_v37 }
0x3b59   : > { %v7673_v28 = vpop.eup %7672 }
0x3b5a   : > { %v6222_v55 = vmul.f32 %v7673_v28, %v6206_v39  ;;  %v6231_v57 = vmul.f32 %v6654_v53, %v6223_v54 }
0x3b5c   : > { %v6230_v62 = vmul.f32 %v6654_v53, %v6222_v55  ;;  %v6239_v0 = vadd.f32 %v6655_v60, %v6231_v57 }
0x3b5e   : > { %v6238_v63 = vadd.f32 %v6655_v60, %v6230_v62 }
0x3b60   : > { %7463 = vmatprep.mubr.msk.f32.mxu1 %vm599_vm0, %v6238_v63 }
0x3b61   : > { %7464 = vmatmul.mubr.msk.f32.vlgmr.msra.gmra.mxu1 %vm599_vm0, %v6239_v0 }
0x3c21   : > { %v7465_v2 = vpop.f32.mrf.mxu1 }
0x3c22   : > { %6659 = vst [vmem:[%s9124_s24 + $0x18] sm:$0x3f] %v7465_v2 }
0x3c23   : > { %v6316_v16 = vpop.f32.mrf.mxu1 }
0x3c24   : > { %6658 = vst [vmem:[%s9124_s24 + $0x10] sm:$0xff] %v6316_v16 }
0x3c25 PF: > { %s9127_s29 = sld [smem:[#allocation4_spill]] }
0x3c2b   : > { %s27_s24 = sadd.s32 1, %s9127_s29  }
0x3c2c   : > { %p24_p4 = scmp.ge.s32.totalorder %s27_s24, 4  }
0x3c2e   :  { %26 = sbr.rel (!%p24_p4) target bundleno = 8 (0x8), region = 136 }

// kernel: distill_tuning_forward.5
= control target key start
LH: loop header
LB: loop body
LE: loop exit
PB: predicated region body
PF: predicated region fallthrough
CT: control target
= control target key end

     0   :  { %8 = vsyncpa [#allocation5], 0  ;;  %s431_s12 = smov 0   ;;  %s469_s0 = inlined_call_operand.vmem [shape: f32[16,128], index: 0, kind: input, shape index: {}]   ;;  %s470_s1 = inlined_call_operand.vmem [shape: f32[16,128], index: 1, kind: input, shape index: {}]   ;;  %s471_s2 = inlined_call_operand.vmem [shape: f32[16,1], index: 2, kind: input, shape index: {}]   ;;  %s472_s3 = inlined_call_operand.hbm [shape: f32[1,1], index: 3, kind: output, shape index: {}]  }
   0x1 LB: > { %s437_s13 = sadd.s32 4294967295, %s406_s12   ;;  %p331_p0 = scmp.ge.s32.totalorder %s406_s12, 1  ;;  %s406_s12 = sphi %s431_s12, %s14_s12  }
   0x2   : > { %p150_p1 = scmp.lt.s32.totalorder %s406_s12, 3 }
   0x4   : > { %p151_p2 = pnand %p331_p0, %p150_p1 }
   0x5   : > { %p176_p3 = scmp.lt.s32.totalorder (!%p151_p2), %s437_s13, 1  ;;  %p335_p4 = scmp.ne.s32.totalorder (!%p151_p2), %s437_s13, 0 }
   0x6   : > { %154 = sbr.rel (%p151_p2) target bundleno = 584 (0x248), region = 32 }
   0xb   : > { %s177_s14 = scalar_select %p176_p3, %s437_s13, 1 }
   0xc   : > { %191 = sbr.rel (%p335_p4) target bundleno = 19 (0x13), region = 36 }
   0xd   : > { %s332_s15 = sshll.u32 %s177_s14, 3 }
   0xe   : > { %s179_s18 = scalar_lea.vmem %s469_s0, %s332_s15  ;;  %s183_s21 = scalar_lea.vmem %s470_s1, %s332_s15 }
   0xf   : > { %s187_s24 = scalar_lea.vmem %s471_s2, %s332_s15 }
  0x11   : > { %vm192_vm0 = vcmask 0   ;;  %v408_v0 = vmov 0.0  }
  0x12   : > { %193 = vst.msk [vmem:[#allocation2] sm:$0x1] %vm192_vm0, %v408_v0  ;;  %194 = vst.msk [vmem:[#allocation3] sm:$0x1] %vm192_vm0, %v408_v0 }
  0x13 PF: > { %v195_v1 = vld [vmem:[%s179_s18] sm:$0xff]  ;;  %v409_v3 = vmov 0   ;;  %vm234_vm1 = vcmask 7168   ;;  %vm231_vm2 = vcmask 0   ;;  %p336_p5 = scmp.ne.s32.totalorder %s437_s13, 1 }
  0x14   : > { %198 = vmax.xlane.f32.xlu0 %v195_v1  ;;  %v197_v2 = vld [vmem:[%s187_s24] sm:$0xff]  ;;  %362 = vset.pattern.permute.xlu1 %v409_v3 }
  0x15   : > { %363 = vset.pattern.permute.xlu0 %v409_v3  ;;  %216 = vperm.xlu1 %362, %v197_v2   ;;  %v235_v8 = vsel %vm234_vm1, %v197_v2, 0.0  ;;  %v196_v9 = vld [vmem:[%s183_s21] sm:$0xff] }
  0x16   : > { %v208_v10 = vadd.f32 1e-09, %v196_v9 }
  0x19   : > { %v213_v35 = vld [vmem:[#allocation2] sm:$0x1]  ;;  %v233_v36 = vld [vmem:[#allocation3] sm:$0x1] }
  0x90   : > { %v217_v18 = vpop.permute.xlu1 %216 }
  0x9d   : > { %v199_v4 = vpop.xlane.xlu0 %198 }
  0x9e   : > { %v200_v5 = vsub.f32 %v195_v1, %v199_v4 }
  0xa0   : > { %v201_v6 = vmul.f32 1.442695, %v200_v5 }
  0xa2   : > { %364 = vpow2.f32 %v201_v6 }
  0xa3   : > { %366 = vlog2.f32 %v208_v10 }
  0xaf   : > { %v365_v7 = vpop.eup %364 }
  0xb0   : > { %203 = vadd.xlane.f32.xlu0 %v365_v7  ;;  %v367_v12 = vpop.eup %366 }
  0xb1   : > { %v210_v15 = vmul.f32 0.6931472, %v367_v12 }
  0xb4   : > { %236 = vadd.xlane.f32.xlu0 %v235_v8 }
 0x139   : > { %v204_v11 = vpop.xlane.xlu0 %203 }
 0x13a   : > { %368 = vlog2.f32 %v204_v11 }
 0x13d   : > { %v237_v21 = vpop.xlane.xlu0 %236 }
 0x13e   : > { %v238_v22 = vrot.slane %v237_v21, 4 }
 0x140   : > { %v239_v23 = vadd.f32 %v238_v22, %v237_v21 }
 0x142   : > { %v240_v24 = vrot.slane %v239_v23, 2 }
 0x144   : > { %v241_v28 = vadd.f32 %v240_v24, %v239_v23 }
 0x146   : > { %v242_v31 = vrot.slane %v241_v28, 1 }
 0x147   : > { %v369_v13 = vpop.eup %368 }
 0x148   : > { %v206_v14 = vmul.f32 0.6931472, %v369_v13  ;;  %v243_v34 = vadd.f32 %v242_v31, %v241_v28 }
 0x14a   : > { %v207_v16 = vsub.f32 %v200_v5, %v206_v14 }
 0x14c   : > { %v211_v17 = vsub.f32 %v210_v15, %v207_v16 }
 0x14e   : > { %v212_v19 = vmul.f32 %v211_v17, %v196_v9 }
 0x150   : > { %v219_v20 = vmul.f32 %v217_v18, %v212_v19 }
 0x152   : > { %220 = vadd.xlane.f32.xlu1 %v219_v20 }
 0x1db   : > { %v221_v25 = vpop.xlane.xlu1 %220 }
 0x1dc   : > { %v222_v26 = vrot.slane %v221_v25, 4 }
 0x1de   : > { %v223_v27 = vadd.f32 %v222_v26, %v221_v25 }
 0x1e0   : > { %v224_v29 = vrot.slane %v223_v27, 2 }
 0x1e2   : > { %v225_v30 = vadd.f32 %v224_v29, %v223_v27 }
 0x1e4   : > { %v226_v32 = vrot.slane %v225_v30, 1 }
 0x1e6   : > { %v227_v33 = vadd.f32 %v226_v32, %v225_v30 }
 0x1e8   : > { %341 = vpush %v227_v33 }
 0x1e9   : > { %343 = vpush %v243_v34 }
 0x219   : > { %s342_s25 = spop %341 }
 0x21a   : > { %v229_v37 = vstv %s342_s25  ;;  %s344_s26 = spop %343  ;;  %251 = sbr.rel (%p336_p5) target bundleno = 569 (0x239), region = 40 }
 0x21b   : > { %v230_v38 = vadd.f32 %v229_v37, %v213_v35  ;;  %v245_v39 = vstv %s344_s26 }
 0x21c   : > { %v246_v40 = vadd.f32 %v245_v39, %v233_v36 }
 0x21d   : > { %232 = vst.msk [vmem:[#allocation2] sm:$0x1] %vm231_vm2, %v230_v38 }
 0x21e   : > { %247 = vst.msk [vmem:[#allocation3] sm:$0x1] %vm231_vm2, %v246_v40 }
 0x224   : > { %v252_v43 = vld [vmem:[#allocation2] sm:$0x1] }
 0x225   : > { %v253_v41 = vld [vmem:[#allocation3] sm:$0x1] }
 0x226   : > { %v254_v42 = vmax.f32 %v253_v41, 1.0 }
 0x228   : > { %370 = vrcp.f32 %v254_v42 }
 0x235   : > { %v371_v44 = vpop.eup %370 }
 0x236   : > { %v256_v45 = vmul.f32 %v371_v44, %v252_v43 }
 0x238   : > { %257 = vst.msk [vmem:[#allocation4] sm:$0x1] %vm231_vm2, %v256_v45 }
 0x239 PF: > { %p349_p6 = scmp.eq.s32.totalorder %s437_s13, 1  ;;  %s410_s27 = smov [#allocation4]  }
 0x23a   : > { %s265_s28 = sshll.u32 %s410_s27, 4  ;;  %s266_s28 = int_to_ptr.vmem [resolvable:$true] %s265_s28 }
 0x23b   : > { %s372_s29 = scalar_lea.vmem %s266_s28, 16  ;;  %s378_s30 = scalar_lea.vmem %s266_s28, 32 }
 0x23c   : > { %p373_p7 = scmp.ne.s32.totalorder %s266_s28, %s372_s29  ;;  %p379_p10 = scmp.lt.s32.totalorder %s266_s28, %s266_s28 }
 0x23d   : > { %p380_p11 = scmp.lt.s32.totalorder %s378_s30, %s372_s29 }
 0x23e   : > { %p374_p8 = pnand %p373_p7, %p349_p6 }
 0x23f   : > { %p381_p12 = por %p380_p11, %p379_p10 }
 0x240   : > { %p375_p9 = pneg %p374_p8 }
 0x242   : > { %p382_p13 = pnand %p381_p12, %p375_p9 }
 0x244   : > { %385 = shalt.err (!%p382_p13)
}
 0x245   : > { %346 = dma.vmem_to_hbm [thread:$0]  (%p349_p6), %s266_s28, 16, %s472_s3, [#allocation5]  }
 0x246   : > { %401 = dma.done.wait (%p349_p6), [#allocation5], 16  }
 0x247   : > { %403 = vsyncadd (%p349_p6), [#allocation5], 4294967280 }
 0x248 PF: > { %s14_s12 = sadd.s32 1, %s406_s12  }
 0x249   : > { %p11_p0 = scmp.ge.s32.totalorder %s14_s12, 4  }
 0x24b   :  { %13 = sbr.rel (!%p11_p0) target bundleno = 1 (0x1), region = 73 }
 0x250   :  { %278 = vsyncpa [#allocation5], 1 }
 0x251   :  { %280 = vsyncpa [#allocation5 + $0x1], 1 }

</bundles_post_ra>
